<compile_context>
chip_gen: v6e
topology: v6e:2x2x1
jax: 0.10.0
libtpu: 0.0.40
codegen_flags: <defaults>
</compile_context>

<pallas_src>
import functools
import math

import jax
import jax.numpy as jnp
from jax.experimental import pallas as pl
from jax.experimental.pallas import tpu as pltpu

_VMEM = pl.BlockSpec(memory_space=pltpu.MemorySpace.VMEM)


def _round_up(n, m):
    return ((n + m - 1) // m) * m


def _pad2d(x, rows, cols):
    """Zero-pad a 2-D array up to (rows, cols) in float32."""
    out = jnp.zeros((rows, cols), jnp.float32)
    return out.at[:x.shape[0], :x.shape[1]].set(x.astype(jnp.float32))


# --------------------------------------------------------------------------
# Fused kernel: Gram-Schmidt -> stacked d_net probe -> weighted direction.
# --------------------------------------------------------------------------
def _try_by_gs_kernel(imgs_ref, noise_ref, rand_ref, w1_ref, b1_ref, w2_ref,
                      b2_ref, wd_ref, x_scr, gs_scr, h_scr, *, num, gs_scale,
                      sigma, target, class_count):
    b, d = imgs_ref.shape

    # ---- Stage 1: Gram-Schmidt orthonormalization (register-resident Q) ----
    # Matches the reference: project the *original* row i onto the already
    # orthonormalized rows k < i, subtract, normalize, then global rescale.
    row_idx = jax.lax.broadcasted_iota(jnp.int32, (num, 1), 0)
    q = jnp.zeros((num, d), jnp.float32)
    for i in range(num):                       # num: small compile-time const
        x = rand_ref[i:i + 1, :]                                    # [1, D]
        # Rows >= i of q are still zero, so they contribute nothing.
        dots = jnp.sum(q * x, axis=1, keepdims=True)                # [num, 1]
        proj = jnp.sum(dots * q, axis=0, keepdims=True)             # [1, D]
        v = x - proj
        v = v * jax.lax.rsqrt(jnp.sum(v * v))                       # EUP rsqrt
        q = jnp.where(row_idx == i, v, q)
        # TODO(synk): for production-sized D, replace the two reductions above
        # with MXU matvecs (jnp.dot(q, x.T) and dots.T @ q).
    gs_scr[...] = q * gs_scale       # single lane-dense store; stays in VMEM

    # ---- Stage 2: probe all (num+1) perturbations with ONE matmul pair ----
    base = imgs_ref[...] + noise_ref[...]                           # [B, D]
    # Stage the stacked input in VMEM so the MXU sees one [(num+1)*B, D]
    # operand instead of num+1 tiny matmuls.  Row block 0 == fx (no pert).
    x_scr[0:b, :] = jnp.clip(base, 0.0, 1.0)
    for j in range(num):
        x_scr[(j + 1) * b:(j + 2) * b, :] = jnp.clip(
            base + gs_scr[j:j + 1, :], 0.0, 1.0)
    x2d = x_scr[...]                                                # [(num+1)*B, D]
    # NOTE: on v6e/v7x with large D, cast x2d / w1 / w2 to bfloat16 here while
    # keeping preferred_element_type=jnp.float32 accumulation.
    h = jnp.dot(x2d, w1_ref[...], preferred_element_type=jnp.float32)
    h = jnp.maximum(h + b1_ref[...], 0.0)                           # [(num+1)*B, Hp]
    logits = jnp.dot(h, w2_ref[...], preferred_element_type=jnp.float32)
    logits = logits + b2_ref[...]                                   # [(num+1)*B, Cp]
    col = jax.lax.broadcasted_iota(jnp.int32, logits.shape, 1)
    others = jnp.where((col == target) | (col >= class_count), -1e30, logits)
    h_scr[...] = (logits[:, target:target + 1]
                  - jnp.max(others, axis=1, keepdims=True))         # [(num+1)*B, 1]

    # ---- Stage 3: weighted direction ----
    fx = h_scr[0:b, :]                                              # [B, 1]
    wd = jnp.zeros((b, d), jnp.float32)
    nc = jnp.zeros((b, 1), jnp.float32)
    for j in range(num):
        cj = fx - h_scr[(j + 1) * b:(j + 2) * b, :]                 # [B, 1]
        nc = nc + cj * cj
        wd = wd + cj * gs_scr[j:j + 1, :]                           # [B, D] FMA
    norm_c = jnp.sqrt(nc) + 1e-20
    inv = pl.reciprocal(norm_c * sigma, approx=True)                # EUP recip
    wd_ref[...] = wd * inv                     # single lane-dense [B, D] store


# --------------------------------------------------------------------------
# TryByGS.forward
# --------------------------------------------------------------------------
def try_by_gs_forward(imgs, noise, rand_noise, w1, b1, w2, b2, *, sigma,
                      class_count, target=0):
    B, C, H, W = imgs.shape
    D = C * H * W
    num = rand_noise.shape[0]
    imgs_flat = imgs.reshape(B, D).astype(jnp.float32)
    noise_flat = noise.reshape(B, D).astype(jnp.float32)
    rand_flat = rand_noise.reshape(num, D).astype(jnp.float32)

    # Pad d_net weight output dims to full 128-lane vregs (zero pad); padded
    # logits are masked before the hinge max inside the kernel.
    hid = w1.shape[1]
    hid_p = _round_up(hid, 128)
    cls_p = _round_up(class_count, 128)
    w1p = _pad2d(w1, D, hid_p)
    b1p = _pad2d(jnp.reshape(b1, (1, -1)), 1, hid_p)
    w2p = _pad2d(w2, hid_p, cls_p)
    b2p = _pad2d(jnp.reshape(b2, (1, -1)), 1, cls_p)

    # sqrt(image_channels * img_size**2) * sigma
    gs_scale = math.sqrt(C * H * W) * sigma

    kernel = functools.partial(
        _try_by_gs_kernel, num=num, gs_scale=float(gs_scale),
        sigma=float(sigma), target=target, class_count=class_count)

    wd_flat = pl.pallas_call(
        kernel,
        out_shape=jax.ShapeDtypeStruct((B, D), jnp.float32),
        in_specs=[_VMEM] * 7,
        out_specs=_VMEM,
        scratch_shapes=[
            pltpu.VMEM(((num + 1) * B, D), jnp.float32),   # stacked probe input
            pltpu.VMEM((num, D), jnp.float32),             # gs_noise (VMEM-resident)
            pltpu.VMEM(((num + 1) * B, 1), jnp.float32),   # hinge values
        ],
        # TODO(synk): at production sizes, add a grid over B (and D) with
        # BlockSpec pipelining and dimension_semantics=("parallel", ...) so
        # both v7x TensorCores are used and tiles fit its 64 MiB VMEM.
    )(imgs_flat, noise_flat, rand_flat, w1p, b1p, w2p, b2p)
    return wd_flat.reshape(B, C, H, W)


if __name__ == "__main__":
    key = jax.random.PRNGKey(0)
    B, C, S = 2, 4, 16              # batch, image_channels, img_size
    num, sigma = 8, 0.5             # args.num, args.sigma
    hidden, class_count = 32, 10    # synthetic d_net sizes, args.class_count
    D = C * S * S

    k1, k2, k3, k4, k5, k6, k7 = jax.random.split(key, 7)
    imgs = jax.random.uniform(k1, (B, C, S, S), jnp.float32)
    noise = 0.1 * jax.random.normal(k2, (B, C, S, S), jnp.float32)
    # equivalent of torch.rand([num, C, S, S]) inside gram_schmidt()
    rand_noise = jax.random.uniform(k3, (num, C, S, S), jnp.float32)

    # deterministic synthetic d_net parameters (2-layer MLP)
    w1 = 0.02 * jax.random.normal(k4, (D, hidden), jnp.float32)
    b1 = 0.01 * jax.random.normal(k5, (1, hidden), jnp.float32)
    w2 = 0.02 * jax.random.normal(k6, (hidden, class_count), jnp.float32)
    b2 = 0.01 * jax.random.normal(k7, (1, class_count), jnp.float32)

    out = try_by_gs_forward(imgs, noise, rand_noise, w1, b1, w2, b2,
                            sigma=sigma, class_count=class_count)
    jax.block_until_ready(out)
    assert out.shape == (B, C, S, S)
    print("KERNEL_OK")
</pallas_src>

<mosaic_0001>
module attributes {stable_mosaic.version = 11 : i64} {
  func.func @_try_by_gs_kernel(%arg0: memref<2x1024xf32, #tpu.memory_space<vmem>>, %arg1: memref<2x1024xf32, #tpu.memory_space<vmem>>, %arg2: memref<8x1024xf32, #tpu.memory_space<vmem>>, %arg3: memref<1024x128xf32, #tpu.memory_space<vmem>>, %arg4: memref<1x128xf32, #tpu.memory_space<vmem>>, %arg5: memref<128x128xf32, #tpu.memory_space<vmem>>, %arg6: memref<1x128xf32, #tpu.memory_space<vmem>>, %arg7: memref<2x1024xf32, #tpu.memory_space<vmem>>, %arg8: memref<18x1024xf32, #tpu.memory_space<vmem>>, %arg9: memref<8x1024xf32, #tpu.memory_space<vmem>>, %arg10: memref<18x1xf32, #tpu.memory_space<vmem>>) attributes {dimension_semantics = [], scalar_prefetch = 0 : i64, scratch_operands = 3 : i64, tpu.core_type = #tpu.core_type<tc>} {
    %0 = tpu.iota {dimensions = array<i32: 0>} : vector<8x1xi32>
    %cst = arith.constant 0.000000e+00 : f32
    %1 = vector.broadcast %cst : f32 to vector<8x1024xf32>
    %c0 = arith.constant 0 : index
    %c0_0 = arith.constant 0 : index
    %2 = vector.load %arg2[%c0, %c0_0] : memref<8x1024xf32, #tpu.memory_space<vmem>>, vector<1x1024xf32>
    %3 = vector.broadcast %2 : vector<1x1024xf32> to vector<8x1024xf32>
    %4 = arith.mulf %1, %3 : vector<8x1024xf32>
    %cst_1 = arith.constant dense<0.000000e+00> : vector<8xf32>
    %5 = vector.multi_reduction <add>, %4, %cst_1 [1] : vector<8x1024xf32> to vector<8xf32>
    %6 = vector.shape_cast %5 : vector<8xf32> to vector<8x1xf32>
    %7 = vector.broadcast %6 : vector<8x1xf32> to vector<8x1024xf32>
    %8 = arith.mulf %7, %1 : vector<8x1024xf32>
    %cst_2 = arith.constant dense<0.000000e+00> : vector<1024xf32>
    %9 = vector.multi_reduction <add>, %8, %cst_2 [0] : vector<8x1024xf32> to vector<1024xf32>
    %10 = vector.shape_cast %9 : vector<1024xf32> to vector<1x1024xf32>
    %11 = arith.subf %2, %10 : vector<1x1024xf32>
    %12 = arith.mulf %11, %11 : vector<1x1024xf32>
    %13 = vector.shape_cast %12 : vector<1x1024xf32> to vector<1x1x1024xf32>
    %cst_3 = arith.constant dense<0.000000e+00> : vector<1xf32>
    %14 = vector.multi_reduction <add>, %13, %cst_3 [1, 2] : vector<1x1x1024xf32> to vector<1xf32>
    %15 = vector.shape_cast %14 : vector<1xf32> to vector<1x1x1xf32>
    %16 = vector.extract %15[0, 0, 0] : f32 from vector<1x1x1xf32>
    %17 = math.rsqrt %16 : f32
    %18 = vector.broadcast %17 : f32 to vector<1x1024xf32>
    %19 = arith.mulf %11, %18 : vector<1x1024xf32>
    %c0_i32 = arith.constant 0 : i32
    %20 = vector.broadcast %c0_i32 : i32 to vector<8x1xi32>
    %21 = arith.cmpi eq, %0, %20 : vector<8x1xi32>
    %22 = vector.shape_cast %21 : vector<8x1xi1> to vector<8x1xi1>
    %23 = vector.broadcast %22 : vector<8x1xi1> to vector<8x1024xi1>
    %24 = vector.shape_cast %19 : vector<1x1024xf32> to vector<1x1024xf32>
    %25 = vector.broadcast %24 : vector<1x1024xf32> to vector<8x1024xf32>
    %26 = arith.select %23, %25, %1 : vector<8x1024xi1>, vector<8x1024xf32>
    %c1 = arith.constant 1 : index
    %c0_4 = arith.constant 0 : index
    %27 = vector.load %arg2[%c1, %c0_4] : memref<8x1024xf32, #tpu.memory_space<vmem>>, vector<1x1024xf32>
    %28 = vector.broadcast %27 : vector<1x1024xf32> to vector<8x1024xf32>
    %29 = arith.mulf %26, %28 : vector<8x1024xf32>
    %cst_5 = arith.constant dense<0.000000e+00> : vector<8xf32>
    %30 = vector.multi_reduction <add>, %29, %cst_5 [1] : vector<8x1024xf32> to vector<8xf32>
    %31 = vector.shape_cast %30 : vector<8xf32> to vector<8x1xf32>
    %32 = vector.broadcast %31 : vector<8x1xf32> to vector<8x1024xf32>
    %33 = arith.mulf %32, %26 : vector<8x1024xf32>
    %cst_6 = arith.constant dense<0.000000e+00> : vector<1024xf32>
    %34 = vector.multi_reduction <add>, %33, %cst_6 [0] : vector<8x1024xf32> to vector<1024xf32>
    %35 = vector.shape_cast %34 : vector<1024xf32> to vector<1x1024xf32>
    %36 = arith.subf %27, %35 : vector<1x1024xf32>
    %37 = arith.mulf %36, %36 : vector<1x1024xf32>
    %38 = vector.shape_cast %37 : vector<1x1024xf32> to vector<1x1x1024xf32>
    %cst_7 = arith.constant dense<0.000000e+00> : vector<1xf32>
    %39 = vector.multi_reduction <add>, %38, %cst_7 [1, 2] : vector<1x1x1024xf32> to vector<1xf32>
    %40 = vector.shape_cast %39 : vector<1xf32> to vector<1x1x1xf32>
    %41 = vector.extract %40[0, 0, 0] : f32 from vector<1x1x1xf32>
    %42 = math.rsqrt %41 : f32
    %43 = vector.broadcast %42 : f32 to vector<1x1024xf32>
    %44 = arith.mulf %36, %43 : vector<1x1024xf32>
    %c1_i32 = arith.constant 1 : i32
    %45 = vector.broadcast %c1_i32 : i32 to vector<8x1xi32>
    %46 = arith.cmpi eq, %0, %45 : vector<8x1xi32>
    %47 = vector.shape_cast %46 : vector<8x1xi1> to vector<8x1xi1>
    %48 = vector.broadcast %47 : vector<8x1xi1> to vector<8x1024xi1>
    %49 = vector.shape_cast %44 : vector<1x1024xf32> to vector<1x1024xf32>
    %50 = vector.broadcast %49 : vector<1x1024xf32> to vector<8x1024xf32>
    %51 = arith.select %48, %50, %26 : vector<8x1024xi1>, vector<8x1024xf32>
    %c2 = arith.constant 2 : index
    %c0_8 = arith.constant 0 : index
    %52 = vector.load %arg2[%c2, %c0_8] : memref<8x1024xf32, #tpu.memory_space<vmem>>, vector<1x1024xf32>
    %53 = vector.broadcast %52 : vector<1x1024xf32> to vector<8x1024xf32>
    %54 = arith.mulf %51, %53 : vector<8x1024xf32>
    %cst_9 = arith.constant dense<0.000000e+00> : vector<8xf32>
    %55 = vector.multi_reduction <add>, %54, %cst_9 [1] : vector<8x1024xf32> to vector<8xf32>
    %56 = vector.shape_cast %55 : vector<8xf32> to vector<8x1xf32>
    %57 = vector.broadcast %56 : vector<8x1xf32> to vector<8x1024xf32>
    %58 = arith.mulf %57, %51 : vector<8x1024xf32>
    %cst_10 = arith.constant dense<0.000000e+00> : vector<1024xf32>
    %59 = vector.multi_reduction <add>, %58, %cst_10 [0] : vector<8x1024xf32> to vector<1024xf32>
    %60 = vector.shape_cast %59 : vector<1024xf32> to vector<1x1024xf32>
    %61 = arith.subf %52, %60 : vector<1x1024xf32>
    %62 = arith.mulf %61, %61 : vector<1x1024xf32>
    %63 = vector.shape_cast %62 : vector<1x1024xf32> to vector<1x1x1024xf32>
    %cst_11 = arith.constant dense<0.000000e+00> : vector<1xf32>
    %64 = vector.multi_reduction <add>, %63, %cst_11 [1, 2] : vector<1x1x1024xf32> to vector<1xf32>
    %65 = vector.shape_cast %64 : vector<1xf32> to vector<1x1x1xf32>
    %66 = vector.extract %65[0, 0, 0] : f32 from vector<1x1x1xf32>
    %67 = math.rsqrt %66 : f32
    %68 = vector.broadcast %67 : f32 to vector<1x1024xf32>
    %69 = arith.mulf %61, %68 : vector<1x1024xf32>
    %c2_i32 = arith.constant 2 : i32
    %70 = vector.broadcast %c2_i32 : i32 to vector<8x1xi32>
    %71 = arith.cmpi eq, %0, %70 : vector<8x1xi32>
    %72 = vector.shape_cast %71 : vector<8x1xi1> to vector<8x1xi1>
    %73 = vector.broadcast %72 : vector<8x1xi1> to vector<8x1024xi1>
    %74 = vector.shape_cast %69 : vector<1x1024xf32> to vector<1x1024xf32>
    %75 = vector.broadcast %74 : vector<1x1024xf32> to vector<8x1024xf32>
    %76 = arith.select %73, %75, %51 : vector<8x1024xi1>, vector<8x1024xf32>
    %c3 = arith.constant 3 : index
    %c0_12 = arith.constant 0 : index
    %77 = vector.load %arg2[%c3, %c0_12] : memref<8x1024xf32, #tpu.memory_space<vmem>>, vector<1x1024xf32>
    %78 = vector.broadcast %77 : vector<1x1024xf32> to vector<8x1024xf32>
    %79 = arith.mulf %76, %78 : vector<8x1024xf32>
    %cst_13 = arith.constant dense<0.000000e+00> : vector<8xf32>
    %80 = vector.multi_reduction <add>, %79, %cst_13 [1] : vector<8x1024xf32> to vector<8xf32>
    %81 = vector.shape_cast %80 : vector<8xf32> to vector<8x1xf32>
    %82 = vector.broadcast %81 : vector<8x1xf32> to vector<8x1024xf32>
    %83 = arith.mulf %82, %76 : vector<8x1024xf32>
    %cst_14 = arith.constant dense<0.000000e+00> : vector<1024xf32>
    %84 = vector.multi_reduction <add>, %83, %cst_14 [0] : vector<8x1024xf32> to vector<1024xf32>
    %85 = vector.shape_cast %84 : vector<1024xf32> to vector<1x1024xf32>
    %86 = arith.subf %77, %85 : vector<1x1024xf32>
    %87 = arith.mulf %86, %86 : vector<1x1024xf32>
    %88 = vector.shape_cast %87 : vector<1x1024xf32> to vector<1x1x1024xf32>
    %cst_15 = arith.constant dense<0.000000e+00> : vector<1xf32>
    %89 = vector.multi_reduction <add>, %88, %cst_15 [1, 2] : vector<1x1x1024xf32> to vector<1xf32>
    %90 = vector.shape_cast %89 : vector<1xf32> to vector<1x1x1xf32>
    %91 = vector.extract %90[0, 0, 0] : f32 from vector<1x1x1xf32>
    %92 = math.rsqrt %91 : f32
    %93 = vector.broadcast %92 : f32 to vector<1x1024xf32>
    %94 = arith.mulf %86, %93 : vector<1x1024xf32>
    %c3_i32 = arith.constant 3 : i32
    %95 = vector.broadcast %c3_i32 : i32 to vector<8x1xi32>
    %96 = arith.cmpi eq, %0, %95 : vector<8x1xi32>
    %97 = vector.shape_cast %96 : vector<8x1xi1> to vector<8x1xi1>
    %98 = vector.broadcast %97 : vector<8x1xi1> to vector<8x1024xi1>
    %99 = vector.shape_cast %94 : vector<1x1024xf32> to vector<1x1024xf32>
    %100 = vector.broadcast %99 : vector<1x1024xf32> to vector<8x1024xf32>
    %101 = arith.select %98, %100, %76 : vector<8x1024xi1>, vector<8x1024xf32>
    %c4 = arith.constant 4 : index
    %c0_16 = arith.constant 0 : index
    %102 = vector.load %arg2[%c4, %c0_16] : memref<8x1024xf32, #tpu.memory_space<vmem>>, vector<1x1024xf32>
    %103 = vector.broadcast %102 : vector<1x1024xf32> to vector<8x1024xf32>
    %104 = arith.mulf %101, %103 : vector<8x1024xf32>
    %cst_17 = arith.constant dense<0.000000e+00> : vector<8xf32>
    %105 = vector.multi_reduction <add>, %104, %cst_17 [1] : vector<8x1024xf32> to vector<8xf32>
    %106 = vector.shape_cast %105 : vector<8xf32> to vector<8x1xf32>
    %107 = vector.broadcast %106 : vector<8x1xf32> to vector<8x1024xf32>
    %108 = arith.mulf %107, %101 : vector<8x1024xf32>
    %cst_18 = arith.constant dense<0.000000e+00> : vector<1024xf32>
    %109 = vector.multi_reduction <add>, %108, %cst_18 [0] : vector<8x1024xf32> to vector<1024xf32>
    %110 = vector.shape_cast %109 : vector<1024xf32> to vector<1x1024xf32>
    %111 = arith.subf %102, %110 : vector<1x1024xf32>
    %112 = arith.mulf %111, %111 : vector<1x1024xf32>
    %113 = vector.shape_cast %112 : vector<1x1024xf32> to vector<1x1x1024xf32>
    %cst_19 = arith.constant dense<0.000000e+00> : vector<1xf32>
    %114 = vector.multi_reduction <add>, %113, %cst_19 [1, 2] : vector<1x1x1024xf32> to vector<1xf32>
    %115 = vector.shape_cast %114 : vector<1xf32> to vector<1x1x1xf32>
    %116 = vector.extract %115[0, 0, 0] : f32 from vector<1x1x1xf32>
    %117 = math.rsqrt %116 : f32
    %118 = vector.broadcast %117 : f32 to vector<1x1024xf32>
    %119 = arith.mulf %111, %118 : vector<1x1024xf32>
    %c4_i32 = arith.constant 4 : i32
    %120 = vector.broadcast %c4_i32 : i32 to vector<8x1xi32>
    %121 = arith.cmpi eq, %0, %120 : vector<8x1xi32>
    %122 = vector.shape_cast %121 : vector<8x1xi1> to vector<8x1xi1>
    %123 = vector.broadcast %122 : vector<8x1xi1> to vector<8x1024xi1>
    %124 = vector.shape_cast %119 : vector<1x1024xf32> to vector<1x1024xf32>
    %125 = vector.broadcast %124 : vector<1x1024xf32> to vector<8x1024xf32>
    %126 = arith.select %123, %125, %101 : vector<8x1024xi1>, vector<8x1024xf32>
    %c5 = arith.constant 5 : index
    %c0_20 = arith.constant 0 : index
    %127 = vector.load %arg2[%c5, %c0_20] : memref<8x1024xf32, #tpu.memory_space<vmem>>, vector<1x1024xf32>
    %128 = vector.broadcast %127 : vector<1x1024xf32> to vector<8x1024xf32>
    %129 = arith.mulf %126, %128 : vector<8x1024xf32>
    %cst_21 = arith.constant dense<0.000000e+00> : vector<8xf32>
    %130 = vector.multi_reduction <add>, %129, %cst_21 [1] : vector<8x1024xf32> to vector<8xf32>
    %131 = vector.shape_cast %130 : vector<8xf32> to vector<8x1xf32>
    %132 = vector.broadcast %131 : vector<8x1xf32> to vector<8x1024xf32>
    %133 = arith.mulf %132, %126 : vector<8x1024xf32>
    %cst_22 = arith.constant dense<0.000000e+00> : vector<1024xf32>
    %134 = vector.multi_reduction <add>, %133, %cst_22 [0] : vector<8x1024xf32> to vector<1024xf32>
    %135 = vector.shape_cast %134 : vector<1024xf32> to vector<1x1024xf32>
    %136 = arith.subf %127, %135 : vector<1x1024xf32>
    %137 = arith.mulf %136, %136 : vector<1x1024xf32>
    %138 = vector.shape_cast %137 : vector<1x1024xf32> to vector<1x1x1024xf32>
    %cst_23 = arith.constant dense<0.000000e+00> : vector<1xf32>
    %139 = vector.multi_reduction <add>, %138, %cst_23 [1, 2] : vector<1x1x1024xf32> to vector<1xf32>
    %140 = vector.shape_cast %139 : vector<1xf32> to vector<1x1x1xf32>
    %141 = vector.extract %140[0, 0, 0] : f32 from vector<1x1x1xf32>
    %142 = math.rsqrt %141 : f32
    %143 = vector.broadcast %142 : f32 to vector<1x1024xf32>
    %144 = arith.mulf %136, %143 : vector<1x1024xf32>
    %c5_i32 = arith.constant 5 : i32
    %145 = vector.broadcast %c5_i32 : i32 to vector<8x1xi32>
    %146 = arith.cmpi eq, %0, %145 : vector<8x1xi32>
    %147 = vector.shape_cast %146 : vector<8x1xi1> to vector<8x1xi1>
    %148 = vector.broadcast %147 : vector<8x1xi1> to vector<8x1024xi1>
    %149 = vector.shape_cast %144 : vector<1x1024xf32> to vector<1x1024xf32>
    %150 = vector.broadcast %149 : vector<1x1024xf32> to vector<8x1024xf32>
    %151 = arith.select %148, %150, %126 : vector<8x1024xi1>, vector<8x1024xf32>
    %c6 = arith.constant 6 : index
    %c0_24 = arith.constant 0 : index
    %152 = vector.load %arg2[%c6, %c0_24] : memref<8x1024xf32, #tpu.memory_space<vmem>>, vector<1x1024xf32>
    %153 = vector.broadcast %152 : vector<1x1024xf32> to vector<8x1024xf32>
    %154 = arith.mulf %151, %153 : vector<8x1024xf32>
    %cst_25 = arith.constant dense<0.000000e+00> : vector<8xf32>
    %155 = vector.multi_reduction <add>, %154, %cst_25 [1] : vector<8x1024xf32> to vector<8xf32>
    %156 = vector.shape_cast %155 : vector<8xf32> to vector<8x1xf32>
    %157 = vector.broadcast %156 : vector<8x1xf32> to vector<8x1024xf32>
    %158 = arith.mulf %157, %151 : vector<8x1024xf32>
    %cst_26 = arith.constant dense<0.000000e+00> : vector<1024xf32>
    %159 = vector.multi_reduction <add>, %158, %cst_26 [0] : vector<8x1024xf32> to vector<1024xf32>
    %160 = vector.shape_cast %159 : vector<1024xf32> to vector<1x1024xf32>
    %161 = arith.subf %152, %160 : vector<1x1024xf32>
    %162 = arith.mulf %161, %161 : vector<1x1024xf32>
    %163 = vector.shape_cast %162 : vector<1x1024xf32> to vector<1x1x1024xf32>
    %cst_27 = arith.constant dense<0.000000e+00> : vector<1xf32>
    %164 = vector.multi_reduction <add>, %163, %cst_27 [1, 2] : vector<1x1x1024xf32> to vector<1xf32>
    %165 = vector.shape_cast %164 : vector<1xf32> to vector<1x1x1xf32>
    %166 = vector.extract %165[0, 0, 0] : f32 from vector<1x1x1xf32>
    %167 = math.rsqrt %166 : f32
    %168 = vector.broadcast %167 : f32 to vector<1x1024xf32>
    %169 = arith.mulf %161, %168 : vector<1x1024xf32>
    %c6_i32 = arith.constant 6 : i32
    %170 = vector.broadcast %c6_i32 : i32 to vector<8x1xi32>
    %171 = arith.cmpi eq, %0, %170 : vector<8x1xi32>
    %172 = vector.shape_cast %171 : vector<8x1xi1> to vector<8x1xi1>
    %173 = vector.broadcast %172 : vector<8x1xi1> to vector<8x1024xi1>
    %174 = vector.shape_cast %169 : vector<1x1024xf32> to vector<1x1024xf32>
    %175 = vector.broadcast %174 : vector<1x1024xf32> to vector<8x1024xf32>
    %176 = arith.select %173, %175, %151 : vector<8x1024xi1>, vector<8x1024xf32>
    %c7 = arith.constant 7 : index
    %c0_28 = arith.constant 0 : index
    %177 = vector.load %arg2[%c7, %c0_28] : memref<8x1024xf32, #tpu.memory_space<vmem>>, vector<1x1024xf32>
    %178 = vector.broadcast %177 : vector<1x1024xf32> to vector<8x1024xf32>
    %179 = arith.mulf %176, %178 : vector<8x1024xf32>
    %cst_29 = arith.constant dense<0.000000e+00> : vector<8xf32>
    %180 = vector.multi_reduction <add>, %179, %cst_29 [1] : vector<8x1024xf32> to vector<8xf32>
    %181 = vector.shape_cast %180 : vector<8xf32> to vector<8x1xf32>
    %182 = vector.broadcast %181 : vector<8x1xf32> to vector<8x1024xf32>
    %183 = arith.mulf %182, %176 : vector<8x1024xf32>
    %cst_30 = arith.constant dense<0.000000e+00> : vector<1024xf32>
    %184 = vector.multi_reduction <add>, %183, %cst_30 [0] : vector<8x1024xf32> to vector<1024xf32>
    %185 = vector.shape_cast %184 : vector<1024xf32> to vector<1x1024xf32>
    %186 = arith.subf %177, %185 : vector<1x1024xf32>
    %187 = arith.mulf %186, %186 : vector<1x1024xf32>
    %188 = vector.shape_cast %187 : vector<1x1024xf32> to vector<1x1x1024xf32>
    %cst_31 = arith.constant dense<0.000000e+00> : vector<1xf32>
    %189 = vector.multi_reduction <add>, %188, %cst_31 [1, 2] : vector<1x1x1024xf32> to vector<1xf32>
    %190 = vector.shape_cast %189 : vector<1xf32> to vector<1x1x1xf32>
    %191 = vector.extract %190[0, 0, 0] : f32 from vector<1x1x1xf32>
    %192 = math.rsqrt %191 : f32
    %193 = vector.broadcast %192 : f32 to vector<1x1024xf32>
    %194 = arith.mulf %186, %193 : vector<1x1024xf32>
    %c7_i32 = arith.constant 7 : i32
    %195 = vector.broadcast %c7_i32 : i32 to vector<8x1xi32>
    %196 = arith.cmpi eq, %0, %195 : vector<8x1xi32>
    %197 = vector.shape_cast %196 : vector<8x1xi1> to vector<8x1xi1>
    %198 = vector.broadcast %197 : vector<8x1xi1> to vector<8x1024xi1>
    %199 = vector.shape_cast %194 : vector<1x1024xf32> to vector<1x1024xf32>
    %200 = vector.broadcast %199 : vector<1x1024xf32> to vector<8x1024xf32>
    %201 = arith.select %198, %200, %176 : vector<8x1024xi1>, vector<8x1024xf32>
    %cst_32 = arith.constant 1.600000e+01 : f32
    %202 = vector.broadcast %cst_32 : f32 to vector<8x1024xf32>
    %203 = arith.mulf %201, %202 : vector<8x1024xf32>
    %c0_33 = arith.constant 0 : index
    %c0_34 = arith.constant 0 : index
    %204 = vector.load %arg9[%c0_33, %c0_34] : memref<8x1024xf32, #tpu.memory_space<vmem>>, vector<8x1024xf32>
    tpu.vector_store %arg9[%c0_33, %c0_34], %203 {strides = array<i32>} : memref<8x1024xf32, #tpu.memory_space<vmem>>, vector<8x1024xf32>,
    %c0_35 = arith.constant 0 : index
    %c0_36 = arith.constant 0 : index
    %205 = vector.load %arg0[%c0_35, %c0_36] : memref<2x1024xf32, #tpu.memory_space<vmem>>, vector<2x1024xf32>
    %c0_37 = arith.constant 0 : index
    %c0_38 = arith.constant 0 : index
    %206 = vector.load %arg1[%c0_37, %c0_38] : memref<2x1024xf32, #tpu.memory_space<vmem>>, vector<2x1024xf32>
    %207 = arith.addf %205, %206 : vector<2x1024xf32>
    %cst_39 = arith.constant 0.000000e+00 : f32
    %cst_40 = arith.constant 1.000000e+00 : f32
    %208 = vector.broadcast %cst_39 : f32 to vector<2x1024xf32>
    %209 = arith.maximumf %208, %207 : vector<2x1024xf32>
    %210 = vector.broadcast %cst_40 : f32 to vector<2x1024xf32>
    %211 = arith.minimumf %210, %209 : vector<2x1024xf32>
    %c0_41 = arith.constant 0 : index
    %c0_42 = arith.constant 0 : index
    %212 = vector.load %arg8[%c0_41, %c0_42] : memref<18x1024xf32, #tpu.memory_space<vmem>>, vector<2x1024xf32>
    tpu.vector_store %arg8[%c0_41, %c0_42], %211 {strides = array<i32>} : memref<18x1024xf32, #tpu.memory_space<vmem>>, vector<2x1024xf32>,
    %c0_43 = arith.constant 0 : index
    %c0_44 = arith.constant 0 : index
    %213 = vector.load %arg9[%c0_43, %c0_44] : memref<8x1024xf32, #tpu.memory_space<vmem>>, vector<1x1024xf32>
    %214 = vector.broadcast %213 : vector<1x1024xf32> to vector<2x1024xf32>
    %215 = arith.addf %207, %214 : vector<2x1024xf32>
    %cst_45 = arith.constant 0.000000e+00 : f32
    %cst_46 = arith.constant 1.000000e+00 : f32
    %216 = vector.broadcast %cst_45 : f32 to vector<2x1024xf32>
    %217 = arith.maximumf %216, %215 : vector<2x1024xf32>
    %218 = vector.broadcast %cst_46 : f32 to vector<2x1024xf32>
    %219 = arith.minimumf %218, %217 : vector<2x1024xf32>
    %c2_47 = arith.constant 2 : index
    %c0_48 = arith.constant 0 : index
    %220 = vector.load %arg8[%c2_47, %c0_48] : memref<18x1024xf32, #tpu.memory_space<vmem>>, vector<2x1024xf32>
    tpu.vector_store %arg8[%c2_47, %c0_48], %219 {strides = array<i32>} : memref<18x1024xf32, #tpu.memory_space<vmem>>, vector<2x1024xf32>,
    %c1_49 = arith.constant 1 : index
    %c0_50 = arith.constant 0 : index
    %221 = vector.load %arg9[%c1_49, %c0_50] : memref<8x1024xf32, #tpu.memory_space<vmem>>, vector<1x1024xf32>
    %222 = vector.broadcast %221 : vector<1x1024xf32> to vector<2x1024xf32>
    %223 = arith.addf %207, %222 : vector<2x1024xf32>
    %cst_51 = arith.constant 0.000000e+00 : f32
    %cst_52 = arith.constant 1.000000e+00 : f32
    %224 = vector.broadcast %cst_51 : f32 to vector<2x1024xf32>
    %225 = arith.maximumf %224, %223 : vector<2x1024xf32>
    %226 = vector.broadcast %cst_52 : f32 to vector<2x1024xf32>
    %227 = arith.minimumf %226, %225 : vector<2x1024xf32>
    %c4_53 = arith.constant 4 : index
    %c0_54 = arith.constant 0 : index
    %228 = vector.load %arg8[%c4_53, %c0_54] : memref<18x1024xf32, #tpu.memory_space<vmem>>, vector<2x1024xf32>
    tpu.vector_store %arg8[%c4_53, %c0_54], %227 {strides = array<i32>} : memref<18x1024xf32, #tpu.memory_space<vmem>>, vector<2x1024xf32>,
    %c2_55 = arith.constant 2 : index
    %c0_56 = arith.constant 0 : index
    %229 = vector.load %arg9[%c2_55, %c0_56] : memref<8x1024xf32, #tpu.memory_space<vmem>>, vector<1x1024xf32>
    %230 = vector.broadcast %229 : vector<1x1024xf32> to vector<2x1024xf32>
    %231 = arith.addf %207, %230 : vector<2x1024xf32>
    %cst_57 = arith.constant 0.000000e+00 : f32
    %cst_58 = arith.constant 1.000000e+00 : f32
    %232 = vector.broadcast %cst_57 : f32 to vector<2x1024xf32>
    %233 = arith.maximumf %232, %231 : vector<2x1024xf32>
    %234 = vector.broadcast %cst_58 : f32 to vector<2x1024xf32>
    %235 = arith.minimumf %234, %233 : vector<2x1024xf32>
    %c6_59 = arith.constant 6 : index
    %c0_60 = arith.constant 0 : index
    %236 = vector.load %arg8[%c6_59, %c0_60] : memref<18x1024xf32, #tpu.memory_space<vmem>>, vector<2x1024xf32>
    tpu.vector_store %arg8[%c6_59, %c0_60], %235 {strides = array<i32>} : memref<18x1024xf32, #tpu.memory_space<vmem>>, vector<2x1024xf32>,
    %c3_61 = arith.constant 3 : index
    %c0_62 = arith.constant 0 : index
    %237 = vector.load %arg9[%c3_61, %c0_62] : memref<8x1024xf32, #tpu.memory_space<vmem>>, vector<1x1024xf32>
    %238 = vector.broadcast %237 : vector<1x1024xf32> to vector<2x1024xf32>
    %239 = arith.addf %207, %238 : vector<2x1024xf32>
    %cst_63 = arith.constant 0.000000e+00 : f32
    %cst_64 = arith.constant 1.000000e+00 : f32
    %240 = vector.broadcast %cst_63 : f32 to vector<2x1024xf32>
    %241 = arith.maximumf %240, %239 : vector<2x1024xf32>
    %242 = vector.broadcast %cst_64 : f32 to vector<2x1024xf32>
    %243 = arith.minimumf %242, %241 : vector<2x1024xf32>
    %c8 = arith.constant 8 : index
    %c0_65 = arith.constant 0 : index
    %244 = vector.load %arg8[%c8, %c0_65] : memref<18x1024xf32, #tpu.memory_space<vmem>>, vector<2x1024xf32>
    tpu.vector_store %arg8[%c8, %c0_65], %243 {strides = array<i32>} : memref<18x1024xf32, #tpu.memory_space<vmem>>, vector<2x1024xf32>,
    %c4_66 = arith.constant 4 : index
    %c0_67 = arith.constant 0 : index
    %245 = vector.load %arg9[%c4_66, %c0_67] : memref<8x1024xf32, #tpu.memory_space<vmem>>, vector<1x1024xf32>
    %246 = vector.broadcast %245 : vector<1x1024xf32> to vector<2x1024xf32>
    %247 = arith.addf %207, %246 : vector<2x1024xf32>
    %cst_68 = arith.constant 0.000000e+00 : f32
    %cst_69 = arith.constant 1.000000e+00 : f32
    %248 = vector.broadcast %cst_68 : f32 to vector<2x1024xf32>
    %249 = arith.maximumf %248, %247 : vector<2x1024xf32>
    %250 = vector.broadcast %cst_69 : f32 to vector<2x1024xf32>
    %251 = arith.minimumf %250, %249 : vector<2x1024xf32>
    %c10 = arith.constant 10 : index
    %c0_70 = arith.constant 0 : index
    %252 = vector.load %arg8[%c10, %c0_70] : memref<18x1024xf32, #tpu.memory_space<vmem>>, vector<2x1024xf32>
    tpu.vector_store %arg8[%c10, %c0_70], %251 {strides = array<i32>} : memref<18x1024xf32, #tpu.memory_space<vmem>>, vector<2x1024xf32>,
    %c5_71 = arith.constant 5 : index
    %c0_72 = arith.constant 0 : index
    %253 = vector.load %arg9[%c5_71, %c0_72] : memref<8x1024xf32, #tpu.memory_space<vmem>>, vector<1x1024xf32>
    %254 = vector.broadcast %253 : vector<1x1024xf32> to vector<2x1024xf32>
    %255 = arith.addf %207, %254 : vector<2x1024xf32>
    %cst_73 = arith.constant 0.000000e+00 : f32
    %cst_74 = arith.constant 1.000000e+00 : f32
    %256 = vector.broadcast %cst_73 : f32 to vector<2x1024xf32>
    %257 = arith.maximumf %256, %255 : vector<2x1024xf32>
    %258 = vector.broadcast %cst_74 : f32 to vector<2x1024xf32>
    %259 = arith.minimumf %258, %257 : vector<2x1024xf32>
    %c12 = arith.constant 12 : index
    %c0_75 = arith.constant 0 : index
    %260 = vector.load %arg8[%c12, %c0_75] : memref<18x1024xf32, #tpu.memory_space<vmem>>, vector<2x1024xf32>
    tpu.vector_store %arg8[%c12, %c0_75], %259 {strides = array<i32>} : memref<18x1024xf32, #tpu.memory_space<vmem>>, vector<2x1024xf32>,
    %c6_76 = arith.constant 6 : index
    %c0_77 = arith.constant 0 : index
    %261 = vector.load %arg9[%c6_76, %c0_77] : memref<8x1024xf32, #tpu.memory_space<vmem>>, vector<1x1024xf32>
    %262 = vector.broadcast %261 : vector<1x1024xf32> to vector<2x1024xf32>
    %263 = arith.addf %207, %262 : vector<2x1024xf32>
    %cst_78 = arith.constant 0.000000e+00 : f32
    %cst_79 = arith.constant 1.000000e+00 : f32
    %264 = vector.broadcast %cst_78 : f32 to vector<2x1024xf32>
    %265 = arith.maximumf %264, %263 : vector<2x1024xf32>
    %266 = vector.broadcast %cst_79 : f32 to vector<2x1024xf32>
    %267 = arith.minimumf %266, %265 : vector<2x1024xf32>
    %c14 = arith.constant 14 : index
    %c0_80 = arith.constant 0 : index
    %268 = vector.load %arg8[%c14, %c0_80] : memref<18x1024xf32, #tpu.memory_space<vmem>>, vector<2x1024xf32>
    tpu.vector_store %arg8[%c14, %c0_80], %267 {strides = array<i32>} : memref<18x1024xf32, #tpu.memory_space<vmem>>, vector<2x1024xf32>,
    %c7_81 = arith.constant 7 : index
    %c0_82 = arith.constant 0 : index
    %269 = vector.load %arg9[%c7_81, %c0_82] : memref<8x1024xf32, #tpu.memory_space<vmem>>, vector<1x1024xf32>
    %270 = vector.broadcast %269 : vector<1x1024xf32> to vector<2x1024xf32>
    %271 = arith.addf %207, %270 : vector<2x1024xf32>
    %cst_83 = arith.constant 0.000000e+00 : f32
    %cst_84 = arith.constant 1.000000e+00 : f32
    %272 = vector.broadcast %cst_83 : f32 to vector<2x1024xf32>
    %273 = arith.maximumf %272, %271 : vector<2x1024xf32>
    %274 = vector.broadcast %cst_84 : f32 to vector<2x1024xf32>
    %275 = arith.minimumf %274, %273 : vector<2x1024xf32>
    %c16 = arith.constant 16 : index
    %c0_85 = arith.constant 0 : index
    %276 = vector.load %arg8[%c16, %c0_85] : memref<18x1024xf32, #tpu.memory_space<vmem>>, vector<2x1024xf32>
    tpu.vector_store %arg8[%c16, %c0_85], %275 {strides = array<i32>} : memref<18x1024xf32, #tpu.memory_space<vmem>>, vector<2x1024xf32>,
    %c0_86 = arith.constant 0 : index
    %c0_87 = arith.constant 0 : index
    %277 = vector.load %arg8[%c0_86, %c0_87] : memref<18x1024xf32, #tpu.memory_space<vmem>>, vector<18x1024xf32>
    %c0_88 = arith.constant 0 : index
    %c0_89 = arith.constant 0 : index
    %278 = vector.load %arg3[%c0_88, %c0_89] : memref<1024x128xf32, #tpu.memory_space<vmem>>, vector<1024x128xf32>
    %cst_90 = arith.constant dense<0.000000e+00> : vector<18x128xf32>
    %279 = tpu.matmul %277, %278, %cst_90 {dimension_numbers = #tpu.dot_dimension_numbers<[1], [0], [0], [1], [0, 0, 1, 1], [], []>} : vector<18x1024xf32>, vector<1024x128xf32>, vector<18x128xf32> -> vector<18x128xf32>
    %c0_91 = arith.constant 0 : index
    %c0_92 = arith.constant 0 : index
    %280 = vector.load %arg4[%c0_91, %c0_92] : memref<1x128xf32, #tpu.memory_space<vmem>>, vector<1x128xf32>
    %281 = vector.broadcast %280 : vector<1x128xf32> to vector<18x128xf32>
    %282 = arith.addf %279, %281 : vector<18x128xf32>
    %cst_93 = arith.constant 0.000000e+00 : f32
    %283 = vector.broadcast %cst_93 : f32 to vector<18x128xf32>
    %284 = arith.maximumf %282, %283 : vector<18x128xf32>
    %c0_94 = arith.constant 0 : index
    %c0_95 = arith.constant 0 : index
    %285 = vector.load %arg5[%c0_94, %c0_95] : memref<128x128xf32, #tpu.memory_space<vmem>>, vector<128x128xf32>
    %cst_96 = arith.constant dense<0.000000e+00> : vector<18x128xf32>
    %286 = tpu.matmul %284, %285, %cst_96 {dimension_numbers = #tpu.dot_dimension_numbers<[1], [0], [0], [1], [0, 0, 1, 1], [], []>} : vector<18x128xf32>, vector<128x128xf32>, vector<18x128xf32> -> vector<18x128xf32>
    %c0_97 = arith.constant 0 : index
    %c0_98 = arith.constant 0 : index
    %287 = vector.load %arg6[%c0_97, %c0_98] : memref<1x128xf32, #tpu.memory_space<vmem>>, vector<1x128xf32>
    %288 = vector.broadcast %287 : vector<1x128xf32> to vector<18x128xf32>
    %289 = arith.addf %286, %288 : vector<18x128xf32>
    %290 = tpu.iota {dimensions = array<i32: 1>} : vector<18x128xi32>
    %c0_i32_99 = arith.constant 0 : i32
    %291 = vector.broadcast %c0_i32_99 : i32 to vector<18x128xi32>
    %292 = arith.cmpi eq, %290, %291 : vector<18x128xi32>
    %c10_i32 = arith.constant 10 : i32
    %293 = vector.broadcast %c10_i32 : i32 to vector<18x128xi32>
    %294 = arith.cmpi sge, %290, %293 : vector<18x128xi32>
    %295 = arith.ori %292, %294 : vector<18x128xi1>
    %cst_100 = arith.constant -1.000000e+30 : f32
    %296 = vector.broadcast %cst_100 : f32 to vector<18x128xf32>
    %297 = arith.select %295, %296, %289 : vector<18x128xi1>, vector<18x128xf32>
    %298 = vector.extract_strided_slice %289 {offsets = [0, 0], sizes = [18, 1], strides = [1, 1]} : vector<18x128xf32> to vector<18x1xf32>
    %cst_101 = arith.constant dense<0xFF800000> : vector<18xf32>
    %299 = vector.multi_reduction <maximumf>, %297, %cst_101 [1] : vector<18x128xf32> to vector<18xf32>
    %300 = vector.shape_cast %299 : vector<18xf32> to vector<18x1xf32>
    %301 = arith.subf %298, %300 : vector<18x1xf32>
    %c0_102 = arith.constant 0 : index
    %c0_103 = arith.constant 0 : index
    %302 = vector.load %arg10[%c0_102, %c0_103] : memref<18x1xf32, #tpu.memory_space<vmem>>, vector<18x1xf32>
    tpu.vector_store %arg10[%c0_102, %c0_103], %301 {strides = array<i32>} : memref<18x1xf32, #tpu.memory_space<vmem>>, vector<18x1xf32>,
    %c0_104 = arith.constant 0 : index
    %c0_105 = arith.constant 0 : index
    %303 = vector.load %arg10[%c0_104, %c0_105] : memref<18x1xf32, #tpu.memory_space<vmem>>, vector<2x1xf32>
    %cst_106 = arith.constant 0.000000e+00 : f32
    %304 = vector.broadcast %cst_106 : f32 to vector<2x1024xf32>
    %cst_107 = arith.constant 0.000000e+00 : f32
    %305 = vector.broadcast %cst_107 : f32 to vector<2x1xf32>
    %c2_108 = arith.constant 2 : index
    %c0_109 = arith.constant 0 : index
    %306 = vector.load %arg10[%c2_108, %c0_109] : memref<18x1xf32, #tpu.memory_space<vmem>>, vector<2x1xf32>
    %307 = arith.subf %303, %306 : vector<2x1xf32>
    %308 = arith.mulf %307, %307 : vector<2x1xf32>
    %309 = arith.addf %305, %308 : vector<2x1xf32>
    %c0_110 = arith.constant 0 : index
    %c0_111 = arith.constant 0 : index
    %310 = vector.load %arg9[%c0_110, %c0_111] : memref<8x1024xf32, #tpu.memory_space<vmem>>, vector<1x1024xf32>
    %311 = vector.broadcast %307 : vector<2x1xf32> to vector<2x1024xf32>
    %312 = vector.broadcast %310 : vector<1x1024xf32> to vector<2x1024xf32>
    %313 = arith.mulf %311, %312 : vector<2x1024xf32>
    %314 = arith.addf %304, %313 : vector<2x1024xf32>
    %c4_112 = arith.constant 4 : index
    %c0_113 = arith.constant 0 : index
    %315 = vector.load %arg10[%c4_112, %c0_113] : memref<18x1xf32, #tpu.memory_space<vmem>>, vector<2x1xf32>
    %316 = arith.subf %303, %315 : vector<2x1xf32>
    %317 = arith.mulf %316, %316 : vector<2x1xf32>
    %318 = arith.addf %309, %317 : vector<2x1xf32>
    %c1_114 = arith.constant 1 : index
    %c0_115 = arith.constant 0 : index
    %319 = vector.load %arg9[%c1_114, %c0_115] : memref<8x1024xf32, #tpu.memory_space<vmem>>, vector<1x1024xf32>
    %320 = vector.broadcast %316 : vector<2x1xf32> to vector<2x1024xf32>
    %321 = vector.broadcast %319 : vector<1x1024xf32> to vector<2x1024xf32>
    %322 = arith.mulf %320, %321 : vector<2x1024xf32>
    %323 = arith.addf %314, %322 : vector<2x1024xf32>
    %c6_116 = arith.constant 6 : index
    %c0_117 = arith.constant 0 : index
    %324 = vector.load %arg10[%c6_116, %c0_117] : memref<18x1xf32, #tpu.memory_space<vmem>>, vector<2x1xf32>
    %325 = arith.subf %303, %324 : vector<2x1xf32>
    %326 = arith.mulf %325, %325 : vector<2x1xf32>
    %327 = arith.addf %318, %326 : vector<2x1xf32>
    %c2_118 = arith.constant 2 : index
    %c0_119 = arith.constant 0 : index
    %328 = vector.load %arg9[%c2_118, %c0_119] : memref<8x1024xf32, #tpu.memory_space<vmem>>, vector<1x1024xf32>
    %329 = vector.broadcast %325 : vector<2x1xf32> to vector<2x1024xf32>
    %330 = vector.broadcast %328 : vector<1x1024xf32> to vector<2x1024xf32>
    %331 = arith.mulf %329, %330 : vector<2x1024xf32>
    %332 = arith.addf %323, %331 : vector<2x1024xf32>
    %c8_120 = arith.constant 8 : index
    %c0_121 = arith.constant 0 : index
    %333 = vector.load %arg10[%c8_120, %c0_121] : memref<18x1xf32, #tpu.memory_space<vmem>>, vector<2x1xf32>
    %334 = arith.subf %303, %333 : vector<2x1xf32>
    %335 = arith.mulf %334, %334 : vector<2x1xf32>
    %336 = arith.addf %327, %335 : vector<2x1xf32>
    %c3_122 = arith.constant 3 : index
    %c0_123 = arith.constant 0 : index
    %337 = vector.load %arg9[%c3_122, %c0_123] : memref<8x1024xf32, #tpu.memory_space<vmem>>, vector<1x1024xf32>
    %338 = vector.broadcast %334 : vector<2x1xf32> to vector<2x1024xf32>
    %339 = vector.broadcast %337 : vector<1x1024xf32> to vector<2x1024xf32>
    %340 = arith.mulf %338, %339 : vector<2x1024xf32>
    %341 = arith.addf %332, %340 : vector<2x1024xf32>
    %c10_124 = arith.constant 10 : index
    %c0_125 = arith.constant 0 : index
    %342 = vector.load %arg10[%c10_124, %c0_125] : memref<18x1xf32, #tpu.memory_space<vmem>>, vector<2x1xf32>
    %343 = arith.subf %303, %342 : vector<2x1xf32>
    %344 = arith.mulf %343, %343 : vector<2x1xf32>
    %345 = arith.addf %336, %344 : vector<2x1xf32>
    %c4_126 = arith.constant 4 : index
    %c0_127 = arith.constant 0 : index
    %346 = vector.load %arg9[%c4_126, %c0_127] : memref<8x1024xf32, #tpu.memory_space<vmem>>, vector<1x1024xf32>
    %347 = vector.broadcast %343 : vector<2x1xf32> to vector<2x1024xf32>
    %348 = vector.broadcast %346 : vector<1x1024xf32> to vector<2x1024xf32>
    %349 = arith.mulf %347, %348 : vector<2x1024xf32>
    %350 = arith.addf %341, %349 : vector<2x1024xf32>
    %c12_128 = arith.constant 12 : index
    %c0_129 = arith.constant 0 : index
    %351 = vector.load %arg10[%c12_128, %c0_129] : memref<18x1xf32, #tpu.memory_space<vmem>>, vector<2x1xf32>
    %352 = arith.subf %303, %351 : vector<2x1xf32>
    %353 = arith.mulf %352, %352 : vector<2x1xf32>
    %354 = arith.addf %345, %353 : vector<2x1xf32>
    %c5_130 = arith.constant 5 : index
    %c0_131 = arith.constant 0 : index
    %355 = vector.load %arg9[%c5_130, %c0_131] : memref<8x1024xf32, #tpu.memory_space<vmem>>, vector<1x1024xf32>
    %356 = vector.broadcast %352 : vector<2x1xf32> to vector<2x1024xf32>
    %357 = vector.broadcast %355 : vector<1x1024xf32> to vector<2x1024xf32>
    %358 = arith.mulf %356, %357 : vector<2x1024xf32>
    %359 = arith.addf %350, %358 : vector<2x1024xf32>
    %c14_132 = arith.constant 14 : index
    %c0_133 = arith.constant 0 : index
    %360 = vector.load %arg10[%c14_132, %c0_133] : memref<18x1xf32, #tpu.memory_space<vmem>>, vector<2x1xf32>
    %361 = arith.subf %303, %360 : vector<2x1xf32>
    %362 = arith.mulf %361, %361 : vector<2x1xf32>
    %363 = arith.addf %354, %362 : vector<2x1xf32>
    %c6_134 = arith.constant 6 : index
    %c0_135 = arith.constant 0 : index
    %364 = vector.load %arg9[%c6_134, %c0_135] : memref<8x1024xf32, #tpu.memory_space<vmem>>, vector<1x1024xf32>
    %365 = vector.broadcast %361 : vector<2x1xf32> to vector<2x1024xf32>
    %366 = vector.broadcast %364 : vector<1x1024xf32> to vector<2x1024xf32>
    %367 = arith.mulf %365, %366 : vector<2x1024xf32>
    %368 = arith.addf %359, %367 : vector<2x1024xf32>
    %c16_136 = arith.constant 16 : index
    %c0_137 = arith.constant 0 : index
    %369 = vector.load %arg10[%c16_136, %c0_137] : memref<18x1xf32, #tpu.memory_space<vmem>>, vector<2x1xf32>
    %370 = arith.subf %303, %369 : vector<2x1xf32>
    %371 = arith.mulf %370, %370 : vector<2x1xf32>
    %372 = arith.addf %363, %371 : vector<2x1xf32>
    %c7_138 = arith.constant 7 : index
    %c0_139 = arith.constant 0 : index
    %373 = vector.load %arg9[%c7_138, %c0_139] : memref<8x1024xf32, #tpu.memory_space<vmem>>, vector<1x1024xf32>
    %374 = vector.broadcast %370 : vector<2x1xf32> to vector<2x1024xf32>
    %375 = vector.broadcast %373 : vector<1x1024xf32> to vector<2x1024xf32>
    %376 = arith.mulf %374, %375 : vector<2x1024xf32>
    %377 = arith.addf %368, %376 : vector<2x1024xf32>
    %378 = math.sqrt %372 : vector<2x1xf32>
    %cst_140 = arith.constant 9.99999968E-21 : f32
    %379 = vector.broadcast %cst_140 : f32 to vector<2x1xf32>
    %380 = arith.addf %378, %379 : vector<2x1xf32>
    %cst_141 = arith.constant 5.000000e-01 : f32
    %381 = vector.broadcast %cst_141 : f32 to vector<2x1xf32>
    %382 = arith.mulf %380, %381 : vector<2x1xf32>
    %383 = tpu.reciprocal %382 {approx = true} : vector<2x1xf32> -> vector<2x1xf32>
    %384 = vector.broadcast %383 : vector<2x1xf32> to vector<2x1024xf32>
    %385 = arith.mulf %377, %384 : vector<2x1024xf32>
    %c0_142 = arith.constant 0 : index
    %c0_143 = arith.constant 0 : index
    %386 = vector.load %arg7[%c0_142, %c0_143] : memref<2x1024xf32, #tpu.memory_space<vmem>>, vector<2x1024xf32>
    tpu.vector_store %arg7[%c0_142, %c0_143], %385 {strides = array<i32>} : memref<2x1024xf32, #tpu.memory_space<vmem>>, vector<2x1024xf32>,
    return
  }
}

</mosaic_0001>

<bundles_post_ra>
// kernel: tpu_custom_call.1
= control target key start
LH: loop header
LB: loop body
LE: loop exit
PB: predicated region body
PF: predicated region fallthrough
CT: control target
= control target key end

     0   :  { %12 = vsyncpa [#allocation6], 0  ;;  %s6803_s0 = inlined_call_operand.hbm [shape: f32[2,1024], index: 0, kind: input, shape index: {}]   ;;  %s6804_s1 = inlined_call_operand.hbm [shape: f32[2,1024], index: 1, kind: input, shape index: {}]   ;;  %s6805_s2 = inlined_call_operand.hbm [shape: f32[8,1024], index: 2, kind: input, shape index: {}]   ;;  %s6806_s3 = inlined_call_operand.hbm [shape: f32[1024,128], index: 3, kind: input, shape index: {}]   ;;  %s6807_s4 = inlined_call_operand.vmem [shape: f32[1,128], index: 4, kind: input, shape index: {}]   ;;  %s6808_s5 = inlined_call_operand.hbm [shape: f32[128,128], index: 5, kind: input, shape index: {}]   ;;  %s6809_s6 = inlined_call_operand.vmem [shape: f32[1,128], index: 6, kind: input, shape index: {}]   ;;  %s6810_s7 = inlined_call_operand.hbm [shape: f32[2,1024], index: 7, kind: output, shape index: {}]  }
   0x1   :  { %13 = vsyncpa [#allocation9], 0 }
   0x2   :  { %14 = vsyncpa [#allocation12], 0 }
   0x3   :  { %15 = vsyncpa [#allocation7], 0  ;;  %s5246_s24 = smov [#allocation8]   ;;  %s5247_s26 = smov [#allocation11]  }
   0x4   :  { %s32_s25 = sshll.u32 %s5246_s24, 4  ;;  %s51_s27 = sshll.u32 %s5247_s26, 4  ;;  %s33_s25 = int_to_ptr.vmem [resolvable:$true] %s32_s25  ;;  %s52_s27 = int_to_ptr.vmem [resolvable:$true] %s51_s27 }
   0x5   :  { %s5126_s28 = scalar_lea.vmem %s33_s25, 256  ;;  %p5131_p1 = scmp.lt.s32.totalorder %s33_s25, %s33_s25 }
   0x6   :  { %p5127_p0 = scmp.ne.s32.totalorder %s33_s25, %s5126_s28  ;;  %p5132_p2 = scmp.lt.s32.totalorder %s5126_s28, %s5126_s28 }
   0x8   :  { %p5133_p3 = por %p5132_p2, %p5131_p1 }
   0xa   :  { %p5134_p4 = pnand %p5133_p3, %p5127_p0 }
   0xc   :  { %5137 = shalt.err (!%p5134_p4)
}
   0xd   :  { %35 = dma.hbm_to_vmem [thread:$0]  %s6804_s1, 256, %s33_s25, [#allocation9]  }
   0xe   :  { %s5146_s8 = scalar_lea.vmem %s52_s27, 16384  ;;  %p5151_p6 = scmp.lt.s32.totalorder %s52_s27, %s52_s27 }
   0xf   :  { %p5147_p5 = scmp.ne.s32.totalorder %s52_s27, %s5146_s8  ;;  %p5152_p7 = scmp.lt.s32.totalorder %s5146_s8, %s5146_s8 }
  0x11   :  { %p5153_p8 = por %p5152_p7, %p5151_p6 }
  0x13   :  { %p5154_p9 = pnand %p5153_p8, %p5147_p5 }
  0x15   :  { %5157 = shalt.err (!%p5154_p9)
}
  0x16   :  { %s5248_s9 = smov 128   ;;  %s5249_s10 = smov 8  }
  0x17   :  { %57 = dma.hbm_to_vmem [thread:$0]  %s6806_s3, 16384, %s52_s27, [#allocation12], %s5248_s9, %s5248_s9, %s5249_s10  }
  0x18   :  { %s5250_s13 = smov [#allocation5]   ;;  %s5251_s15 = smov [#allocation10]  }
  0x19   :  { %s22_s14 = sshll.u32 %s5250_s13, 4  ;;  %s42_s1 = sshll.u32 %s5251_s15, 4  ;;  %s23_s14 = int_to_ptr.vmem [resolvable:$true] %s22_s14  ;;  %s43_s1 = int_to_ptr.vmem [resolvable:$true] %s42_s1 }
  0x1a   :  { %s5166_s16 = scalar_lea.vmem %s23_s14, 256  ;;  %p5171_p11 = scmp.lt.s32.totalorder %s23_s14, %s23_s14 }
  0x1b   :  { %p5167_p10 = scmp.ne.s32.totalorder %s23_s14, %s5166_s16  ;;  %p5172_p12 = scmp.lt.s32.totalorder %s5166_s16, %s5166_s16 }
  0x1d   :  { %p5173_p13 = por %p5172_p12, %p5171_p11 }
  0x1f   :  { %p5174_p0 = pnand %p5173_p13, %p5167_p10 }
  0x21   :  { %5177 = shalt.err (!%p5174_p0)
}
  0x22   :  { %25 = dma.hbm_to_vmem [thread:$0]  %s6803_s0, 256, %s23_s14, [#allocation6]  }
  0x23   :  { %s5186_s19 = scalar_lea.vmem %s43_s1, 1024  ;;  %p5191_p2 = scmp.lt.s32.totalorder %s43_s1, %s43_s1 }
  0x24   :  { %p5187_p1 = scmp.ne.s32.totalorder %s43_s1, %s5186_s19  ;;  %p5192_p3 = scmp.lt.s32.totalorder %s5186_s19, %s5186_s19 }
  0x26   :  { %p5193_p4 = por %p5192_p3, %p5191_p2 }
  0x28   :  { %p5194_p5 = pnand %p5193_p4, %p5187_p1 }
  0x2a   :  { %5197 = shalt.err (!%p5194_p5)
}
  0x2b   :  { %45 = dma.hbm_to_vmem [thread:$0]  %s6805_s2, 1024, %s43_s1, [#allocation9]  }
  0x2c   :  { %s5252_s21 = smov [#allocation13]  }
  0x2d   :  { %s65_s22 = sshll.u32 %s5252_s21, 4  ;;  %s66_s22 = int_to_ptr.vmem [resolvable:$true] %s65_s22 }
  0x2e   :  { %s5206_s23 = scalar_lea.vmem %s66_s22, 2048  ;;  %p5211_p7 = scmp.lt.s32.totalorder %s66_s22, %s66_s22 }
  0x2f   :  { %p5207_p6 = scmp.ne.s32.totalorder %s66_s22, %s5206_s23  ;;  %p5212_p8 = scmp.lt.s32.totalorder %s5206_s23, %s5206_s23 }
  0x31   :  { %p5213_p9 = por %p5212_p8, %p5211_p7 }
  0x33   :  { %p5214_p10 = pnand %p5213_p9, %p5207_p6 }
  0x35   :  { %5217 = shalt.err (!%p5214_p10)
}
  0x36   :  { %71 = dma.hbm_to_vmem [thread:$0]  %s6808_s5, 2048, %s66_s22, [#allocation12], %s5248_s9, %s5248_s9, %s5249_s10  }
  0x37   :  { %5238 = dma.done.wait [#allocation6], 256  }
  0x38   :  { %5239 = vsyncadd [#allocation6], 4294967040 }
  0x39   :  { %5240 = dma.done.wait [#allocation9], 1280  }
  0x3a   :  { %5241 = vsyncadd [#allocation9], 4294966016 }
  0x3b   :  { %5242 = dma.done.wait [#allocation12], 18432  }
  0x3c   :  { %5243 = vsyncadd [#allocation12], 4294948864  ;;  %v89_v0 = vlaneseq  ;;  %v91_v6 = vld [vmem:[#allocation10] ss:$8 sm:$0xf]  ;;  %vm202_vm0 = vcmask 1040384  }
  0x3d   :  { %v92_v7 = vld [vmem:[#allocation10] ss:$8 sm:$0xf0]  ;;  %vm5256_vm9 = vmmov 0   ;;  %vm4106_vm13 = vcmask 1041408   ;;  %vm4113_vm14 = vcmask 7168  }
  0x3e   :  { %v5321_v1 = vshrl.u32 %v89_v0, 7  ;;  %v93_v8 = vor.u32 %v92_v7, %v91_v6  ;;  %vm4116_vm15 = vcmask 1024  }
  0x40   :  { %v5324_v2 = vsub.s32 0, %v5321_v1  ;;  %v5327_v3 = vsub.s32 1, %v5321_v1  ;;  %v5330_v4 = vsub.s32 2, %v5321_v1  ;;  %v5333_v5 = vsub.s32 3, %v5321_v1 }
  0x41   :  { %v5336_v9 = vsub.s32 4, %v5321_v1  ;;  %v5339_v10 = vsub.s32 5, %v5321_v1  ;;  %v5346_v15 = vsub.s32 6, %v5321_v1  ;;  %v5351_v21 = vsub.s32 7, %v5321_v1 }
  0x42   :  { %v98_v11 = vrot.slane %v93_v8, %v5324_v2  ;;  %v102_v12 = vrot.slane %v93_v8, %v5327_v3  ;;  %v106_v13 = vrot.slane %v93_v8, %v5330_v4  ;;  %v110_v14 = vrot.slane %v93_v8, %v5333_v5 }
  0x43   :  { %v114_v16 = vrot.slane %v93_v8, %v5336_v9  ;;  %v118_v20 = vrot.slane %v93_v8, %v5339_v10  ;;  %v122_v24 = vrot.slane %v93_v8, %v5346_v15  ;;  %v126_v27 = vrot.slane %v93_v8, %v5351_v21 }
  0x44   :  { %v135_v17 = vmul.f32 0.0, %v98_v11  ;;  %v136_v18 = vmul.f32 0.0, %v102_v12  ;;  %v137_v19 = vmul.f32 0.0, %v106_v13  ;;  %v138_v22 = vmul.f32 0.0, %v110_v14 }
  0x45   :  { %v139_v25 = vmul.f32 0.0, %v114_v16  ;;  %v140_v28 = vmul.f32 0.0, %v118_v20  ;;  %v141_v30 = vmul.f32 0.0, %v122_v24  ;;  %v142_v32 = vmul.f32 0.0, %v126_v27 }
  0x46   :  { %v143_v23 = vadd.f32 %v136_v18, %v135_v17  ;;  %v285_v24 = vld [vmem:[#allocation10 + $0x1] ss:$8 sm:$0xf]  ;;  %vm232_vm1 = vcmp.eq.s32.totalorder %v5321_v1, 0  ;;  %vm532_vm2 = vcmp.eq.s32.totalorder %v5321_v1, 1  ;;  %vm832_vm3 = vcmp.eq.s32.totalorder %v5321_v1, 2 }
  0x47   :  { %vm1132_vm4 = vcmp.eq.s32.totalorder %v5321_v1, 3  ;;  %vm1432_vm5 = vcmp.eq.s32.totalorder %v5321_v1, 4  ;;  %vm1732_vm6 = vcmp.eq.s32.totalorder %v5321_v1, 5  ;;  %vm2032_vm7 = vcmp.eq.s32.totalorder %v5321_v1, 6 }
  0x48   :  { %v144_v26 = vadd.f32 %v143_v23, %v137_v19  ;;  %vm2332_vm8 = vcmp.eq.s32.totalorder %v5321_v1, 7 }
  0x4a   :  { %v145_v29 = vadd.f32 %v144_v26, %v138_v22 }
  0x4c   :  { %v146_v31 = vadd.f32 %v145_v29, %v139_v25  ;;  %v286_v25 = vld [vmem:[#allocation10 + $0x1] ss:$8 sm:$0xf0] }
  0x4d   :  { %v5371_v26 = vor.u32 %v286_v25, %v285_v24 }
  0x4e   :  { %v147_v33 = vadd.f32 %v146_v31, %v140_v28 }
  0x4f   :  { %v292_v29 = vrot.slane %v5371_v26, %v5324_v2 }
  0x50   :  { %v148_v34 = vadd.f32 %v147_v33, %v141_v30  ;;  %v296_v33 = vrot.slane %v5371_v26, %v5327_v3 }
  0x52   :  { %v149_v35 = vadd.f32 %v148_v34, %v142_v32 }
  0x54   :  { %150 = vadd.xlane.f32.xlu0 %v149_v35 }
  0xdd   :  { %v151_v36 = vpop.xlane.xlu0 %150 }
  0xde   :  { %v152_v37 = vmul.f32 0.0, %v151_v36 }
  0xe0   :  { %v153_v38 = vrot.slane %v152_v37, 4 }
  0xe2   :  { %v154_v39 = vadd.f32 %v153_v38, %v152_v37  ;;  %v300_v37 = vrot.slane %v5371_v26, %v5330_v4 }
  0xe4   :  { %v155_v40 = vrot.slane %v154_v39, 2 }
  0xe6   :  { %v156_v41 = vadd.f32 %v155_v40, %v154_v39  ;;  %v304_v40 = vrot.slane %v5371_v26, %v5333_v5 }
  0xe8   :  { %v157_v42 = vrot.slane %v156_v41, 1 }
  0xea   :  { %v158_v43 = vadd.f32 %v157_v42, %v156_v41 }
  0xec   :  { %v159_v44 = vsub.f32 %v93_v8, %v158_v43 }
  0xee   :  { %v160_v45 = vmul.f32 %v159_v44, %v159_v44 }
  0xf0   :  { %v165_v46 = vrot.slane %v160_v45, %v5324_v2  ;;  %v169_v47 = vrot.slane %v160_v45, %v5327_v3  ;;  %v173_v48 = vrot.slane %v160_v45, %v5330_v4  ;;  %v177_v49 = vrot.slane %v160_v45, %v5333_v5 }
  0xf1   :  { %v181_v53 = vrot.slane %v160_v45, %v5336_v9  ;;  %v185_v56 = vrot.slane %v160_v45, %v5339_v10  ;;  %v189_v59 = vrot.slane %v160_v45, %v5346_v15  ;;  %v193_v62 = vrot.slane %v160_v45, %v5351_v21 }
  0xf2   :  { %v203_v50 = vsel %vm202_vm0, %v165_v46, 0.0  ;;  %v204_v51 = vsel %vm202_vm0, %v169_v47, 0.0  ;;  %v206_v54 = vsel %vm202_vm0, %v173_v48, 0.0  ;;  %v208_v57 = vsel %vm202_vm0, %v177_v49, 0.0 }
  0xf3   :  { %v205_v52 = vadd.f32 %v204_v51, %v203_v50  ;;  %v210_v60 = vsel %vm202_vm0, %v181_v53, 0.0  ;;  %v212_v63 = vsel %vm202_vm0, %v185_v56, 0.0  ;;  %v214_v7 = vsel %vm202_vm0, %v189_v59, 0.0 }
  0xf4   :  { %v216_v11 = vsel %vm202_vm0, %v193_v62, 0.0  ;;  %v308_v45 = vrot.slane %v5371_v26, %v5336_v9  ;;  %v312_v50 = vrot.slane %v5371_v26, %v5339_v10  ;;  %v320_v59 = vrot.slane %v5371_v26, %v5351_v21 }
  0xf5   :  { %v207_v55 = vadd.f32 %v206_v54, %v205_v52 }
  0xf7   :  { %v209_v58 = vadd.f32 %v208_v57, %v207_v55  ;;  %v316_v55 = vrot.slane %v5371_v26, %v5346_v15 }
  0xf9   :  { %v211_v61 = vadd.f32 %v210_v60, %v209_v58 }
  0xfb   :  { %v213_v6 = vadd.f32 %v212_v63, %v211_v61 }
  0xfd   :  { %v215_v8 = vadd.f32 %v214_v7, %v213_v6 }
  0xff   :  { %v217_v12 = vadd.f32 %v216_v11, %v215_v8 }
 0x101   :  { %218 = vadd.xlane.f32.xlu0 %v217_v12  ;;  %v5253_v12 = vmov 1966171168  }
 0x18a   :  { %v219_v13 = vpop.xlane.xlu0 %218 }
 0x18b   :  { %v220_v14 = vrot.slane %v219_v13, 4 }
 0x18d   :  { %v221_v16 = vadd.f32 %v220_v14, %v219_v13  ;;  %v415_v13 = vunpack.c.l.s4 %v5253_v12 }
 0x18f   :  { %v222_v17 = vrot.slane %v221_v16, 2  ;;  %v416_v14 = vunpack.c.0.s8 %v415_v13 }
 0x191   :  { %v223_v18 = vadd.f32 %v222_v17, %v221_v16  ;;  %v5439_v16 = vsub.s32 %v416_v14, %v5321_v1 }
 0x193   :  { %v224_v19 = vrot.slane %v223_v18, 1 }
 0x195   :  { %v225_v20 = vadd.f32 %v224_v19, %v223_v18 }
 0x197   :  { %5051 = vpush %v225_v20 }
 0x1c8   :  { %s5052_s2 = spop %5051 }
 0x1c9   :  { %v227_v22 = vstv %s5052_s2 }
 0x1ca   :  { %5098 = vrsqrt.f32 %v227_v22 }
 0x1d7   :  { %v5099_v23 = vpop.eup %5098 }
 0x1d8   :  { %5053 = vpush %v5099_v23 }
 0x209   :  { %s5054_s5 = spop %5053 }
 0x20a   :  { %v230_v27 = vstv %s5054_s5 }
 0x20b   :  { %v231_v28 = vmul.f32 %v230_v27, %v159_v44 }
 0x20d   :  { %v239_v30 = vrot.slane %v231_v28, %v5324_v2  ;;  %v243_v31 = vrot.slane %v231_v28, %v5327_v3  ;;  %v247_v32 = vrot.slane %v231_v28, %v5330_v4  ;;  %v251_v34 = vrot.slane %v231_v28, %v5333_v5 }
 0x20e   :  { %v255_v38 = vrot.slane %v231_v28, %v5336_v9  ;;  %v259_v43 = vrot.slane %v231_v28, %v5339_v10  ;;  %v263_v48 = vrot.slane %v231_v28, %v5346_v15  ;;  %v267_v53 = vrot.slane %v231_v28, %v5351_v21 }
 0x20f   :  { %v5384_v35 = vsel %vm232_vm1, %v239_v30, 0.0  ;;  %v5388_v36 = vsel %vm232_vm1, %v243_v31, 0.0  ;;  %v5395_v39 = vsel %vm232_vm1, %v247_v32, 0.0  ;;  %v5404_v44 = vsel %vm232_vm1, %v251_v34, 0.0 }
 0x210   :  { %v329_v41 = vmul.f32 %v292_v29, %v5384_v35  ;;  %v330_v42 = vmul.f32 %v296_v33, %v5388_v36  ;;  %v331_v46 = vmul.f32 %v300_v37, %v5395_v39  ;;  %v5412_v49 = vsel %vm232_vm1, %v255_v38, 0.0 }
 0x211   :  { %v332_v51 = vmul.f32 %v304_v40, %v5404_v44  ;;  %v5420_v54 = vsel %vm232_vm1, %v259_v43, 0.0  ;;  %v333_v56 = vmul.f32 %v308_v45, %v5412_v49  ;;  %v5427_v58 = vsel %vm232_vm1, %v263_v48, 0.0 }
 0x212   :  { %v337_v47 = vadd.f32 %v330_v42, %v329_v41  ;;  %v334_v60 = vmul.f32 %v312_v50, %v5420_v54  ;;  %v5434_v62 = vsel %vm232_vm1, %v267_v53, 0.0  ;;  %v335_v63 = vmul.f32 %v316_v55, %v5427_v58 }
 0x213   :  { %v336_v7 = vmul.f32 %v320_v59, %v5434_v62 }
 0x214   :  { %v338_v52 = vadd.f32 %v337_v47, %v331_v46 }
 0x216   :  { %v339_v57 = vadd.f32 %v338_v52, %v332_v51 }
 0x218   :  { %v340_v61 = vadd.f32 %v339_v57, %v333_v56 }
 0x21a   :  { %v341_v6 = vadd.f32 %v340_v61, %v334_v60 }
 0x21c   :  { %v342_v8 = vadd.f32 %v341_v6, %v335_v63 }
 0x21e   :  { %v343_v11 = vadd.f32 %v342_v8, %v336_v7 }
 0x220   :  { %344 = vadd.xlane.f32.xlu1 %v343_v11 }
 0x2a9   :  { %v345_v17 = vpop.xlane.xlu1 %344 }
 0x2aa   :  { %v346_v18 = vmul.f32 %v345_v17, %v5384_v35  ;;  %v347_v19 = vmul.f32 %v345_v17, %v5388_v36  ;;  %v348_v20 = vmul.f32 %v345_v17, %v5395_v39  ;;  %v349_v22 = vmul.f32 %v345_v17, %v5404_v44 }
 0x2ab   :  { %v350_v23 = vmul.f32 %v345_v17, %v5412_v49  ;;  %v351_v24 = vmul.f32 %v345_v17, %v5420_v54  ;;  %v352_v25 = vmul.f32 %v345_v17, %v5427_v58  ;;  %v353_v27 = vmul.f32 %v345_v17, %v5434_v62 }
 0x2ac   :  { %v354_v28 = vrot.slane %v346_v18, 4  ;;  %v360_v29 = vrot.slane %v347_v19, 4  ;;  %v366_v30 = vrot.slane %v348_v20, 4  ;;  %v372_v31 = vrot.slane %v349_v22, 4 }
 0x2ad   :  { %v378_v32 = vrot.slane %v350_v23, 4  ;;  %v384_v33 = vrot.slane %v351_v24, 4  ;;  %v390_v34 = vrot.slane %v352_v25, 4  ;;  %v396_v37 = vrot.slane %v353_v27, 4 }
 0x2ae   :  { %v355_v38 = vadd.f32 %v354_v28, %v346_v18  ;;  %v361_v40 = vadd.f32 %v360_v29, %v347_v19  ;;  %v367_v41 = vadd.f32 %v366_v30, %v348_v20  ;;  %v373_v42 = vadd.f32 %v372_v31, %v349_v22 }
 0x2af   :  { %v379_v43 = vadd.f32 %v378_v32, %v350_v23  ;;  %v385_v45 = vadd.f32 %v384_v33, %v351_v24  ;;  %v391_v46 = vadd.f32 %v390_v34, %v352_v25  ;;  %v397_v47 = vadd.f32 %v396_v37, %v353_v27 }
 0x2b0   :  { %v356_v48 = vrot.slane %v355_v38, 2  ;;  %v362_v50 = vrot.slane %v361_v40, 2  ;;  %v368_v51 = vrot.slane %v367_v41, 2  ;;  %v374_v52 = vrot.slane %v373_v42, 2 }
 0x2b1   :  { %v380_v53 = vrot.slane %v379_v43, 2  ;;  %v386_v55 = vrot.slane %v385_v45, 2  ;;  %v392_v56 = vrot.slane %v391_v46, 2  ;;  %v398_v57 = vrot.slane %v397_v47, 2 }
 0x2b2   :  { %v357_v59 = vadd.f32 %v356_v48, %v355_v38  ;;  %v363_v60 = vadd.f32 %v362_v50, %v361_v40  ;;  %v369_v61 = vadd.f32 %v368_v51, %v367_v41  ;;  %v375_v63 = vadd.f32 %v374_v52, %v373_v42 }
 0x2b3   :  { %v381_v6 = vadd.f32 %v380_v53, %v379_v43  ;;  %v387_v7 = vadd.f32 %v386_v55, %v385_v45  ;;  %v393_v8 = vadd.f32 %v392_v56, %v391_v46  ;;  %v399_v11 = vadd.f32 %v398_v57, %v397_v47 }
 0x2b4   :  { %v358_v12 = vrot.slane %v357_v59, 1  ;;  %v364_v13 = vrot.slane %v363_v60, 1  ;;  %v370_v14 = vrot.slane %v369_v61, 1  ;;  %v376_v17 = vrot.slane %v375_v63, 1 }
 0x2b5   :  { %v382_v18 = vrot.slane %v381_v6, 1  ;;  %v388_v19 = vrot.slane %v387_v7, 1  ;;  %v394_v20 = vrot.slane %v393_v8, 1  ;;  %v400_v22 = vrot.slane %v399_v11, 1 }
 0x2b6   :  { %v359_v23 = vadd.f32 %v358_v12, %v357_v59  ;;  %v365_v24 = vadd.f32 %v364_v13, %v363_v60  ;;  %v371_v25 = vadd.f32 %v370_v14, %v369_v61  ;;  %v377_v27 = vadd.f32 %v376_v17, %v375_v63 }
 0x2b7   :  { %v383_v28 = vadd.f32 %v382_v18, %v381_v6  ;;  %v389_v29 = vadd.f32 %v388_v19, %v387_v7  ;;  %v395_v30 = vadd.f32 %v394_v20, %v393_v8  ;;  %v401_v31 = vadd.f32 %v400_v22, %v399_v11 }
 0x2b8   :  { %v410_v32 = vcombine.low %v359_v23, %v365_v24  ;;  %v411_v33 = vcombine.low %v371_v25, %v377_v27 }
 0x2b9   :  { %v412_v34 = vcombine.low %v383_v28, %v389_v29  ;;  %v413_v37 = vcombine.low %v395_v30, %v401_v31 }
 0x2ba   :  { %v420_v38 = vrot.slane %v410_v32, %v5439_v16  ;;  %v427_v40 = vrot.slane %v411_v33, %v5439_v16 }
 0x2bb   :  { %v434_v41 = vrot.slane %v412_v34, %v5439_v16  ;;  %v441_v42 = vrot.slane %v413_v37, %v5439_v16  ;;  %v585_v34 = vld [vmem:[#allocation10 + $0x2] ss:$8 sm:$0xf] }
 0x2bc   :  { %v442_v43 = vcombine.low %v420_v38, %v427_v40  ;;  %v586_v37 = vld [vmem:[#allocation10 + $0x2] ss:$8 sm:$0xf0] }
 0x2bd   :  { %v443_v45 = vcombine.low %v434_v41, %v441_v42  ;;  %v5472_v38 = vor.u32 %v586_v37, %v585_v34 }
 0x2be   :  { %v450_v46 = vrot.slane %v442_v43, %v5439_v16 }
 0x2bf   :  { %v457_v47 = vrot.slane %v443_v45, %v5439_v16  ;;  %v592_v42 = vrot.slane %v5472_v38, %v5324_v2 }
 0x2c1   :  { %v458_v48 = vcombine.low %v450_v46, %v457_v47  ;;  %v596_v47 = vrot.slane %v5472_v38, %v5327_v3 }
 0x2c3   :  { %v460_v50 = vsub.f32 %v5371_v26, %v458_v48 }
 0x2c5   :  { %v461_v51 = vmul.f32 %v460_v50, %v460_v50 }
 0x2c7   :  { %v466_v52 = vrot.slane %v461_v51, %v5324_v2  ;;  %v470_v53 = vrot.slane %v461_v51, %v5327_v3  ;;  %v474_v55 = vrot.slane %v461_v51, %v5330_v4  ;;  %v478_v56 = vrot.slane %v461_v51, %v5333_v5 }
 0x2c8   :  { %v482_v61 = vrot.slane %v461_v51, %v5336_v9  ;;  %v486_v26 = vrot.slane %v461_v51, %v5339_v10  ;;  %v490_v11 = vrot.slane %v461_v51, %v5346_v15  ;;  %v494_v14 = vrot.slane %v461_v51, %v5351_v21 }
 0x2c9   :  { %v503_v57 = vsel %vm202_vm0, %v466_v52, 0.0  ;;  %v504_v59 = vsel %vm202_vm0, %v470_v53, 0.0  ;;  %v506_v63 = vsel %vm202_vm0, %v474_v55, 0.0  ;;  %v508_v7 = vsel %vm202_vm0, %v478_v56, 0.0 }
 0x2ca   :  { %v505_v60 = vadd.f32 %v504_v59, %v503_v57  ;;  %v510_v12 = vsel %vm202_vm0, %v482_v61, 0.0  ;;  %v512_v17 = vsel %vm202_vm0, %v486_v26, 0.0  ;;  %v514_v19 = vsel %vm202_vm0, %v490_v11, 0.0 }
 0x2cb   :  { %v516_v22 = vsel %vm202_vm0, %v494_v14, 0.0  ;;  %v600_v52 = vrot.slane %v5472_v38, %v5330_v4  ;;  %v604_v56 = vrot.slane %v5472_v38, %v5333_v5  ;;  %v612_v26 = vrot.slane %v5472_v38, %v5339_v10 }
 0x2cc   :  { %v507_v6 = vadd.f32 %v506_v63, %v505_v60  ;;  %v608_v60 = vrot.slane %v5472_v38, %v5336_v9 }
 0x2ce   :  { %v509_v8 = vadd.f32 %v508_v7, %v507_v6 }
 0x2d0   :  { %v511_v13 = vadd.f32 %v510_v12, %v509_v8  ;;  %v616_v12 = vrot.slane %v5472_v38, %v5346_v15 }
 0x2d2   :  { %v513_v18 = vadd.f32 %v512_v17, %v511_v13  ;;  %v620_v17 = vrot.slane %v5472_v38, %v5351_v21 }
 0x2d4   :  { %v515_v20 = vadd.f32 %v514_v19, %v513_v18 }
 0x2d6   :  { %v517_v23 = vadd.f32 %v516_v22, %v515_v20 }
 0x2d8   :  { %518 = vadd.xlane.f32.xlu1 %v517_v23 }
 0x361   :  { %v519_v24 = vpop.xlane.xlu1 %518 }
 0x362   :  { %v520_v25 = vrot.slane %v519_v24, 4 }
 0x364   :  { %v521_v27 = vadd.f32 %v520_v25, %v519_v24 }
 0x366   :  { %v522_v28 = vrot.slane %v521_v27, 2 }
 0x368   :  { %v523_v29 = vadd.f32 %v522_v28, %v521_v27 }
 0x36a   :  { %v524_v30 = vrot.slane %v523_v29, 1 }
 0x36c   :  { %v525_v31 = vadd.f32 %v524_v30, %v523_v29 }
 0x36e   :  { %5055 = vpush %v525_v31 }
 0x39f   :  { %s5056_s25 = spop %5055 }
 0x3a0   :  { %v527_v32 = vstv %s5056_s25 }
 0x3a1   :  { %5100 = vrsqrt.f32 %v527_v32 }
 0x3ae   :  { %v5101_v33 = vpop.eup %5100 }
 0x3af   :  { %5057 = vpush %v5101_v33 }
 0x3e0   :  { %s5058_s26 = spop %5057 }
 0x3e1   :  { %v530_v40 = vstv %s5058_s26 }
 0x3e2   :  { %v531_v41 = vmul.f32 %v530_v40, %v460_v50 }
 0x3e4   :  { %v539_v43 = vrot.slane %v531_v41, %v5324_v2  ;;  %v543_v45 = vrot.slane %v531_v41, %v5327_v3  ;;  %v547_v46 = vrot.slane %v531_v41, %v5330_v4  ;;  %v551_v48 = vrot.slane %v531_v41, %v5333_v5 }
 0x3e5   :  { %v555_v53 = vrot.slane %v531_v41, %v5336_v9  ;;  %v563_v63 = vrot.slane %v531_v41, %v5346_v15  ;;  %v567_v8 = vrot.slane %v531_v41, %v5351_v21 }
 0x3e6   :  { %v5486_v50 = vsel %vm532_vm2, %v539_v43, %v5384_v35  ;;  %v5491_v51 = vsel %vm532_vm2, %v543_v45, %v5388_v36  ;;  %v5499_v55 = vsel %vm532_vm2, %v547_v46, %v5395_v39  ;;  %v559_v36 = vrot.slane %v531_v41, %v5339_v10 }
 0x3e7   :  { %v629_v35 = vmul.f32 %v592_v42, %v5486_v50  ;;  %v630_v57 = vmul.f32 %v596_v47, %v5491_v51  ;;  %v5509_v59 = vsel %vm532_vm2, %v551_v48, %v5404_v44  ;;  %v631_v39 = vmul.f32 %v600_v52, %v5499_v55 }
 0x3e8   :  { %v5518_v6 = vsel %vm532_vm2, %v555_v53, %v5412_v49  ;;  %v632_v7 = vmul.f32 %v604_v56, %v5509_v59  ;;  %v5527_v11 = vsel %vm532_vm2, %v559_v36, %v5420_v54  ;;  %v5535_v14 = vsel %vm532_vm2, %v563_v63, %v5427_v58 }
 0x3e9   :  { %v637_v61 = vadd.f32 %v630_v57, %v629_v35  ;;  %v633_v13 = vmul.f32 %v608_v60, %v5518_v6  ;;  %v634_v18 = vmul.f32 %v612_v26, %v5527_v11  ;;  %v5543_v54 = vsel %vm532_vm2, %v567_v8, %v5434_v62 }
 0x3ea   :  { %v635_v20 = vmul.f32 %v616_v12, %v5535_v14  ;;  %v636_v23 = vmul.f32 %v620_v17, %v5543_v54 }
 0x3eb   :  { %v638_v44 = vadd.f32 %v637_v61, %v631_v39 }
 0x3ed   :  { %v639_v49 = vadd.f32 %v638_v44, %v632_v7 }
 0x3ef   :  { %v640_v19 = vadd.f32 %v639_v49, %v633_v13 }
 0x3f1   :  { %v641_v22 = vadd.f32 %v640_v19, %v634_v18 }
 0x3f3   :  { %v642_v24 = vadd.f32 %v641_v22, %v635_v20 }
 0x3f5   :  { %v643_v25 = vadd.f32 %v642_v24, %v636_v23 }
 0x3f7   :  { %644 = vadd.xlane.f32.xlu0 %v643_v25 }
 0x480   :  { %v645_v58 = vpop.xlane.xlu0 %644 }
 0x481   :  { %v646_v27 = vmul.f32 %v645_v58, %v5486_v50  ;;  %v647_v28 = vmul.f32 %v645_v58, %v5491_v51  ;;  %v648_v29 = vmul.f32 %v645_v58, %v5499_v55  ;;  %v649_v30 = vmul.f32 %v645_v58, %v5509_v59 }
 0x482   :  { %v650_v62 = vmul.f32 %v645_v58, %v5518_v6  ;;  %v651_v31 = vmul.f32 %v645_v58, %v5527_v11  ;;  %v652_v32 = vmul.f32 %v645_v58, %v5535_v14  ;;  %v653_v33 = vmul.f32 %v645_v58, %v5543_v54 }
 0x483   :  { %v654_v34 = vrot.slane %v646_v27, 4  ;;  %v660_v37 = vrot.slane %v647_v28, 4  ;;  %v666_v40 = vrot.slane %v648_v29, 4  ;;  %v672_v41 = vrot.slane %v649_v30, 4 }
 0x484   :  { %v678_v42 = vrot.slane %v650_v62, 4  ;;  %v684_v43 = vrot.slane %v651_v31, 4  ;;  %v690_v45 = vrot.slane %v652_v32, 4  ;;  %v696_v46 = vrot.slane %v653_v33, 4 }
 0x485   :  { %v655_v47 = vadd.f32 %v654_v34, %v646_v27  ;;  %v661_v48 = vadd.f32 %v660_v37, %v647_v28  ;;  %v667_v52 = vadd.f32 %v666_v40, %v648_v29  ;;  %v673_v53 = vadd.f32 %v672_v41, %v649_v30 }
 0x486   :  { %v679_v56 = vadd.f32 %v678_v42, %v650_v62  ;;  %v685_v35 = vadd.f32 %v684_v43, %v651_v31  ;;  %v691_v57 = vadd.f32 %v690_v45, %v652_v32  ;;  %v697_v36 = vadd.f32 %v696_v46, %v653_v33 }
 0x487   :  { %v656_v60 = vrot.slane %v655_v47, 2  ;;  %v662_v39 = vrot.slane %v661_v48, 2  ;;  %v668_v61 = vrot.slane %v667_v52, 2  ;;  %v674_v63 = vrot.slane %v673_v53, 2 }
 0x488   :  { %v680_v26 = vrot.slane %v679_v56, 2  ;;  %v686_v7 = vrot.slane %v685_v35, 2  ;;  %v692_v44 = vrot.slane %v691_v57, 2  ;;  %v698_v8 = vrot.slane %v697_v36, 2 }
 0x489   :  { %v657_v12 = vadd.f32 %v656_v60, %v655_v47  ;;  %v663_v13 = vadd.f32 %v662_v39, %v661_v48  ;;  %v669_v49 = vadd.f32 %v668_v61, %v667_v52  ;;  %v675_v17 = vadd.f32 %v674_v63, %v673_v53 }
 0x48a   :  { %v681_v18 = vadd.f32 %v680_v26, %v679_v56  ;;  %v687_v19 = vadd.f32 %v686_v7, %v685_v35  ;;  %v693_v20 = vadd.f32 %v692_v44, %v691_v57  ;;  %v699_v22 = vadd.f32 %v698_v8, %v697_v36 }
 0x48b   :  { %v658_v23 = vrot.slane %v657_v12, 1  ;;  %v664_v24 = vrot.slane %v663_v13, 1  ;;  %v670_v25 = vrot.slane %v669_v49, 1  ;;  %v676_v58 = vrot.slane %v675_v17, 1 }
 0x48c   :  { %v682_v27 = vrot.slane %v681_v18, 1  ;;  %v688_v28 = vrot.slane %v687_v19, 1  ;;  %v694_v29 = vrot.slane %v693_v20, 1  ;;  %v700_v30 = vrot.slane %v699_v22, 1 }
 0x48d   :  { %v659_v62 = vadd.f32 %v658_v23, %v657_v12  ;;  %v665_v31 = vadd.f32 %v664_v24, %v663_v13  ;;  %v671_v32 = vadd.f32 %v670_v25, %v669_v49  ;;  %v677_v33 = vadd.f32 %v676_v58, %v675_v17 }
 0x48e   :  { %v683_v34 = vadd.f32 %v682_v27, %v681_v18  ;;  %v689_v37 = vadd.f32 %v688_v28, %v687_v19  ;;  %v695_v40 = vadd.f32 %v694_v29, %v693_v20  ;;  %v701_v41 = vadd.f32 %v700_v30, %v699_v22 }
 0x48f   :  { %v710_v42 = vcombine.low %v659_v62, %v665_v31  ;;  %v711_v43 = vcombine.low %v671_v32, %v677_v33 }
 0x490   :  { %v712_v45 = vcombine.low %v683_v34, %v689_v37  ;;  %v713_v46 = vcombine.low %v695_v40, %v701_v41 }
 0x491   :  { %v720_v47 = vrot.slane %v710_v42, %v5439_v16  ;;  %v727_v48 = vrot.slane %v711_v43, %v5439_v16 }
 0x492   :  { %v734_v52 = vrot.slane %v712_v45, %v5439_v16  ;;  %v741_v53 = vrot.slane %v713_v46, %v5439_v16  ;;  %v885_v45 = vld [vmem:[#allocation10 + $0x3] ss:$8 sm:$0xf] }
 0x493   :  { %v742_v56 = vcombine.low %v720_v47, %v727_v48  ;;  %v886_v46 = vld [vmem:[#allocation10 + $0x3] ss:$8 sm:$0xf0] }
 0x494   :  { %v743_v35 = vcombine.low %v734_v52, %v741_v53  ;;  %v5578_v47 = vor.u32 %v886_v46, %v885_v45 }
 0x495   :  { %v750_v57 = vrot.slane %v742_v56, %v5439_v16 }
 0x496   :  { %v757_v36 = vrot.slane %v743_v35, %v5439_v16  ;;  %v892_v53 = vrot.slane %v5578_v47, %v5324_v2 }
 0x498   :  { %v758_v60 = vcombine.low %v750_v57, %v757_v36  ;;  %v896_v36 = vrot.slane %v5578_v47, %v5327_v3 }
 0x49a   :  { %v760_v39 = vsub.f32 %v5472_v38, %v758_v60 }
 0x49c   :  { %v761_v61 = vmul.f32 %v760_v39, %v760_v39 }
 0x49e   :  { %v766_v63 = vrot.slane %v761_v61, %v5324_v2  ;;  %v770_v26 = vrot.slane %v761_v61, %v5327_v3  ;;  %v774_v7 = vrot.slane %v761_v61, %v5330_v4  ;;  %v778_v44 = vrot.slane %v761_v61, %v5333_v5 }
 0x49f   :  { %v782_v49 = vrot.slane %v761_v61, %v5336_v9  ;;  %v786_v38 = vrot.slane %v761_v61, %v5339_v10  ;;  %v790_v22 = vrot.slane %v761_v61, %v5346_v15  ;;  %v794_v25 = vrot.slane %v761_v61, %v5351_v21 }
 0x4a0   :  { %v803_v8 = vsel %vm202_vm0, %v766_v63, 0.0  ;;  %v804_v12 = vsel %vm202_vm0, %v770_v26, 0.0  ;;  %v806_v17 = vsel %vm202_vm0, %v774_v7, 0.0  ;;  %v808_v19 = vsel %vm202_vm0, %v778_v44, 0.0 }
 0x4a1   :  { %v805_v13 = vadd.f32 %v804_v12, %v803_v8  ;;  %v810_v23 = vsel %vm202_vm0, %v782_v49, 0.0  ;;  %v812_v58 = vsel %vm202_vm0, %v786_v38, 0.0  ;;  %v814_v28 = vsel %vm202_vm0, %v790_v22, 0.0 }
 0x4a2   :  { %v816_v30 = vsel %vm202_vm0, %v794_v25, 0.0  ;;  %v900_v63 = vrot.slane %v5578_v47, %v5330_v4  ;;  %v904_v44 = vrot.slane %v5578_v47, %v5333_v5  ;;  %v912_v38 = vrot.slane %v5578_v47, %v5339_v10 }
 0x4a3   :  { %v807_v18 = vadd.f32 %v806_v17, %v805_v13  ;;  %v908_v13 = vrot.slane %v5578_v47, %v5336_v9 }
 0x4a5   :  { %v809_v20 = vadd.f32 %v808_v19, %v807_v18 }
 0x4a7   :  { %v811_v24 = vadd.f32 %v810_v23, %v809_v20  ;;  %v916_v23 = vrot.slane %v5578_v47, %v5346_v15 }
 0x4a9   :  { %v813_v27 = vadd.f32 %v812_v58, %v811_v24  ;;  %v920_v58 = vrot.slane %v5578_v47, %v5351_v21 }
 0x4ab   :  { %v815_v29 = vadd.f32 %v814_v28, %v813_v27 }
 0x4ad   :  { %v817_v62 = vadd.f32 %v816_v30, %v815_v29 }
 0x4af   :  { %818 = vadd.xlane.f32.xlu1 %v817_v62 }
 0x538   :  { %v819_v31 = vpop.xlane.xlu1 %818 }
 0x539   :  { %v820_v32 = vrot.slane %v819_v31, 4 }
 0x53b   :  { %v821_v33 = vadd.f32 %v820_v32, %v819_v31 }
 0x53d   :  { %v822_v34 = vrot.slane %v821_v33, 2 }
 0x53f   :  { %v823_v37 = vadd.f32 %v822_v34, %v821_v33 }
 0x541   :  { %v824_v40 = vrot.slane %v823_v37, 1 }
 0x543   :  { %v825_v41 = vadd.f32 %v824_v40, %v823_v37 }
 0x545   :  { %5059 = vpush %v825_v41 }
 0x576   :  { %s5060_s27 = spop %5059 }
 0x577   :  { %v827_v42 = vstv %s5060_s27 }
 0x578   :  { %5102 = vrsqrt.f32 %v827_v42 }
 0x585   :  { %v5103_v43 = vpop.eup %5102 }
 0x586   :  { %5061 = vpush %v5103_v43 }
 0x5b7   :  { %s5062_s28 = spop %5061 }
 0x5b8   :  { %v830_v48 = vstv %s5062_s28 }
 0x5b9   :  { %v831_v52 = vmul.f32 %v830_v48, %v760_v39 }
 0x5bb   :  { %v839_v56 = vrot.slane %v831_v52, %v5324_v2  ;;  %v843_v35 = vrot.slane %v831_v52, %v5327_v3  ;;  %v847_v57 = vrot.slane %v831_v52, %v5330_v4  ;;  %v851_v60 = vrot.slane %v831_v52, %v5333_v5 }
 0x5bc   :  { %v855_v26 = vrot.slane %v831_v52, %v5336_v9  ;;  %v863_v17 = vrot.slane %v831_v52, %v5346_v15  ;;  %v867_v20 = vrot.slane %v831_v52, %v5351_v21 }
 0x5bd   :  { %v5592_v39 = vsel %vm832_vm3, %v839_v56, %v5486_v50  ;;  %v5597_v61 = vsel %vm832_vm3, %v843_v35, %v5491_v51  ;;  %v5605_v7 = vsel %vm832_vm3, %v847_v57, %v5499_v55  ;;  %v859_v51 = vrot.slane %v831_v52, %v5339_v10 }
 0x5be   :  { %v929_v50 = vmul.f32 %v892_v53, %v5592_v39  ;;  %v930_v8 = vmul.f32 %v896_v36, %v5597_v61  ;;  %v5615_v12 = vsel %vm832_vm3, %v851_v60, %v5509_v59  ;;  %v931_v55 = vmul.f32 %v900_v63, %v5605_v7 }
 0x5bf   :  { %v5624_v18 = vsel %vm832_vm3, %v855_v26, %v5518_v6  ;;  %v932_v19 = vmul.f32 %v904_v44, %v5615_v12  ;;  %v5633_v22 = vsel %vm832_vm3, %v859_v51, %v5527_v11  ;;  %v5641_v25 = vsel %vm832_vm3, %v863_v17, %v5535_v14 }
 0x5c0   :  { %v937_v49 = vadd.f32 %v930_v8, %v929_v50  ;;  %v933_v24 = vmul.f32 %v908_v13, %v5624_v18  ;;  %v934_v27 = vmul.f32 %v912_v38, %v5633_v22  ;;  %v5649_v11 = vsel %vm832_vm3, %v867_v20, %v5543_v54 }
 0x5c1   :  { %v935_v29 = vmul.f32 %v916_v23, %v5641_v25  ;;  %v936_v62 = vmul.f32 %v920_v58, %v5649_v11 }
 0x5c2   :  { %v938_v59 = vadd.f32 %v937_v49, %v931_v55 }
 0x5c4   :  { %v939_v6 = vadd.f32 %v938_v59, %v932_v19 }
 0x5c6   :  { %v940_v28 = vadd.f32 %v939_v6, %v933_v24 }
 0x5c8   :  { %v941_v30 = vadd.f32 %v940_v28, %v934_v27 }
 0x5ca   :  { %v942_v31 = vadd.f32 %v941_v30, %v935_v29 }
 0x5cc   :  { %v943_v32 = vadd.f32 %v942_v31, %v936_v62 }
 0x5ce   :  { %944 = vadd.xlane.f32.xlu0 %v943_v32 }
 0x657   :  { %v945_v14 = vpop.xlane.xlu0 %944 }
 0x658   :  { %v946_v33 = vmul.f32 %v945_v14, %v5592_v39  ;;  %v947_v34 = vmul.f32 %v945_v14, %v5597_v61  ;;  %v948_v37 = vmul.f32 %v945_v14, %v5605_v7  ;;  %v949_v40 = vmul.f32 %v945_v14, %v5615_v12 }
 0x659   :  { %v950_v54 = vmul.f32 %v945_v14, %v5624_v18  ;;  %v951_v41 = vmul.f32 %v945_v14, %v5633_v22  ;;  %v952_v42 = vmul.f32 %v945_v14, %v5641_v25  ;;  %v953_v43 = vmul.f32 %v945_v14, %v5649_v11 }
 0x65a   :  { %v954_v45 = vrot.slane %v946_v33, 4  ;;  %v960_v46 = vrot.slane %v947_v34, 4  ;;  %v966_v48 = vrot.slane %v948_v37, 4  ;;  %v972_v52 = vrot.slane %v949_v40, 4 }
 0x65b   :  { %v978_v53 = vrot.slane %v950_v54, 4  ;;  %v984_v56 = vrot.slane %v951_v41, 4  ;;  %v990_v35 = vrot.slane %v952_v42, 4  ;;  %v996_v57 = vrot.slane %v953_v43, 4 }
 0x65c   :  { %v955_v36 = vadd.f32 %v954_v45, %v946_v33  ;;  %v961_v60 = vadd.f32 %v960_v46, %v947_v34  ;;  %v967_v63 = vadd.f32 %v966_v48, %v948_v37  ;;  %v973_v26 = vadd.f32 %v972_v52, %v949_v40 }
 0x65d   :  { %v979_v44 = vadd.f32 %v978_v53, %v950_v54  ;;  %v985_v50 = vadd.f32 %v984_v56, %v951_v41  ;;  %v991_v8 = vadd.f32 %v990_v35, %v952_v42  ;;  %v997_v51 = vadd.f32 %v996_v57, %v953_v43 }
 0x65e   :  { %v956_v13 = vrot.slane %v955_v36, 2  ;;  %v962_v55 = vrot.slane %v961_v60, 2  ;;  %v968_v49 = vrot.slane %v967_v63, 2  ;;  %v974_v17 = vrot.slane %v973_v26, 2 }
 0x65f   :  { %v980_v38 = vrot.slane %v979_v44, 2  ;;  %v986_v19 = vrot.slane %v985_v50, 2  ;;  %v992_v59 = vrot.slane %v991_v8, 2  ;;  %v998_v20 = vrot.slane %v997_v51, 2 }
 0x660   :  { %v957_v23 = vadd.f32 %v956_v13, %v955_v36  ;;  %v963_v24 = vadd.f32 %v962_v55, %v961_v60  ;;  %v969_v6 = vadd.f32 %v968_v49, %v967_v63  ;;  %v975_v58 = vadd.f32 %v974_v17, %v973_v26 }
 0x661   :  { %v981_v27 = vadd.f32 %v980_v38, %v979_v44  ;;  %v987_v28 = vadd.f32 %v986_v19, %v985_v50  ;;  %v993_v29 = vadd.f32 %v992_v59, %v991_v8  ;;  %v999_v30 = vadd.f32 %v998_v20, %v997_v51 }
 0x662   :  { %v958_v62 = vrot.slane %v957_v23, 1  ;;  %v964_v31 = vrot.slane %v963_v24, 1  ;;  %v970_v32 = vrot.slane %v969_v6, 1  ;;  %v976_v14 = vrot.slane %v975_v58, 1 }
 0x663   :  { %v982_v33 = vrot.slane %v981_v27, 1  ;;  %v988_v34 = vrot.slane %v987_v28, 1  ;;  %v994_v37 = vrot.slane %v993_v29, 1  ;;  %v1000_v40 = vrot.slane %v999_v30, 1 }
 0x664   :  { %v959_v54 = vadd.f32 %v958_v62, %v957_v23  ;;  %v965_v41 = vadd.f32 %v964_v31, %v963_v24  ;;  %v971_v42 = vadd.f32 %v970_v32, %v969_v6  ;;  %v977_v43 = vadd.f32 %v976_v14, %v975_v58 }
 0x665   :  { %v983_v45 = vadd.f32 %v982_v33, %v981_v27  ;;  %v989_v46 = vadd.f32 %v988_v34, %v987_v28  ;;  %v995_v48 = vadd.f32 %v994_v37, %v993_v29  ;;  %v1001_v52 = vadd.f32 %v1000_v40, %v999_v30 }
 0x666   :  { %v1010_v53 = vcombine.low %v959_v54, %v965_v41  ;;  %v1011_v56 = vcombine.low %v971_v42, %v977_v43 }
 0x667   :  { %v1012_v35 = vcombine.low %v983_v45, %v989_v46  ;;  %v1013_v57 = vcombine.low %v995_v48, %v1001_v52 }
 0x668   :  { %v1020_v36 = vrot.slane %v1010_v53, %v5439_v16  ;;  %v1027_v60 = vrot.slane %v1011_v56, %v5439_v16 }
 0x669   :  { %v1034_v63 = vrot.slane %v1012_v35, %v5439_v16  ;;  %v1041_v26 = vrot.slane %v1013_v57, %v5439_v16  ;;  %v1185_v35 = vld [vmem:[#allocation10 + $0x4] ss:$8 sm:$0xf] }
 0x66a   :  { %v1042_v44 = vcombine.low %v1020_v36, %v1027_v60  ;;  %v1186_v57 = vld [vmem:[#allocation10 + $0x4] ss:$8 sm:$0xf0] }
 0x66b   :  { %v1043_v50 = vcombine.low %v1034_v63, %v1041_v26  ;;  %v5684_v36 = vor.u32 %v1186_v57, %v1185_v35 }
 0x66c   :  { %v1050_v8 = vrot.slane %v1042_v44, %v5439_v16 }
 0x66d   :  { %v1057_v51 = vrot.slane %v1043_v50, %v5439_v16  ;;  %v1192_v26 = vrot.slane %v5684_v36, %v5324_v2 }
 0x66f   :  { %v1058_v13 = vcombine.low %v1050_v8, %v1057_v51  ;;  %v1196_v51 = vrot.slane %v5684_v36, %v5327_v3 }
 0x671   :  { %v1060_v55 = vsub.f32 %v5578_v47, %v1058_v13 }
 0x673   :  { %v1061_v49 = vmul.f32 %v1060_v55, %v1060_v55 }
 0x675   :  { %v1066_v17 = vrot.slane %v1061_v49, %v5324_v2  ;;  %v1070_v38 = vrot.slane %v1061_v49, %v5327_v3  ;;  %v1074_v19 = vrot.slane %v1061_v49, %v5330_v4  ;;  %v1078_v59 = vrot.slane %v1061_v49, %v5333_v5 }
 0x676   :  { %v1082_v6 = vrot.slane %v1061_v49, %v5336_v9  ;;  %v1086_v47 = vrot.slane %v1061_v49, %v5339_v10  ;;  %v1090_v30 = vrot.slane %v1061_v49, %v5346_v15  ;;  %v1094_v32 = vrot.slane %v1061_v49, %v5351_v21 }
 0x677   :  { %v1103_v20 = vsel %vm202_vm0, %v1066_v17, 0.0  ;;  %v1104_v23 = vsel %vm202_vm0, %v1070_v38, 0.0  ;;  %v1106_v58 = vsel %vm202_vm0, %v1074_v19, 0.0  ;;  %v1108_v28 = vsel %vm202_vm0, %v1078_v59, 0.0 }
 0x678   :  { %v1105_v24 = vadd.f32 %v1104_v23, %v1103_v20  ;;  %v1110_v62 = vsel %vm202_vm0, %v1082_v6, 0.0  ;;  %v1112_v14 = vsel %vm202_vm0, %v1086_v47, 0.0  ;;  %v1114_v34 = vsel %vm202_vm0, %v1090_v30, 0.0 }
 0x679   :  { %v1116_v40 = vsel %vm202_vm0, %v1094_v32, 0.0  ;;  %v1200_v17 = vrot.slane %v5684_v36, %v5330_v4  ;;  %v1204_v59 = vrot.slane %v5684_v36, %v5333_v5  ;;  %v1212_v47 = vrot.slane %v5684_v36, %v5339_v10 }
 0x67a   :  { %v1107_v27 = vadd.f32 %v1106_v58, %v1105_v24  ;;  %v1208_v24 = vrot.slane %v5684_v36, %v5336_v9 }
 0x67c   :  { %v1109_v29 = vadd.f32 %v1108_v28, %v1107_v27 }
 0x67e   :  { %v1111_v31 = vadd.f32 %v1110_v62, %v1109_v29  ;;  %v1216_v62 = vrot.slane %v5684_v36, %v5346_v15 }
 0x680   :  { %v1113_v33 = vadd.f32 %v1112_v14, %v1111_v31  ;;  %v1220_v14 = vrot.slane %v5684_v36, %v5351_v21 }
 0x682   :  { %v1115_v37 = vadd.f32 %v1114_v34, %v1113_v33 }
 0x684   :  { %v1117_v54 = vadd.f32 %v1116_v40, %v1115_v37 }
 0x686   :  { %1118 = vadd.xlane.f32.xlu1 %v1117_v54 }
 0x70f   :  { %v1119_v41 = vpop.xlane.xlu1 %1118 }
 0x710   :  { %v1120_v42 = vrot.slane %v1119_v41, 4 }
 0x712   :  { %v1121_v43 = vadd.f32 %v1120_v42, %v1119_v41 }
 0x714   :  { %v1122_v45 = vrot.slane %v1121_v43, 2 }
 0x716   :  { %v1123_v46 = vadd.f32 %v1122_v45, %v1121_v43 }
 0x718   :  { %v1124_v48 = vrot.slane %v1123_v46, 1 }
 0x71a   :  { %v1125_v52 = vadd.f32 %v1124_v48, %v1123_v46 }
 0x71c   :  { %5063 = vpush %v1125_v52 }
 0x74d   :  { %s5064_s29 = spop %5063 }
 0x74e   :  { %v1127_v53 = vstv %s5064_s29 }
 0x74f   :  { %5104 = vrsqrt.f32 %v1127_v53 }
 0x75c   :  { %v5105_v56 = vpop.eup %5104 }
 0x75d   :  { %5065 = vpush %v5105_v56 }
 0x78e   :  { %s5066_s30 = spop %5065 }
 0x78f   :  { %v1130_v60 = vstv %s5066_s30 }
 0x790   :  { %v1131_v63 = vmul.f32 %v1130_v60, %v1060_v55 }
 0x792   :  { %v1139_v44 = vrot.slane %v1131_v63, %v5324_v2  ;;  %v1143_v50 = vrot.slane %v1131_v63, %v5327_v3  ;;  %v1147_v8 = vrot.slane %v1131_v63, %v5330_v4  ;;  %v1151_v13 = vrot.slane %v1131_v63, %v5333_v5 }
 0x793   :  { %v1155_v38 = vrot.slane %v1131_v63, %v5336_v9  ;;  %v1163_v58 = vrot.slane %v1131_v63, %v5346_v15  ;;  %v1167_v29 = vrot.slane %v1131_v63, %v5351_v21 }
 0x794   :  { %v5698_v55 = vsel %vm1132_vm4, %v1139_v44, %v5592_v39  ;;  %v5703_v49 = vsel %vm1132_vm4, %v1143_v50, %v5597_v61  ;;  %v5711_v19 = vsel %vm1132_vm4, %v1147_v8, %v5605_v7  ;;  %v1159_v61 = vrot.slane %v1131_v63, %v5339_v10 }
 0x795   :  { %v1229_v39 = vmul.f32 %v1192_v26, %v5698_v55  ;;  %v1230_v20 = vmul.f32 %v1196_v51, %v5703_v49  ;;  %v5721_v23 = vsel %vm1132_vm4, %v1151_v13, %v5615_v12  ;;  %v1231_v7 = vmul.f32 %v1200_v17, %v5711_v19 }
 0x796   :  { %v5730_v27 = vsel %vm1132_vm4, %v1155_v38, %v5624_v18  ;;  %v1232_v28 = vmul.f32 %v1204_v59, %v5721_v23  ;;  %v5739_v30 = vsel %vm1132_vm4, %v1159_v61, %v5633_v22  ;;  %v5747_v32 = vsel %vm1132_vm4, %v1163_v58, %v5641_v25 }
 0x797   :  { %v1237_v6 = vadd.f32 %v1230_v20, %v1229_v39  ;;  %v1233_v31 = vmul.f32 %v1208_v24, %v5730_v27  ;;  %v1234_v33 = vmul.f32 %v1212_v47, %v5739_v30  ;;  %v5755_v22 = vsel %vm1132_vm4, %v1167_v29, %v5649_v11 }
 0x798   :  { %v1235_v37 = vmul.f32 %v1216_v62, %v5747_v32  ;;  %v1236_v54 = vmul.f32 %v1220_v14, %v5755_v22 }
 0x799   :  { %v1238_v12 = vadd.f32 %v1237_v6, %v1231_v7 }
 0x79b   :  { %v1239_v18 = vadd.f32 %v1238_v12, %v1232_v28 }
 0x79d   :  { %v1240_v34 = vadd.f32 %v1239_v18, %v1233_v31 }
 0x79f   :  { %v1241_v40 = vadd.f32 %v1240_v34, %v1234_v33 }
 0x7a1   :  { %v1242_v41 = vadd.f32 %v1241_v40, %v1235_v37 }
 0x7a3   :  { %v1243_v42 = vadd.f32 %v1242_v41, %v1236_v54 }
 0x7a5   :  { %1244 = vadd.xlane.f32.xlu0 %v1243_v42 }
 0x82e   :  { %v1245_v25 = vpop.xlane.xlu0 %1244 }
 0x82f   :  { %v1246_v43 = vmul.f32 %v1245_v25, %v5698_v55  ;;  %v1247_v45 = vmul.f32 %v1245_v25, %v5703_v49  ;;  %v1248_v46 = vmul.f32 %v1245_v25, %v5711_v19  ;;  %v1249_v48 = vmul.f32 %v1245_v25, %v5721_v23 }
 0x830   :  { %v1250_v11 = vmul.f32 %v1245_v25, %v5730_v27  ;;  %v1251_v52 = vmul.f32 %v1245_v25, %v5739_v30  ;;  %v1252_v53 = vmul.f32 %v1245_v25, %v5747_v32  ;;  %v1253_v56 = vmul.f32 %v1245_v25, %v5755_v22 }
 0x831   :  { %v1254_v35 = vrot.slane %v1246_v43, 4  ;;  %v1260_v57 = vrot.slane %v1247_v45, 4  ;;  %v1266_v60 = vrot.slane %v1248_v46, 4  ;;  %v1272_v63 = vrot.slane %v1249_v48, 4 }
 0x832   :  { %v1278_v26 = vrot.slane %v1250_v11, 4  ;;  %v1284_v44 = vrot.slane %v1251_v52, 4  ;;  %v1290_v50 = vrot.slane %v1252_v53, 4  ;;  %v1296_v8 = vrot.slane %v1253_v56, 4 }
 0x833   :  { %v1255_v51 = vadd.f32 %v1254_v35, %v1246_v43  ;;  %v1261_v13 = vadd.f32 %v1260_v57, %v1247_v45  ;;  %v1267_v17 = vadd.f32 %v1266_v60, %v1248_v46  ;;  %v1273_v38 = vadd.f32 %v1272_v63, %v1249_v48 }
 0x834   :  { %v1279_v59 = vadd.f32 %v1278_v26, %v1250_v11  ;;  %v1285_v39 = vadd.f32 %v1284_v44, %v1251_v52  ;;  %v1291_v20 = vadd.f32 %v1290_v50, %v1252_v53  ;;  %v1297_v61 = vadd.f32 %v1296_v8, %v1253_v56 }
 0x835   :  { %v1256_v24 = vrot.slane %v1255_v51, 2  ;;  %v1262_v7 = vrot.slane %v1261_v13, 2  ;;  %v1268_v6 = vrot.slane %v1267_v17, 2  ;;  %v1274_v58 = vrot.slane %v1273_v38, 2 }
 0x836   :  { %v1280_v47 = vrot.slane %v1279_v59, 2  ;;  %v1286_v28 = vrot.slane %v1285_v39, 2  ;;  %v1292_v12 = vrot.slane %v1291_v20, 2  ;;  %v1298_v29 = vrot.slane %v1297_v61, 2 }
 0x837   :  { %v1257_v62 = vadd.f32 %v1256_v24, %v1255_v51  ;;  %v1263_v31 = vadd.f32 %v1262_v7, %v1261_v13  ;;  %v1269_v18 = vadd.f32 %v1268_v6, %v1267_v17  ;;  %v1275_v14 = vadd.f32 %v1274_v58, %v1273_v38 }
 0x838   :  { %v1281_v33 = vadd.f32 %v1280_v47, %v1279_v59  ;;  %v1287_v34 = vadd.f32 %v1286_v28, %v1285_v39  ;;  %v1293_v37 = vadd.f32 %v1292_v12, %v1291_v20  ;;  %v1299_v40 = vadd.f32 %v1298_v29, %v1297_v61 }
 0x839   :  { %v1258_v54 = vrot.slane %v1257_v62, 1  ;;  %v1264_v41 = vrot.slane %v1263_v31, 1  ;;  %v1270_v42 = vrot.slane %v1269_v18, 1  ;;  %v1276_v25 = vrot.slane %v1275_v14, 1 }
 0x83a   :  { %v1282_v43 = vrot.slane %v1281_v33, 1  ;;  %v1288_v45 = vrot.slane %v1287_v34, 1  ;;  %v1294_v46 = vrot.slane %v1293_v37, 1  ;;  %v1300_v48 = vrot.slane %v1299_v40, 1 }
 0x83b   :  { %v1259_v11 = vadd.f32 %v1258_v54, %v1257_v62  ;;  %v1265_v52 = vadd.f32 %v1264_v41, %v1263_v31  ;;  %v1271_v53 = vadd.f32 %v1270_v42, %v1269_v18  ;;  %v1277_v56 = vadd.f32 %v1276_v25, %v1275_v14 }
 0x83c   :  { %v1283_v35 = vadd.f32 %v1282_v43, %v1281_v33  ;;  %v1289_v57 = vadd.f32 %v1288_v45, %v1287_v34  ;;  %v1295_v60 = vadd.f32 %v1294_v46, %v1293_v37  ;;  %v1301_v63 = vadd.f32 %v1300_v48, %v1299_v40 }
 0x83d   :  { %v1310_v26 = vcombine.low %v1259_v11, %v1265_v52  ;;  %v1311_v44 = vcombine.low %v1271_v53, %v1277_v56 }
 0x83e   :  { %v1312_v50 = vcombine.low %v1283_v35, %v1289_v57  ;;  %v1313_v8 = vcombine.low %v1295_v60, %v1301_v63 }
 0x83f   :  { %v1320_v51 = vrot.slane %v1310_v26, %v5439_v16  ;;  %v1327_v13 = vrot.slane %v1311_v44, %v5439_v16 }
 0x840   :  { %v1334_v17 = vrot.slane %v1312_v50, %v5439_v16  ;;  %v1341_v38 = vrot.slane %v1313_v8, %v5439_v16  ;;  %v1485_v50 = vld [vmem:[#allocation10 + $0x5] ss:$8 sm:$0xf] }
 0x841   :  { %v1342_v59 = vcombine.low %v1320_v51, %v1327_v13  ;;  %v1486_v8 = vld [vmem:[#allocation10 + $0x5] ss:$8 sm:$0xf0] }
 0x842   :  { %v1343_v39 = vcombine.low %v1334_v17, %v1341_v38  ;;  %v5790_v51 = vor.u32 %v1486_v8, %v1485_v50 }
 0x843   :  { %v1350_v20 = vrot.slane %v1342_v59, %v5439_v16 }
 0x844   :  { %v1357_v61 = vrot.slane %v1343_v39, %v5439_v16  ;;  %v1492_v38 = vrot.slane %v5790_v51, %v5324_v2 }
 0x846   :  { %v1358_v24 = vcombine.low %v1350_v20, %v1357_v61  ;;  %v1496_v61 = vrot.slane %v5790_v51, %v5327_v3 }
 0x848   :  { %v1360_v7 = vsub.f32 %v5684_v36, %v1358_v24 }
 0x84a   :  { %v1361_v6 = vmul.f32 %v1360_v7, %v1360_v7 }
 0x84c   :  { %v1366_v58 = vrot.slane %v1361_v6, %v5324_v2  ;;  %v1370_v47 = vrot.slane %v1361_v6, %v5327_v3  ;;  %v1374_v28 = vrot.slane %v1361_v6, %v5330_v4  ;;  %v1378_v12 = vrot.slane %v1361_v6, %v5333_v5 }
 0x84d   :  { %v1382_v18 = vrot.slane %v1361_v6, %v5336_v9  ;;  %v1386_v36 = vrot.slane %v1361_v6, %v5339_v10  ;;  %v1390_v40 = vrot.slane %v1361_v6, %v5346_v15  ;;  %v1394_v42 = vrot.slane %v1361_v6, %v5351_v21 }
 0x84e   :  { %v1403_v29 = vsel %vm202_vm0, %v1366_v58, 0.0  ;;  %v1404_v62 = vsel %vm202_vm0, %v1370_v47, 0.0  ;;  %v1406_v14 = vsel %vm202_vm0, %v1374_v28, 0.0  ;;  %v1408_v34 = vsel %vm202_vm0, %v1378_v12, 0.0 }
 0x84f   :  { %v1405_v31 = vadd.f32 %v1404_v62, %v1403_v29  ;;  %v1410_v54 = vsel %vm202_vm0, %v1382_v18, 0.0  ;;  %v1412_v25 = vsel %vm202_vm0, %v1386_v36, 0.0  ;;  %v1414_v45 = vsel %vm202_vm0, %v1390_v40, 0.0 }
 0x850   :  { %v1416_v48 = vsel %vm202_vm0, %v1394_v42, 0.0  ;;  %v1500_v58 = vrot.slane %v5790_v51, %v5330_v4  ;;  %v1504_v12 = vrot.slane %v5790_v51, %v5333_v5  ;;  %v1512_v36 = vrot.slane %v5790_v51, %v5339_v10 }
 0x851   :  { %v1407_v33 = vadd.f32 %v1406_v14, %v1405_v31  ;;  %v1508_v31 = vrot.slane %v5790_v51, %v5336_v9 }
 0x853   :  { %v1409_v37 = vadd.f32 %v1408_v34, %v1407_v33 }
 0x855   :  { %v1411_v41 = vadd.f32 %v1410_v54, %v1409_v37  ;;  %v1516_v54 = vrot.slane %v5790_v51, %v5346_v15 }
 0x857   :  { %v1413_v43 = vadd.f32 %v1412_v25, %v1411_v41  ;;  %v1520_v25 = vrot.slane %v5790_v51, %v5351_v21 }
 0x859   :  { %v1415_v46 = vadd.f32 %v1414_v45, %v1413_v43 }
 0x85b   :  { %v1417_v11 = vadd.f32 %v1416_v48, %v1415_v46 }
 0x85d   :  { %1418 = vadd.xlane.f32.xlu1 %v1417_v11 }
 0x8e6   :  { %v1419_v52 = vpop.xlane.xlu1 %1418 }
 0x8e7   :  { %v1420_v53 = vrot.slane %v1419_v52, 4 }
 0x8e9   :  { %v1421_v56 = vadd.f32 %v1420_v53, %v1419_v52 }
 0x8eb   :  { %v1422_v35 = vrot.slane %v1421_v56, 2 }
 0x8ed   :  { %v1423_v57 = vadd.f32 %v1422_v35, %v1421_v56 }
 0x8ef   :  { %v1424_v60 = vrot.slane %v1423_v57, 1 }
 0x8f1   :  { %v1425_v63 = vadd.f32 %v1424_v60, %v1423_v57 }
 0x8f3   :  { %5067 = vpush %v1425_v63 }
 0x924   :  { %s5068_s8 = spop %5067 }
 0x925   :  { %v1427_v26 = vstv %s5068_s8 }
 0x926   :  { %5106 = vrsqrt.f32 %v1427_v26 }
 0x933   :  { %v5107_v44 = vpop.eup %5106 }
 0x934   :  { %5069 = vpush %v5107_v44 }
 0x965   :  { %s5070_s9 = spop %5069 }
 0x966   :  { %v1430_v13 = vstv %s5070_s9 }
 0x967   :  { %v1431_v17 = vmul.f32 %v1430_v13, %v1360_v7 }
 0x969   :  { %v1439_v59 = vrot.slane %v1431_v17, %v5324_v2  ;;  %v1443_v39 = vrot.slane %v1431_v17, %v5327_v3  ;;  %v1447_v20 = vrot.slane %v1431_v17, %v5330_v4  ;;  %v1451_v24 = vrot.slane %v1431_v17, %v5333_v5 }
 0x96a   :  { %v1455_v47 = vrot.slane %v1431_v17, %v5336_v9  ;;  %v1463_v14 = vrot.slane %v1431_v17, %v5346_v15  ;;  %v1467_v37 = vrot.slane %v1431_v17, %v5351_v21 }
 0x96b   :  { %v5804_v7 = vsel %vm1432_vm5, %v1439_v59, %v5698_v55  ;;  %v5809_v6 = vsel %vm1432_vm5, %v1443_v39, %v5703_v49  ;;  %v5817_v28 = vsel %vm1432_vm5, %v1447_v20, %v5711_v19  ;;  %v1459_v49 = vrot.slane %v1431_v17, %v5339_v10 }
 0x96c   :  { %v1529_v55 = vmul.f32 %v1492_v38, %v5804_v7  ;;  %v1530_v29 = vmul.f32 %v1496_v61, %v5809_v6  ;;  %v5827_v62 = vsel %vm1432_vm5, %v1451_v24, %v5721_v23  ;;  %v1531_v19 = vmul.f32 %v1500_v58, %v5817_v28 }
 0x96d   :  { %v5836_v33 = vsel %vm1432_vm5, %v1455_v47, %v5730_v27  ;;  %v1532_v34 = vmul.f32 %v1504_v12, %v5827_v62  ;;  %v5845_v40 = vsel %vm1432_vm5, %v1459_v49, %v5739_v30  ;;  %v5853_v42 = vsel %vm1432_vm5, %v1463_v14, %v5747_v32 }
 0x96e   :  { %v1537_v18 = vadd.f32 %v1530_v29, %v1529_v55  ;;  %v1533_v41 = vmul.f32 %v1508_v31, %v5836_v33  ;;  %v1534_v43 = vmul.f32 %v1512_v36, %v5845_v40  ;;  %v5861_v30 = vsel %vm1432_vm5, %v1467_v37, %v5755_v22 }
 0x96f   :  { %v1535_v46 = vmul.f32 %v1516_v54, %v5853_v42  ;;  %v1536_v11 = vmul.f32 %v1520_v25, %v5861_v30 }
 0x970   :  { %v1538_v23 = vadd.f32 %v1537_v18, %v1531_v19 }
 0x972   :  { %v1539_v27 = vadd.f32 %v1538_v23, %v1532_v34 }
 0x974   :  { %v1540_v45 = vadd.f32 %v1539_v27, %v1533_v41 }
 0x976   :  { %v1541_v48 = vadd.f32 %v1540_v45, %v1534_v43 }
 0x978   :  { %v1542_v52 = vadd.f32 %v1541_v48, %v1535_v46 }
 0x97a   :  { %v1543_v53 = vadd.f32 %v1542_v52, %v1536_v11 }
 0x97c   :  { %1544 = vadd.xlane.f32.xlu0 %v1543_v53 }
 0xa05   :  { %v1545_v32 = vpop.xlane.xlu0 %1544 }
 0xa06   :  { %v1546_v56 = vmul.f32 %v1545_v32, %v5804_v7  ;;  %v1547_v35 = vmul.f32 %v1545_v32, %v5809_v6  ;;  %v1548_v57 = vmul.f32 %v1545_v32, %v5817_v28  ;;  %v1549_v60 = vmul.f32 %v1545_v32, %v5827_v62 }
 0xa07   :  { %v1550_v22 = vmul.f32 %v1545_v32, %v5836_v33  ;;  %v1551_v63 = vmul.f32 %v1545_v32, %v5845_v40  ;;  %v1552_v26 = vmul.f32 %v1545_v32, %v5853_v42  ;;  %v1553_v44 = vmul.f32 %v1545_v32, %v5861_v30 }
 0xa08   :  { %v1554_v50 = vrot.slane %v1546_v56, 4  ;;  %v1560_v8 = vrot.slane %v1547_v35, 4  ;;  %v1566_v13 = vrot.slane %v1548_v57, 4  ;;  %v1572_v17 = vrot.slane %v1549_v60, 4 }
 0xa09   :  { %v1578_v38 = vrot.slane %v1550_v22, 4  ;;  %v1584_v59 = vrot.slane %v1551_v63, 4  ;;  %v1590_v39 = vrot.slane %v1552_v26, 4  ;;  %v1596_v20 = vrot.slane %v1553_v44, 4 }
 0xa0a   :  { %v1555_v61 = vadd.f32 %v1554_v50, %v1546_v56  ;;  %v1561_v24 = vadd.f32 %v1560_v8, %v1547_v35  ;;  %v1567_v58 = vadd.f32 %v1566_v13, %v1548_v57  ;;  %v1573_v47 = vadd.f32 %v1572_v17, %v1549_v60 }
 0xa0b   :  { %v1579_v12 = vadd.f32 %v1578_v38, %v1550_v22  ;;  %v1585_v55 = vadd.f32 %v1584_v59, %v1551_v63  ;;  %v1591_v29 = vadd.f32 %v1590_v39, %v1552_v26  ;;  %v1597_v49 = vadd.f32 %v1596_v20, %v1553_v44 }
 0xa0c   :  { %v1556_v31 = vrot.slane %v1555_v61, 2  ;;  %v1562_v19 = vrot.slane %v1561_v24, 2  ;;  %v1568_v18 = vrot.slane %v1567_v58, 2  ;;  %v1574_v14 = vrot.slane %v1573_v47, 2 }
 0xa0d   :  { %v1580_v36 = vrot.slane %v1579_v12, 2  ;;  %v1586_v34 = vrot.slane %v1585_v55, 2  ;;  %v1592_v23 = vrot.slane %v1591_v29, 2  ;;  %v1598_v37 = vrot.slane %v1597_v49, 2 }
 0xa0e   :  { %v1557_v54 = vadd.f32 %v1556_v31, %v1555_v61  ;;  %v1563_v41 = vadd.f32 %v1562_v19, %v1561_v24  ;;  %v1569_v27 = vadd.f32 %v1568_v18, %v1567_v58  ;;  %v1575_v25 = vadd.f32 %v1574_v14, %v1573_v47 }
 0xa0f   :  { %v1581_v43 = vadd.f32 %v1580_v36, %v1579_v12  ;;  %v1587_v45 = vadd.f32 %v1586_v34, %v1585_v55  ;;  %v1593_v46 = vadd.f32 %v1592_v23, %v1591_v29  ;;  %v1599_v48 = vadd.f32 %v1598_v37, %v1597_v49 }
 0xa10   :  { %v1558_v11 = vrot.slane %v1557_v54, 1  ;;  %v1564_v52 = vrot.slane %v1563_v41, 1  ;;  %v1570_v53 = vrot.slane %v1569_v27, 1  ;;  %v1576_v32 = vrot.slane %v1575_v25, 1 }
 0xa11   :  { %v1582_v56 = vrot.slane %v1581_v43, 1  ;;  %v1588_v35 = vrot.slane %v1587_v45, 1  ;;  %v1594_v57 = vrot.slane %v1593_v46, 1  ;;  %v1600_v60 = vrot.slane %v1599_v48, 1 }
 0xa12   :  { %v1559_v22 = vadd.f32 %v1558_v11, %v1557_v54  ;;  %v1565_v63 = vadd.f32 %v1564_v52, %v1563_v41  ;;  %v1571_v26 = vadd.f32 %v1570_v53, %v1569_v27  ;;  %v1577_v44 = vadd.f32 %v1576_v32, %v1575_v25 }
 0xa13   :  { %v1583_v50 = vadd.f32 %v1582_v56, %v1581_v43  ;;  %v1589_v8 = vadd.f32 %v1588_v35, %v1587_v45  ;;  %v1595_v13 = vadd.f32 %v1594_v57, %v1593_v46  ;;  %v1601_v17 = vadd.f32 %v1600_v60, %v1599_v48 }
 0xa14   :  { %v1610_v38 = vcombine.low %v1559_v22, %v1565_v63  ;;  %v1611_v59 = vcombine.low %v1571_v26, %v1577_v44 }
 0xa15   :  { %v1612_v39 = vcombine.low %v1583_v50, %v1589_v8  ;;  %v1613_v20 = vcombine.low %v1595_v13, %v1601_v17 }
 0xa16   :  { %v1620_v61 = vrot.slane %v1610_v38, %v5439_v16  ;;  %v1627_v24 = vrot.slane %v1611_v59, %v5439_v16 }
 0xa17   :  { %v1634_v58 = vrot.slane %v1612_v39, %v5439_v16  ;;  %v1641_v47 = vrot.slane %v1613_v20, %v5439_v16  ;;  %v1785_v39 = vld [vmem:[#allocation10 + $0x6] ss:$8 sm:$0xf] }
 0xa18   :  { %v1642_v12 = vcombine.low %v1620_v61, %v1627_v24  ;;  %v1786_v20 = vld [vmem:[#allocation10 + $0x6] ss:$8 sm:$0xf0] }
 0xa19   :  { %v1643_v55 = vcombine.low %v1634_v58, %v1641_v47  ;;  %v5896_v61 = vor.u32 %v1786_v20, %v1785_v39 }
 0xa1a   :  { %v1650_v29 = vrot.slane %v1642_v12, %v5439_v16 }
 0xa1b   :  { %v1657_v49 = vrot.slane %v1643_v55, %v5439_v16  ;;  %v1792_v47 = vrot.slane %v5896_v61, %v5324_v2 }
 0xa1d   :  { %v1658_v31 = vcombine.low %v1650_v29, %v1657_v49  ;;  %v1796_v49 = vrot.slane %v5896_v61, %v5327_v3 }
 0xa1f   :  { %v1660_v19 = vsub.f32 %v5790_v51, %v1658_v31 }
 0xa21   :  { %v1661_v18 = vmul.f32 %v1660_v19, %v1660_v19 }
 0xa23   :  { %v1666_v14 = vrot.slane %v1661_v18, %v5324_v2  ;;  %v1670_v36 = vrot.slane %v1661_v18, %v5327_v3  ;;  %v1674_v34 = vrot.slane %v1661_v18, %v5330_v4  ;;  %v1678_v23 = vrot.slane %v1661_v18, %v5333_v5 }
 0xa24   :  { %v1682_v27 = vrot.slane %v1661_v18, %v5336_v9  ;;  %v1686_v51 = vrot.slane %v1661_v18, %v5339_v10  ;;  %v1690_v48 = vrot.slane %v1661_v18, %v5346_v15  ;;  %v1694_v53 = vrot.slane %v1661_v18, %v5351_v21 }
 0xa25   :  { %v1703_v37 = vsel %vm202_vm0, %v1666_v14, 0.0  ;;  %v1704_v54 = vsel %vm202_vm0, %v1670_v36, 0.0  ;;  %v1706_v25 = vsel %vm202_vm0, %v1674_v34, 0.0  ;;  %v1708_v45 = vsel %vm202_vm0, %v1678_v23, 0.0 }
 0xa26   :  { %v1705_v41 = vadd.f32 %v1704_v54, %v1703_v37  ;;  %v1710_v11 = vsel %vm202_vm0, %v1682_v27, 0.0  ;;  %v1712_v32 = vsel %vm202_vm0, %v1686_v51, 0.0  ;;  %v1714_v35 = vsel %vm202_vm0, %v1690_v48, 0.0 }
 0xa27   :  { %v1716_v60 = vsel %vm202_vm0, %v1694_v53, 0.0  ;;  %v1800_v14 = vrot.slane %v5896_v61, %v5330_v4  ;;  %v1804_v23 = vrot.slane %v5896_v61, %v5333_v5  ;;  %v1812_v51 = vrot.slane %v5896_v61, %v5339_v10 }
 0xa28   :  { %v1707_v43 = vadd.f32 %v1706_v25, %v1705_v41  ;;  %v1808_v41 = vrot.slane %v5896_v61, %v5336_v9 }
 0xa2a   :  { %v1709_v46 = vadd.f32 %v1708_v45, %v1707_v43 }
 0xa2c   :  { %v1711_v52 = vadd.f32 %v1710_v11, %v1709_v46  ;;  %v1816_v11 = vrot.slane %v5896_v61, %v5346_v15 }
 0xa2e   :  { %v1713_v56 = vadd.f32 %v1712_v32, %v1711_v52  ;;  %v1820_v32 = vrot.slane %v5896_v61, %v5351_v21 }
 0xa30   :  { %v1715_v57 = vadd.f32 %v1714_v35, %v1713_v56 }
 0xa32   :  { %v1717_v22 = vadd.f32 %v1716_v60, %v1715_v57 }
 0xa34   :  { %1718 = vadd.xlane.f32.xlu1 %v1717_v22 }
 0xabd   :  { %v1719_v63 = vpop.xlane.xlu1 %1718 }
 0xabe   :  { %v1720_v26 = vrot.slane %v1719_v63, 4 }
 0xac0   :  { %v1721_v44 = vadd.f32 %v1720_v26, %v1719_v63 }
 0xac2   :  { %v1722_v50 = vrot.slane %v1721_v44, 2 }
 0xac4   :  { %v1723_v8 = vadd.f32 %v1722_v50, %v1721_v44 }
 0xac6   :  { %v1724_v13 = vrot.slane %v1723_v8, 1 }
 0xac8   :  { %v1725_v17 = vadd.f32 %v1724_v13, %v1723_v8 }
 0xaca   :  { %5071 = vpush %v1725_v17 }
 0xafb   :  { %s5072_s10 = spop %5071 }
 0xafc   :  { %v1727_v38 = vstv %s5072_s10 }
 0xafd   :  { %5108 = vrsqrt.f32 %v1727_v38 }
 0xb0a   :  { %v5109_v59 = vpop.eup %5108 }
 0xb0b   :  { %5073 = vpush %v5109_v59 }
 0xb3c   :  { %s5074_s11 = spop %5073 }
 0xb3d   :  { %v1730_v24 = vstv %s5074_s11 }
 0xb3e   :  { %v1731_v58 = vmul.f32 %v1730_v24, %v1660_v19 }
 0xb40   :  { %v1739_v12 = vrot.slane %v1731_v58, %v5324_v2  ;;  %v1743_v55 = vrot.slane %v1731_v58, %v5327_v3  ;;  %v1747_v29 = vrot.slane %v1731_v58, %v5330_v4  ;;  %v1751_v31 = vrot.slane %v1731_v58, %v5333_v5 }
 0xb41   :  { %v1755_v36 = vrot.slane %v1731_v58, %v5336_v9  ;;  %v1763_v25 = vrot.slane %v1731_v58, %v5346_v15  ;;  %v1767_v46 = vrot.slane %v1731_v58, %v5351_v21 }
 0xb42   :  { %v5910_v19 = vsel %vm1732_vm6, %v1739_v12, %v5804_v7  ;;  %v5915_v18 = vsel %vm1732_vm6, %v1743_v55, %v5809_v6  ;;  %v5923_v34 = vsel %vm1732_vm6, %v1747_v29, %v5817_v28  ;;  %v1759_v6 = vrot.slane %v1731_v58, %v5339_v10 }
 0xb43   :  { %v1829_v7 = vmul.f32 %v1792_v47, %v5910_v19  ;;  %v1830_v37 = vmul.f32 %v1796_v49, %v5915_v18  ;;  %v5933_v54 = vsel %vm1732_vm6, %v1751_v31, %v5827_v62  ;;  %v1831_v28 = vmul.f32 %v1800_v14, %v5923_v34 }
 0xb44   :  { %v5942_v43 = vsel %vm1732_vm6, %v1755_v36, %v5836_v33  ;;  %v1832_v45 = vmul.f32 %v1804_v23, %v5933_v54  ;;  %v5951_v48 = vsel %vm1732_vm6, %v1759_v6, %v5845_v40  ;;  %v5959_v53 = vsel %vm1732_vm6, %v1763_v25, %v5853_v42 }
 0xb45   :  { %v1837_v27 = vadd.f32 %v1830_v37, %v1829_v7  ;;  %v1833_v52 = vmul.f32 %v1808_v41, %v5942_v43  ;;  %v1834_v56 = vmul.f32 %v1812_v51, %v5951_v48  ;;  %v5967_v40 = vsel %vm1732_vm6, %v1767_v46, %v5861_v30 }
 0xb46   :  { %v1835_v57 = vmul.f32 %v1816_v11, %v5959_v53  ;;  %v1836_v22 = vmul.f32 %v1820_v32, %v5967_v40 }
 0xb47   :  { %v1838_v62 = vadd.f32 %v1837_v27, %v1831_v28 }
 0xb49   :  { %v1839_v33 = vadd.f32 %v1838_v62, %v1832_v45 }
 0xb4b   :  { %v1840_v35 = vadd.f32 %v1839_v33, %v1833_v52 }
 0xb4d   :  { %v1841_v60 = vadd.f32 %v1840_v35, %v1834_v56 }
 0xb4f   :  { %v1842_v63 = vadd.f32 %v1841_v60, %v1835_v57 }
 0xb51   :  { %v1843_v26 = vadd.f32 %v1842_v63, %v1836_v22 }
 0xb53   :  { %1844 = vadd.xlane.f32.xlu0 %v1843_v26 }
 0xbdc   :  { %v1845_v42 = vpop.xlane.xlu0 %1844 }
 0xbdd   :  { %v1846_v44 = vmul.f32 %v1845_v42, %v5910_v19  ;;  %v1847_v50 = vmul.f32 %v1845_v42, %v5915_v18  ;;  %v1848_v8 = vmul.f32 %v1845_v42, %v5923_v34  ;;  %v1849_v13 = vmul.f32 %v1845_v42, %v5933_v54 }
 0xbde   :  { %v1850_v30 = vmul.f32 %v1845_v42, %v5942_v43  ;;  %v1851_v17 = vmul.f32 %v1845_v42, %v5951_v48  ;;  %v1852_v38 = vmul.f32 %v1845_v42, %v5959_v53  ;;  %v1853_v59 = vmul.f32 %v1845_v42, %v5967_v40 }
 0xbdf   :  { %v1854_v39 = vrot.slane %v1846_v44, 4  ;;  %v1860_v20 = vrot.slane %v1847_v50, 4  ;;  %v1866_v24 = vrot.slane %v1848_v8, 4  ;;  %v1872_v58 = vrot.slane %v1849_v13, 4 }
 0xbe0   :  { %v1878_v47 = vrot.slane %v1850_v30, 4  ;;  %v1884_v12 = vrot.slane %v1851_v17, 4  ;;  %v1890_v55 = vrot.slane %v1852_v38, 4  ;;  %v1896_v29 = vrot.slane %v1853_v59, 4 }
 0xbe1   :  { %v1855_v49 = vadd.f32 %v1854_v39, %v1846_v44  ;;  %v1861_v31 = vadd.f32 %v1860_v20, %v1847_v50  ;;  %v1867_v14 = vadd.f32 %v1866_v24, %v1848_v8  ;;  %v1873_v36 = vadd.f32 %v1872_v58, %v1849_v13 }
 0xbe2   :  { %v1879_v23 = vadd.f32 %v1878_v47, %v1850_v30  ;;  %v1885_v7 = vadd.f32 %v1884_v12, %v1851_v17  ;;  %v1891_v37 = vadd.f32 %v1890_v55, %v1852_v38  ;;  %v1897_v6 = vadd.f32 %v1896_v29, %v1853_v59 }
 0xbe3   :  { %v1856_v41 = vrot.slane %v1855_v49, 2  ;;  %v1862_v28 = vrot.slane %v1861_v31, 2  ;;  %v1868_v27 = vrot.slane %v1867_v14, 2  ;;  %v1874_v25 = vrot.slane %v1873_v36, 2 }
 0xbe4   :  { %v1880_v51 = vrot.slane %v1879_v23, 2  ;;  %v1886_v45 = vrot.slane %v1885_v7, 2  ;;  %v1892_v62 = vrot.slane %v1891_v37, 2  ;;  %v1898_v46 = vrot.slane %v1897_v6, 2 }
 0xbe5   :  { %v1857_v11 = vadd.f32 %v1856_v41, %v1855_v49  ;;  %v1863_v52 = vadd.f32 %v1862_v28, %v1861_v31  ;;  %v1869_v33 = vadd.f32 %v1868_v27, %v1867_v14  ;;  %v1875_v32 = vadd.f32 %v1874_v25, %v1873_v36 }
 0xbe6   :  { %v1881_v56 = vadd.f32 %v1880_v51, %v1879_v23  ;;  %v1887_v35 = vadd.f32 %v1886_v45, %v1885_v7  ;;  %v1893_v57 = vadd.f32 %v1892_v62, %v1891_v37  ;;  %v1899_v60 = vadd.f32 %v1898_v46, %v1897_v6 }
 0xbe7   :  { %v1858_v22 = vrot.slane %v1857_v11, 1  ;;  %v1864_v63 = vrot.slane %v1863_v52, 1  ;;  %v1870_v26 = vrot.slane %v1869_v33, 1  ;;  %v1876_v42 = vrot.slane %v1875_v32, 1 }
 0xbe8   :  { %v1882_v44 = vrot.slane %v1881_v56, 1  ;;  %v1888_v50 = vrot.slane %v1887_v35, 1  ;;  %v1894_v8 = vrot.slane %v1893_v57, 1  ;;  %v1900_v13 = vrot.slane %v1899_v60, 1 }
 0xbe9   :  { %v1859_v30 = vadd.f32 %v1858_v22, %v1857_v11  ;;  %v1865_v17 = vadd.f32 %v1864_v63, %v1863_v52  ;;  %v1871_v38 = vadd.f32 %v1870_v26, %v1869_v33  ;;  %v1877_v59 = vadd.f32 %v1876_v42, %v1875_v32 }
 0xbea   :  { %v1883_v39 = vadd.f32 %v1882_v44, %v1881_v56  ;;  %v1889_v20 = vadd.f32 %v1888_v50, %v1887_v35  ;;  %v1895_v24 = vadd.f32 %v1894_v8, %v1893_v57  ;;  %v1901_v58 = vadd.f32 %v1900_v13, %v1899_v60 }
 0xbeb   :  { %v1910_v47 = vcombine.low %v1859_v30, %v1865_v17  ;;  %v1911_v12 = vcombine.low %v1871_v38, %v1877_v59 }
 0xbec   :  { %v1912_v55 = vcombine.low %v1883_v39, %v1889_v20  ;;  %v1913_v29 = vcombine.low %v1895_v24, %v1901_v58 }
 0xbed   :  { %v1920_v49 = vrot.slane %v1910_v47, %v5439_v16  ;;  %v1927_v31 = vrot.slane %v1911_v12, %v5439_v16 }
 0xbee   :  { %v1934_v14 = vrot.slane %v1912_v55, %v5439_v16  ;;  %v1941_v36 = vrot.slane %v1913_v29, %v5439_v16  ;;  %v2085_v55 = vld [vmem:[#allocation10 + $0x7] ss:$8 sm:$0xf] }
 0xbef   :  { %v1942_v23 = vcombine.low %v1920_v49, %v1927_v31  ;;  %v2086_v29 = vld [vmem:[#allocation10 + $0x7] ss:$8 sm:$0xf0] }
 0xbf0   :  { %v1943_v7 = vcombine.low %v1934_v14, %v1941_v36  ;;  %v6002_v49 = vor.u32 %v2086_v29, %v2085_v55 }
 0xbf1   :  { %v1950_v37 = vrot.slane %v1942_v23, %v5439_v16 }
 0xbf2   :  { %v1957_v6 = vrot.slane %v1943_v7, %v5439_v16  ;;  %v2092_v36 = vrot.slane %v6002_v49, %v5324_v2 }
 0xbf4   :  { %v1958_v41 = vcombine.low %v1950_v37, %v1957_v6  ;;  %v2096_v6 = vrot.slane %v6002_v49, %v5327_v3 }
 0xbf6   :  { %v1960_v28 = vsub.f32 %v5896_v61, %v1958_v41 }
 0xbf8   :  { %v1961_v27 = vmul.f32 %v1960_v28, %v1960_v28 }
 0xbfa   :  { %v1966_v25 = vrot.slane %v1961_v27, %v5324_v2  ;;  %v1970_v51 = vrot.slane %v1961_v27, %v5327_v3  ;;  %v1974_v45 = vrot.slane %v1961_v27, %v5330_v4  ;;  %v1978_v62 = vrot.slane %v1961_v27, %v5333_v5 }
 0xbfb   :  { %v1982_v33 = vrot.slane %v1961_v27, %v5336_v9  ;;  %v1986_v61 = vrot.slane %v1961_v27, %v5339_v10  ;;  %v1990_v60 = vrot.slane %v1961_v27, %v5346_v15  ;;  %v1994_v26 = vrot.slane %v1961_v27, %v5351_v21 }
 0xbfc   :  { %v2003_v46 = vsel %vm202_vm0, %v1966_v25, 0.0  ;;  %v2004_v11 = vsel %vm202_vm0, %v1970_v51, 0.0  ;;  %v2006_v32 = vsel %vm202_vm0, %v1974_v45, 0.0  ;;  %v2008_v35 = vsel %vm202_vm0, %v1978_v62, 0.0 }
 0xbfd   :  { %v2005_v52 = vadd.f32 %v2004_v11, %v2003_v46  ;;  %v2010_v22 = vsel %vm202_vm0, %v1982_v33, 0.0  ;;  %v2012_v42 = vsel %vm202_vm0, %v1986_v61, 0.0  ;;  %v2014_v50 = vsel %vm202_vm0, %v1990_v60, 0.0 }
 0xbfe   :  { %v2016_v13 = vsel %vm202_vm0, %v1994_v26, 0.0  ;;  %v2100_v25 = vrot.slane %v6002_v49, %v5330_v4  ;;  %v2104_v62 = vrot.slane %v6002_v49, %v5333_v5  ;;  %v2112_v61 = vrot.slane %v6002_v49, %v5339_v10 }
 0xbff   :  { %v2007_v56 = vadd.f32 %v2006_v32, %v2005_v52  ;;  %v2108_v52 = vrot.slane %v6002_v49, %v5336_v9 }
 0xc01   :  { %v2009_v57 = vadd.f32 %v2008_v35, %v2007_v56 }
 0xc03   :  { %v2011_v63 = vadd.f32 %v2010_v22, %v2009_v57  ;;  %v2116_v22 = vrot.slane %v6002_v49, %v5346_v15 }
 0xc05   :  { %v2013_v44 = vadd.f32 %v2012_v42, %v2011_v63  ;;  %v2120_v42 = vrot.slane %v6002_v49, %v5351_v21 }
 0xc07   :  { %v2015_v8 = vadd.f32 %v2014_v50, %v2013_v44 }
 0xc09   :  { %v2017_v30 = vadd.f32 %v2016_v13, %v2015_v8 }
 0xc0b   :  { %2018 = vadd.xlane.f32.xlu1 %v2017_v30 }
 0xc94   :  { %v2019_v17 = vpop.xlane.xlu1 %2018 }
 0xc95   :  { %v2020_v38 = vrot.slane %v2019_v17, 4 }
 0xc97   :  { %v2021_v59 = vadd.f32 %v2020_v38, %v2019_v17 }
 0xc99   :  { %v2022_v39 = vrot.slane %v2021_v59, 2 }
 0xc9b   :  { %v2023_v20 = vadd.f32 %v2022_v39, %v2021_v59 }
 0xc9d   :  { %v2024_v24 = vrot.slane %v2023_v20, 1 }
 0xc9f   :  { %v2025_v58 = vadd.f32 %v2024_v24, %v2023_v20 }
 0xca1   :  { %5075 = vpush %v2025_v58 }
 0xcd2   :  { %s5076_s12 = spop %5075 }
 0xcd3   :  { %v2027_v47 = vstv %s5076_s12 }
 0xcd4   :  { %5110 = vrsqrt.f32 %v2027_v47 }
 0xce1   :  { %v5111_v12 = vpop.eup %5110 }
 0xce2   :  { %5077 = vpush %v5111_v12 }
 0xd13   :  { %s5078_s13 = spop %5077 }
 0xd14   :  { %v2030_v31 = vstv %s5078_s13 }
 0xd15   :  { %v2031_v14 = vmul.f32 %v2030_v31, %v1960_v28 }
 0xd17   :  { %v2039_v23 = vrot.slane %v2031_v14, %v5324_v2  ;;  %v2043_v7 = vrot.slane %v2031_v14, %v5327_v3  ;;  %v2047_v37 = vrot.slane %v2031_v14, %v5330_v4  ;;  %v2051_v41 = vrot.slane %v2031_v14, %v5333_v5 }
 0xd18   :  { %v2055_v51 = vrot.slane %v2031_v14, %v5336_v9  ;;  %v2063_v32 = vrot.slane %v2031_v14, %v5346_v15  ;;  %v2067_v57 = vrot.slane %v2031_v14, %v5351_v21 }
 0xd19   :  { %v6016_v28 = vsel %vm2032_vm7, %v2039_v23, %v5910_v19  ;;  %v6021_v27 = vsel %vm2032_vm7, %v2043_v7, %v5915_v18  ;;  %v6029_v45 = vsel %vm2032_vm7, %v2047_v37, %v5923_v34  ;;  %v2059_v18 = vrot.slane %v2031_v14, %v5339_v10 }
 0xd1a   :  { %v2129_v19 = vmul.f32 %v2092_v36, %v6016_v28  ;;  %v2130_v46 = vmul.f32 %v2096_v6, %v6021_v27  ;;  %v6039_v11 = vsel %vm2032_vm7, %v2051_v41, %v5933_v54  ;;  %v2131_v34 = vmul.f32 %v2100_v25, %v6029_v45 }
 0xd1b   :  { %v6048_v56 = vsel %vm2032_vm7, %v2055_v51, %v5942_v43  ;;  %v2132_v35 = vmul.f32 %v2104_v62, %v6039_v11  ;;  %v6057_v60 = vsel %vm2032_vm7, %v2059_v18, %v5951_v48  ;;  %v6065_v26 = vsel %vm2032_vm7, %v2063_v32, %v5959_v53 }
 0xd1c   :  { %v2137_v33 = vadd.f32 %v2130_v46, %v2129_v19  ;;  %v2133_v63 = vmul.f32 %v2108_v52, %v6048_v56  ;;  %v2134_v44 = vmul.f32 %v2112_v61, %v6057_v60  ;;  %v6073_v48 = vsel %vm2032_vm7, %v2067_v57, %v5967_v40 }
 0xd1d   :  { %v2135_v8 = vmul.f32 %v2116_v22, %v6065_v26  ;;  %v2136_v30 = vmul.f32 %v2120_v42, %v6073_v48 }
 0xd1e   :  { %v2138_v54 = vadd.f32 %v2137_v33, %v2131_v34 }
 0xd20   :  { %v2139_v43 = vadd.f32 %v2138_v54, %v2132_v35 }
 0xd22   :  { %v2140_v50 = vadd.f32 %v2139_v43, %v2133_v63 }
 0xd24   :  { %v2141_v13 = vadd.f32 %v2140_v50, %v2134_v44 }
 0xd26   :  { %v2142_v17 = vadd.f32 %v2141_v13, %v2135_v8 }
 0xd28   :  { %v2143_v38 = vadd.f32 %v2142_v17, %v2136_v30 }
 0xd2a   :  { %2144 = vadd.xlane.f32.xlu0 %v2143_v38 }
 0xdb3   :  { %v2145_v53 = vpop.xlane.xlu0 %2144 }
 0xdb4   :  { %v2146_v59 = vmul.f32 %v2145_v53, %v6016_v28  ;;  %v2147_v39 = vmul.f32 %v2145_v53, %v6021_v27  ;;  %v2148_v20 = vmul.f32 %v2145_v53, %v6029_v45  ;;  %v2149_v24 = vmul.f32 %v2145_v53, %v6039_v11 }
 0xdb5   :  { %v2150_v40 = vmul.f32 %v2145_v53, %v6048_v56  ;;  %v2151_v58 = vmul.f32 %v2145_v53, %v6057_v60  ;;  %v2152_v47 = vmul.f32 %v2145_v53, %v6065_v26  ;;  %v2153_v12 = vmul.f32 %v2145_v53, %v6073_v48 }
 0xdb6   :  { %v2154_v55 = vrot.slane %v2146_v59, 4  ;;  %v2160_v29 = vrot.slane %v2147_v39, 4  ;;  %v2166_v31 = vrot.slane %v2148_v20, 4  ;;  %v2172_v14 = vrot.slane %v2149_v24, 4 }
 0xdb7   :  { %v2178_v36 = vrot.slane %v2150_v40, 4  ;;  %v2184_v23 = vrot.slane %v2151_v58, 4  ;;  %v2190_v7 = vrot.slane %v2152_v47, 4  ;;  %v2196_v37 = vrot.slane %v2153_v12, 4 }
 0xdb8   :  { %v2155_v6 = vadd.f32 %v2154_v55, %v2146_v59  ;;  %v2161_v41 = vadd.f32 %v2160_v29, %v2147_v39  ;;  %v2167_v25 = vadd.f32 %v2166_v31, %v2148_v20  ;;  %v2173_v51 = vadd.f32 %v2172_v14, %v2149_v24 }
 0xdb9   :  { %v2179_v62 = vadd.f32 %v2178_v36, %v2150_v40  ;;  %v2185_v19 = vadd.f32 %v2184_v23, %v2151_v58  ;;  %v2191_v46 = vadd.f32 %v2190_v7, %v2152_v47  ;;  %v2197_v18 = vadd.f32 %v2196_v37, %v2153_v12 }
 0xdba   :  { %v2156_v52 = vrot.slane %v2155_v6, 2  ;;  %v2162_v34 = vrot.slane %v2161_v41, 2  ;;  %v2168_v33 = vrot.slane %v2167_v25, 2  ;;  %v2174_v32 = vrot.slane %v2173_v51, 2 }
 0xdbb   :  { %v2180_v61 = vrot.slane %v2179_v62, 2  ;;  %v2186_v35 = vrot.slane %v2185_v19, 2  ;;  %v2192_v54 = vrot.slane %v2191_v46, 2  ;;  %v2198_v57 = vrot.slane %v2197_v18, 2 }
 0xdbc   :  { %v2157_v22 = vadd.f32 %v2156_v52, %v2155_v6  ;;  %v2163_v63 = vadd.f32 %v2162_v34, %v2161_v41  ;;  %v2169_v43 = vadd.f32 %v2168_v33, %v2167_v25  ;;  %v2175_v42 = vadd.f32 %v2174_v32, %v2173_v51 }
 0xdbd   :  { %v2181_v44 = vadd.f32 %v2180_v61, %v2179_v62  ;;  %v2187_v50 = vadd.f32 %v2186_v35, %v2185_v19  ;;  %v2193_v8 = vadd.f32 %v2192_v54, %v2191_v46  ;;  %v2199_v13 = vadd.f32 %v2198_v57, %v2197_v18 }
 0xdbe   :  { %v2158_v30 = vrot.slane %v2157_v22, 1  ;;  %v2164_v17 = vrot.slane %v2163_v63, 1  ;;  %v2170_v38 = vrot.slane %v2169_v43, 1  ;;  %v2176_v53 = vrot.slane %v2175_v42, 1 }
 0xdbf   :  { %v2182_v59 = vrot.slane %v2181_v44, 1  ;;  %v2188_v39 = vrot.slane %v2187_v50, 1  ;;  %v2194_v20 = vrot.slane %v2193_v8, 1  ;;  %v2200_v24 = vrot.slane %v2199_v13, 1 }
 0xdc0   :  { %v2159_v40 = vadd.f32 %v2158_v30, %v2157_v22  ;;  %v2165_v58 = vadd.f32 %v2164_v17, %v2163_v63  ;;  %v2171_v47 = vadd.f32 %v2170_v38, %v2169_v43  ;;  %v2177_v12 = vadd.f32 %v2176_v53, %v2175_v42 }
 0xdc1   :  { %v2183_v55 = vadd.f32 %v2182_v59, %v2181_v44  ;;  %v2189_v29 = vadd.f32 %v2188_v39, %v2187_v50  ;;  %v2195_v31 = vadd.f32 %v2194_v20, %v2193_v8  ;;  %v2201_v14 = vadd.f32 %v2200_v24, %v2199_v13 }
 0xdc2   :  { %v2210_v36 = vcombine.low %v2159_v40, %v2165_v58  ;;  %v2211_v23 = vcombine.low %v2171_v47, %v2177_v12 }
 0xdc3   :  { %v2212_v7 = vcombine.low %v2183_v55, %v2189_v29  ;;  %v2213_v37 = vcombine.low %v2195_v31, %v2201_v14  ;;  %v3596_v14 = vld [vmem:[#allocation11 + $0x1f8] sm:$0xff] }
 0xdc4   :  { %v2220_v6 = vrot.slane %v2210_v36, %v5439_v16  ;;  %v2227_v41 = vrot.slane %v2211_v23, %v5439_v16  ;;  %4836 = vmatprep.subr.mxu1 %v3596_v14  ;;  %v3564_v36 = vld [vmem:[#allocation11 + $0xf8] sm:$0xff]  ;;  %v3538_v14 = vld [vmem:[#allocation11 + $0x28] sm:$0xff] }
 0xdc5   :  { %v2234_v25 = vrot.slane %v2212_v7, %v5439_v16  ;;  %v2241_v51 = vrot.slane %v2213_v37, %v5439_v16  ;;  %v3580_v23 = vld [vmem:[#allocation11 + $0x178] sm:$0xff]  ;;  %4795 = vmatprep.subr.mxu0 %v3564_v36  ;;  %v3595_v37 = vld [vmem:[#allocation11 + $0x1f0] sm:$0xff]  ;;  %v3585_v36 = vld [vmem:[#allocation11 + $0x1a0] sm:$0xff] }
 0xdc6   :  { %v2242_v62 = vcombine.low %v2220_v6, %v2227_v41  ;;  %4837 = vmatpush3.msra.mxu1 %v3580_v23  ;;  %v3548_v7 = vld [vmem:[#allocation11 + $0x78] sm:$0xff]  ;;  %v3563_v6 = vld [vmem:[#allocation11 + $0xf0] sm:$0xff]  ;;  %v3553_v23 = vld [vmem:[#allocation11 + $0xa0] sm:$0xff] }
 0xdc7   :  { %v2243_v19 = vcombine.low %v2234_v25, %v2241_v51  ;;  %4796 = vmatpush3.msra.mxu0 %v3548_v7  ;;  %4838 = vmatprep.subr.mxu1 %v3595_v37  ;;  %v3579_v41 = vld [vmem:[#allocation11 + $0x170] sm:$0xff]  ;;  %v3594_v51 = vld [vmem:[#allocation11 + $0x1e8] sm:$0xff]  ;;  %v3569_v7 = vld [vmem:[#allocation11 + $0x120] sm:$0xff] }
 0xdc8   :  { %v2250_v46 = vrot.slane %v2242_v62, %v5439_v16  ;;  %4797 = vmatprep.subr.mxu0 %v3563_v6  ;;  %4839 = vmatpush3.msra.mxu1 %v3579_v41  ;;  %v3547_v25 = vld [vmem:[#allocation11 + $0x70] sm:$0xff]  ;;  %v3562_v62 = vld [vmem:[#allocation11 + $0xe8] sm:$0xff]  ;;  %v3537_v37 = vld [vmem:[#allocation11 + $0x20] sm:$0xff] }
 0xdc9   :  { %v2257_v18 = vrot.slane %v2243_v19, %v5439_v16  ;;  %4798 = vmatpush3.msra.mxu0 %v3547_v25  ;;  %4840 = vmatprep.subr.mxu1 %v3594_v51  ;;  %v3578_v19 = vld [vmem:[#allocation11 + $0x168] sm:$0xff]  ;;  %v3584_v6 = vld [vmem:[#allocation11 + $0x198] sm:$0xff]  ;;  %v2400_v41 = vld [vmem:[#allocation5] sm:$0xff] }
 0xdca   :  { %4799 = vmatprep.subr.mxu0 %v3562_v62  ;;  %4841 = vmatpush3.msra.mxu1 %v3578_v19  ;;  %v3552_v25 = vld [vmem:[#allocation11 + $0x98] sm:$0xff]  ;;  %v2402_v62 = vld [vmem:[#allocation8] sm:$0xff] }
 0xdcb   :  { %v2258_v52 = vcombine.low %v2250_v46, %v2257_v18  ;;  %v3546_v46 = vld [vmem:[#allocation11 + $0x68] sm:$0xff]  ;;  %v3593_v18 = vld [vmem:[#allocation11 + $0x1e0] sm:$0xff]  ;;  %v3568_v51 = vld [vmem:[#allocation11 + $0x118] sm:$0xff] }
 0xdcc   :  { %4800 = vmatpush3.msra.mxu0 %v3546_v46  ;;  %4842 = vmatprep.subr.mxu1 %v3593_v18  ;;  %v3536_v46 = vld [vmem:[#allocation11 + $0x18] sm:$0xff]  ;;  %v3583_v18 = vld [vmem:[#allocation11 + $0x190] sm:$0xff] }
 0xdcd   :  { %v6092_v34 = vsub.f32 %v6002_v49, %v2258_v52  ;;  %v3561_v52 = vld [vmem:[#allocation11 + $0xe0] sm:$0xff] }
 0xdce   :  { %4801 = vmatprep.subr.mxu0 %v3561_v52  ;;  %v6112_v52 = vadd.f32 %v2402_v62, %v2400_v41 }
 0xdcf   :  { %v2261_v33 = vmul.f32 %v6092_v34, %v6092_v34 }
 0xdd1   :  { %v2266_v32 = vrot.slane %v2261_v33, %v5324_v2  ;;  %v2270_v61 = vrot.slane %v2261_v33, %v5327_v3  ;;  %v2274_v35 = vrot.slane %v2261_v33, %v5330_v4  ;;  %v2278_v54 = vrot.slane %v2261_v33, %v5333_v5 }
 0xdd2   :  { %v2282_v63 = vrot.slane %v2261_v33, %v5336_v9  ;;  %v2286_v42 = vrot.slane %v2261_v33, %v5339_v10  ;;  %v2290_v8 = vrot.slane %v2261_v33, %v5346_v15  ;;  %v2294_v17 = vrot.slane %v2261_v33, %v5351_v21  ;;  %v3577_v33 = vld [vmem:[#allocation11 + $0x160] sm:$0xff] }
 0xdd3   :  { %v2303_v57 = vsel %vm202_vm0, %v2266_v32, 0.0  ;;  %v2304_v22 = vsel %vm202_vm0, %v2270_v61, 0.0  ;;  %v2306_v49 = vsel %vm202_vm0, %v2274_v35, 0.0  ;;  %v2308_v44 = vsel %vm202_vm0, %v2278_v54, 0.0  ;;  %v3545_v32 = vld [vmem:[#allocation11 + $0x60] sm:$0xff]  ;;  %v3592_v61 = vld [vmem:[#allocation11 + $0x1d8] sm:$0xff]  ;;  %4843 = vmatpush3.msra.mxu1 %v3577_v33 }
 0xdd4   :  { %v2305_v16 = vadd.f32 %v2304_v22, %v2303_v57  ;;  %v2310_v13 = vsel %vm202_vm0, %v2282_v63, 0.0  ;;  %v2312_v38 = vsel %vm202_vm0, %v2286_v42, 0.0  ;;  %v2314_v59 = vsel %vm202_vm0, %v2290_v8, 0.0  ;;  %v3560_v35 = vld [vmem:[#allocation11 + $0xd8] sm:$0xff]  ;;  %v3591_v22 = vld [vmem:[#allocation11 + $0x1d0] sm:$0xff]  ;;  %4802 = vmatpush3.msra.mxu0 %v3545_v32  ;;  %4844 = vmatprep.subr.mxu1 %v3592_v61  ;;  %v3558_v42 = vld [vmem:[#allocation11 + $0xc8] sm:$0xff] }
 0xdd5   :  { %v2316_v20 = vsel %vm202_vm0, %v2294_v17, 0.0  ;;  %v3576_v54 = vld [vmem:[#allocation11 + $0x158] sm:$0xff]  ;;  %v3575_v63 = vld [vmem:[#allocation11 + $0x150] sm:$0xff]  ;;  %4803 = vmatprep.subr.mxu0 %v3560_v35  ;;  %v3589_v8 = vld [vmem:[#allocation11 + $0x1c0] sm:$0xff] }
 0xdd6   :  { %v2307_v43 = vadd.f32 %v2306_v49, %v2305_v16  ;;  %v3544_v57 = vld [vmem:[#allocation11 + $0x58] sm:$0xff]  ;;  %v3559_v16 = vld [vmem:[#allocation11 + $0xd0] sm:$0xff]  ;;  %4845 = vmatpush3.msra.mxu1 %v3576_v54  ;;  %v3541_v17 = vld [vmem:[#allocation11 + $0x40] sm:$0xff]  ;;  %v2406_v54 = vmax.f32 %v6112_v52, 0.0 }
 0xdd7   :  { %v3543_v49 = vld [vmem:[#allocation11 + $0x50] sm:$0xff]  ;;  %4804 = vmatpush3.msra.mxu0 %v3544_v57  ;;  %4846 = vmatprep.subr.mxu1 %v3591_v22  ;;  %v3582_v35 = vld [vmem:[#allocation11 + $0x188] sm:$0xff] }
 0xdd8   :  { %v2309_v50 = vadd.f32 %v2308_v44, %v2307_v43  ;;  %v3590_v43 = vld [vmem:[#allocation11 + $0x1c8] sm:$0xff]  ;;  %4805 = vmatprep.subr.mxu0 %v3559_v16  ;;  %4847 = vmatpush3.msra.mxu1 %v3575_v63  ;;  %v3551_v33 = vld [vmem:[#allocation11 + $0x90] sm:$0xff] }
 0xdd9   :  { %v3574_v44 = vld [vmem:[#allocation11 + $0x148] sm:$0xff]  ;;  %4806 = vmatpush3.msra.mxu0 %v3543_v49  ;;  %4848 = vmatprep.subr.mxu1 %v3590_v43  ;;  %v3567_v32 = vld [vmem:[#allocation11 + $0x110] sm:$0xff]  ;;  %v3581_v49 = vld [vmem:[#allocation11 + $0x180] sm:$0xff]  ;;  %v2408_v43 = vmin.f32 %v2406_v54, 1.0 }
 0xdda   :  { %v2311_v30 = vadd.f32 %v2310_v13, %v2309_v50  ;;  %v3542_v50 = vld [vmem:[#allocation11 + $0x48] sm:$0xff]  ;;  %v3557_v13 = vld [vmem:[#allocation11 + $0xc0] sm:$0xff]  ;;  %4807 = vmatprep.subr.mxu0 %v3558_v42  ;;  %4849 = vmatpush3.msra.mxu1 %v3574_v44  ;;  %v3535_v61 = vld [vmem:[#allocation11 + $0x10] sm:$0xff] }
 0xddb   :  { %4808 = vmatpush3.msra.mxu0 %v3542_v50  ;;  %4850 = vmatprep.subr.mxu1 %v3589_v8  ;;  %v3550_v57 = vld [vmem:[#allocation11 + $0x88] sm:$0xff]  ;;  %v3549_v42 = vld [vmem:[#allocation11 + $0x80] sm:$0xff]  ;;  %v2412_v50 = vcombine.high %v2408_v43, %v2408_v43  ;;  %4757 = vst.sshfl [vmem:[#allocation2] sm:$0x3 pattern:$0x76325410] %v2408_v43 }
 0xddc   :  { %v2313_v53 = vadd.f32 %v2312_v38, %v2311_v30  ;;  %v3573_v30 = vld [vmem:[#allocation11 + $0x140] sm:$0xff]  ;;  %v3588_v38 = vld [vmem:[#allocation11 + $0x1b8] sm:$0xff]  ;;  %4809 = vmatprep.subr.mxu0 %v3557_v13  ;;  %v3566_v22 = vld [vmem:[#allocation11 + $0x108] sm:$0xff] }
 0xddd   :  { %4851 = vmatpush3.msra.mxu1 %v3573_v30  ;;  %4810 = vmatpush3.msra.mxu0 %v3541_v17  ;;  %v3534_v63 = vld [vmem:[#allocation11 + $0x8] sm:$0xff]  ;;  %v3565_v44 = vld [vmem:[#allocation11 + $0x100] sm:$0xff]  ;;  %v3660_v13 = vld [vmem:[#allocation11 + $0x3f8] sm:$0xff] }
 0xdde   :  { %v2315_v39 = vadd.f32 %v2314_v59, %v2313_v53  ;;  %v3556_v53 = vld [vmem:[#allocation11 + $0xb8] sm:$0xff]  ;;  %4852 = vmatprep.subr.mxu1 %v3588_v38  ;;  %v3533_v8 = vld [vmem:[#allocation11] sm:$0xff]  ;;  %4758 = vst.sshfl [vmem:[#allocation2 + $0x10] sm:$0x3 pattern:$0x76325410] %v2412_v50 }
 0xddf   :  { %v3572_v59 = vld [vmem:[#allocation11 + $0x138] sm:$0xff]  ;;  %4811 = vmatprep.subr.mxu0 %v3556_v53 }
 0xde0   :  { %v2317_v24 = vadd.f32 %v2316_v20, %v2315_v39  ;;  %v3540_v39 = vld [vmem:[#allocation11 + $0x38] sm:$0xff]  ;;  %v3587_v20 = vld [vmem:[#allocation11 + $0x1b0] sm:$0xff]  ;;  %4853 = vmatpush3.msra.mxu1 %v3572_v59  ;;  %v2401_v59 = vld [vmem:[#allocation5 + $0x8] sm:$0xff] }
 0xde1   :  { %4812 = vmatpush3.msra.mxu0 %v3540_v39  ;;  %4854 = vmatprep.subr.mxu1 %v3587_v20  ;;  %v3628_v17 = vld [vmem:[#allocation11 + $0x2f8] sm:$0xff] }
 0xde2   :  { %2318 = vadd.xlane.f32.xlu1 %v2317_v24  ;;  %v3555_v24 = vld [vmem:[#allocation11 + $0xb0] sm:$0xff]  ;;  %v2403_v39 = vld [vmem:[#allocation8 + $0x8] sm:$0xff] }
 0xde3   :  { %4813 = vmatprep.subr.mxu0 %v3555_v24  ;;  %v6120_v20 = vadd.f32 %v2403_v39, %v2401_v59 }
 0xe6b   :  { %v2319_v40 = vpop.xlane.xlu1 %2318 }
 0xe6c   :  { %v2320_v58 = vrot.slane %v2319_v40, 4 }
 0xe6e   :  { %v2321_v47 = vadd.f32 %v2320_v58, %v2319_v40  ;;  %v3571_v40 = vld [vmem:[#allocation11 + $0x130] sm:$0xff] }
 0xe6f   :  { %v3539_v58 = vld [vmem:[#allocation11 + $0x30] sm:$0xff]  ;;  %4855 = vmatpush3.msra.mxu1 %v3571_v40  ;;  %v2407_v40 = vmax.f32 %v6120_v20, 0.0 }
 0xe70   :  { %v2322_v12 = vrot.slane %v2321_v47, 2  ;;  %4814 = vmatpush3.msra.mxu0 %v3539_v58 }
 0xe71   :  { %v2409_v58 = vmin.f32 %v2407_v40, 1.0 }
 0xe72   :  { %v2323_v55 = vadd.f32 %v2322_v12, %v2321_v47  ;;  %v3586_v47 = vld [vmem:[#allocation11 + $0x1a8] sm:$0xff] }
 0xe73   :  { %v3554_v12 = vld [vmem:[#allocation11 + $0xa8] sm:$0xff]  ;;  %4856 = vmatprep.subr.mxu1 %v3586_v47  ;;  %v2429_v47 = vcombine.high %v2409_v58, %v2409_v58  ;;  %4759 = vst.sshfl [vmem:[#allocation2 + $0x20] sm:$0x3 pattern:$0x76325410] %v2409_v58 }
 0xe74   :  { %v2324_v29 = vrot.slane %v2323_v55, 1  ;;  %4815 = vmatprep.subr.mxu0 %v3554_v12 }
 0xe75   :  { %4816 = vmatpush3.msra.mxu0 %v3538_v14  ;;  %4760 = vst.sshfl [vmem:[#allocation2 + $0x30] sm:$0x3 pattern:$0x76325410] %v2429_v47 }
 0xe76   :  { %v2325_v31 = vadd.f32 %v2324_v29, %v2323_v55  ;;  %v3570_v55 = vld [vmem:[#allocation11 + $0x128] sm:$0xff]  ;;  %v5254_v29 = vmov 1983009808   ;;  %4817 = vmatprep.subr.mxu0 %v3553_v23 }
 0xe77   :  { %4857 = vmatpush3.msra.mxu1 %v3570_v55  ;;  %4818 = vmatpush3.msra.mxu0 %v3537_v37 }
 0xe78   :  { %5079 = vpush %v2325_v31  ;;  %v2414_v31 = vunpack.c.l.s4 %v5254_v29  ;;  %4858 = vmatprep.subr.mxu1 %v3585_v36  ;;  %4819 = vmatprep.subr.mxu0 %v3552_v25 }
 0xe79   :  { %4859 = vmatpush3.msra.mxu1 %v3569_v7  ;;  %4820 = vmatpush3.msra.mxu0 %v3536_v46 }
 0xe7a   :  { %v2415_v19 = vunpack.c.0.s8 %v2414_v31  ;;  %4860 = vmatprep.subr.mxu1 %v3584_v6  ;;  %4821 = vmatprep.subr.mxu0 %v3551_v33 }
 0xe7b   :  { %4861 = vmatpush3.msra.mxu1 %v3568_v51  ;;  %4822 = vmatpush3.msra.mxu0 %v3535_v61 }
 0xe7c   :  { %4862 = vmatprep.subr.mxu1 %v3583_v18  ;;  %v6116_v16 = vsub.s32 %v2415_v19, %v5321_v1  ;;  %4823 = vmatprep.subr.mxu0 %v3550_v57 }
 0xe7d   :  { %4863 = vmatpush3.msra.mxu1 %v3567_v32  ;;  %4824 = vmatpush3.msra.mxu0 %v3534_v63 }
 0xe7e   :  { %4864 = vmatprep.subr.mxu1 %v3582_v35  ;;  %v2419_v30 = vrot.slane %v2408_v43, %v6116_v16  ;;  %4825 = vmatprep.subr.mxu0 %v3549_v42  ;;  %v2426_v38 = vrot.slane %v2412_v50, %v6116_v16  ;;  %v2443_v12 = vrot.slane %v2429_v47, %v6116_v16 }
 0xe7f   :  { %4865 = vmatpush3.msra.mxu1 %v3566_v22  ;;  %4826 = vmatpush3.msra.mxu0 %v3533_v8  ;;  %v2436_v31 = vrot.slane %v2409_v58, %v6116_v16 }
 0xe80   :  { %4866 = vmatprep.subr.mxu1 %v3581_v49  ;;  %v2427_v53 = vcombine.high %v2419_v30, %v2419_v30  ;;  %v2428_v24 = vcombine.high %v2426_v38, %v2426_v38  ;;  %4877 = vmatprep.subr.mxu0 %v3628_v17  ;;  %v2445_v29 = vcombine.high %v2443_v12, %v2443_v12 }
 0xe81   :  { %4867 = vmatpush3.msra.mxu1 %v3565_v44  ;;  %v2444_v36 = vcombine.high %v2436_v31, %v2436_v31 }
 0xe82   :  { %4918 = vmatprep.subr.mxu1 %v3660_v13  ;;  %2455 = vst [vmem:[#allocation2 + $0x8] sm:$0x3] %v2427_v53  ;;  %2457 = vst [vmem:[#allocation2 + $0x18] sm:$0x3] %v2428_v24 }
 0xe83   :  { %2461 = vst [vmem:[#allocation2 + $0x38] sm:$0x3] %v2445_v29  ;;  %2459 = vst [vmem:[#allocation2 + $0x28] sm:$0x3] %v2444_v36 }
 0xea9   :  { %s5080_s14 = spop %5079 }
 0xeaa   :  { %v2327_v55 = vstv %s5080_s14 }
 0xeab   :  { %5112 = vrsqrt.f32 %v2327_v55 }
 0xeb8   :  { %v5113_v14 = vpop.eup %5112 }
 0xeb9   :  { %5081 = vpush %v5113_v14 }
 0xeea   :  { %s5082_s15 = spop %5081 }
 0xeeb   :  { %v2330_v23 = vstv %s5082_s15 }
 0xeec   :  { %v2331_v7 = vmul.f32 %v2330_v23, %v6092_v34 }
 0xeee   :  { %v2339_v37 = vrot.slane %v2331_v7, %v5324_v2  ;;  %v2343_v6 = vrot.slane %v2331_v7, %v5327_v3  ;;  %v2347_v41 = vrot.slane %v2331_v7, %v5330_v4  ;;  %v2351_v25 = vrot.slane %v2331_v7, %v5333_v5 }
 0xeef   :  { %v2355_v51 = vrot.slane %v2331_v7, %v5336_v9  ;;  %v2359_v62 = vrot.slane %v2331_v7, %v5339_v10  ;;  %v2363_v19 = vrot.slane %v2331_v7, %v5346_v15  ;;  %v2367_v46 = vrot.slane %v2331_v7, %v5351_v21 }
 0xef0   :  { %v2376_v34 = vsel %vm2332_vm8, %v2339_v37, %v6016_v28  ;;  %v2377_v18 = vsel %vm2332_vm8, %v2343_v6, %v6021_v27  ;;  %v2378_v33 = vsel %vm2332_vm8, %v2347_v41, %v6029_v45  ;;  %v2379_v32 = vsel %vm2332_vm8, %v2351_v25, %v6039_v11 }
 0xef1   :  { %v2380_v61 = vsel %vm2332_vm8, %v2355_v51, %v6048_v56  ;;  %v2381_v28 = vsel %vm2332_vm8, %v2359_v62, %v6057_v60  ;;  %v2382_v27 = vsel %vm2332_vm8, %v2363_v19, %v6065_v26  ;;  %v2383_v45 = vsel %vm2332_vm8, %v2367_v46, %v6073_v48 }
 0xef2   :  { %v2384_v35 = vmul.f32 16.0, %v2376_v34  ;;  %v2385_v54 = vmul.f32 16.0, %v2377_v18  ;;  %v2386_v57 = vmul.f32 16.0, %v2378_v33  ;;  %v2387_v11 = vmul.f32 16.0, %v2379_v32 }
 0xef3   :  { %v2388_v22 = vmul.f32 16.0, %v2380_v61  ;;  %v2389_v63 = vmul.f32 16.0, %v2381_v28  ;;  %v2390_v49 = vmul.f32 16.0, %v2382_v27  ;;  %v2391_v56 = vmul.f32 16.0, %v2383_v45 }
 0xef4   :  { %2392 = vst [vmem:[#allocation3] sm:$0xff] %v2384_v35  ;;  %2393 = vst [vmem:[#allocation3 + $0x8] sm:$0xff] %v2385_v54 }
 0xef5   :  { %2394 = vst [vmem:[#allocation3 + $0x10] sm:$0xff] %v2386_v57  ;;  %2395 = vst [vmem:[#allocation3 + $0x18] sm:$0xff] %v2387_v11 }
 0xef6   :  { %2396 = vst [vmem:[#allocation3 + $0x20] sm:$0xff] %v2388_v22  ;;  %2397 = vst [vmem:[#allocation3 + $0x28] sm:$0xff] %v2389_v63 }
 0xef7   :  { %2398 = vst [vmem:[#allocation3 + $0x30] sm:$0xff] %v2390_v49  ;;  %2399 = vst [vmem:[#allocation3 + $0x38] sm:$0xff] %v2391_v56 }
 0xefc   :  { %v2462_v60 = vld [vmem:[#allocation3] ss:$8 sm:$0xf]  ;;  %v2593_v26 = vld [vmem:[#allocation3 + $0x1] ss:$8 sm:$0xf] }
 0xefd   :  { %v2724_v44 = vld [vmem:[#allocation3 + $0x2] ss:$8 sm:$0xf]  ;;  %v2855_v13 = vld [vmem:[#allocation3 + $0x3] ss:$8 sm:$0xf] }
 0xefe   :  { %v2463_v1 = vld [vmem:[#allocation3] ss:$8 sm:$0xf0]  ;;  %v2594_v48 = vld [vmem:[#allocation3 + $0x1] ss:$8 sm:$0xf0] }
 0xeff   :  { %v6159_v43 = vor.u32 %v2463_v1, %v2462_v60  ;;  %v6161_v42 = vor.u32 %v2594_v48, %v2593_v26  ;;  %v2725_v50 = vld [vmem:[#allocation3 + $0x2] ss:$8 sm:$0xf0]  ;;  %v2856_v30 = vld [vmem:[#allocation3 + $0x3] ss:$8 sm:$0xf0] }
 0xf00   :  { %v6163_v8 = vor.u32 %v2725_v50, %v2724_v44  ;;  %v6165_v17 = vor.u32 %v2856_v30, %v2855_v13  ;;  %v2986_v38 = vld [vmem:[#allocation3 + $0x4] ss:$8 sm:$0xf]  ;;  %v3117_v58 = vld [vmem:[#allocation3 + $0x5] ss:$8 sm:$0xf] }
 0xf01   :  { %v2987_v53 = vld [vmem:[#allocation3 + $0x4] ss:$8 sm:$0xf0]  ;;  %v2469_v59 = vrot.slane %v6159_v43, %v5324_v2  ;;  %v2473_v39 = vrot.slane %v6159_v43, %v5327_v3  ;;  %v2477_v24 = vrot.slane %v6159_v43, %v5330_v4  ;;  %v3118_v47 = vld [vmem:[#allocation3 + $0x5] ss:$8 sm:$0xf0]  ;;  %v2481_v12 = vrot.slane %v6159_v43, %v5333_v5 }
 0xf02   :  { %v6173_v40 = vor.u32 %v2987_v53, %v2986_v38  ;;  %v2600_v55 = vrot.slane %v6161_v42, %v5324_v2  ;;  %v2604_v29 = vrot.slane %v6161_v42, %v5327_v3  ;;  %v6181_v31 = vor.u32 %v3118_v47, %v3117_v58  ;;  %v3248_v14 = vld [vmem:[#allocation3 + $0x6] ss:$8 sm:$0xf]  ;;  %v3379_v41 = vld [vmem:[#allocation3 + $0x7] ss:$8 sm:$0xf] }
 0xf03   :  { %v3249_v36 = vld [vmem:[#allocation3 + $0x6] ss:$8 sm:$0xf0]  ;;  %v2498_v23 = vcombine.low %v2469_v59, %v2473_v39  ;;  %v2608_v7 = vrot.slane %v6161_v42, %v5330_v4  ;;  %v2612_v37 = vrot.slane %v6161_v42, %v5333_v5  ;;  %v3380_v25 = vld [vmem:[#allocation3 + $0x7] ss:$8 sm:$0xf0]  ;;  %v2499_v51 = vcombine.low %v2477_v24, %v2481_v12 }
 0xf04   :  { %v6187_v6 = vor.u32 %v3249_v36, %v3248_v14  ;;  %v2629_v62 = vcombine.low %v2600_v55, %v2604_v29  ;;  %v2731_v19 = vrot.slane %v6163_v8, %v5324_v2  ;;  %v6191_v46 = vor.u32 %v3380_v25, %v3379_v41 }
 0xf05   :  { %v2506_v34 = vrot.slane %v2498_v23, %v6116_v16  ;;  %v2630_v18 = vcombine.low %v2608_v7, %v2612_v37  ;;  %v2735_v33 = vrot.slane %v6163_v8, %v5327_v3  ;;  %v2513_v32 = vrot.slane %v2499_v51, %v6116_v16 }
 0xf06   :  { %v2637_v61 = vrot.slane %v2629_v62, %v6116_v16  ;;  %v2739_v28 = vrot.slane %v6163_v8, %v5330_v4  ;;  %v2743_v27 = vrot.slane %v6163_v8, %v5333_v5  ;;  %v2862_v54 = vrot.slane %v6165_v17, %v5324_v2 }
 0xf07   :  { %v2644_v45 = vrot.slane %v2630_v18, %v6116_v16  ;;  %v2760_v35 = vcombine.low %v2731_v19, %v2735_v33  ;;  %v2866_v57 = vrot.slane %v6165_v17, %v5327_v3  ;;  %v2514_v11 = vcombine.low %v2506_v34, %v2513_v32 }
 0xf08   :  { %v2761_v22 = vcombine.low %v2739_v28, %v2743_v27  ;;  %v2870_v63 = vrot.slane %v6165_v17, %v5330_v4  ;;  %v2874_v49 = vrot.slane %v6165_v17, %v5333_v5  ;;  %v2993_v1 = vrot.slane %v6173_v40, %v5324_v2 }
 0xf09   :  { %v2645_v56 = vcombine.low %v2637_v61, %v2644_v45  ;;  %v2768_v60 = vrot.slane %v2760_v35, %v6116_v16  ;;  %v2891_v26 = vcombine.low %v2862_v54, %v2866_v57  ;;  %v2534_v48 = vadd.f32 %v2514_v11, %v6112_v52 }
 0xf0a   :  { %v2775_v44 = vrot.slane %v2761_v22, %v6116_v16  ;;  %v2892_v50 = vcombine.low %v2870_v63, %v2874_v49  ;;  %v2997_v13 = vrot.slane %v6173_v40, %v5327_v3  ;;  %v3001_v53 = vrot.slane %v6173_v40, %v5330_v4 }
 0xf0b   :  { %v2665_v30 = vadd.f32 %v2645_v56, %v6112_v52  ;;  %v2899_v38 = vrot.slane %v2891_v26, %v6116_v16  ;;  %v3005_v59 = vrot.slane %v6173_v40, %v5333_v5  ;;  %v2536_v39 = vmax.f32 %v2534_v48, 0.0 }
 0xf0c   :  { %v2776_v24 = vcombine.low %v2768_v60, %v2775_v44  ;;  %v2906_v58 = vrot.slane %v2892_v50, %v6116_v16  ;;  %v3022_v47 = vcombine.low %v2993_v1, %v2997_v13  ;;  %v3124_v29 = vrot.slane %v6181_v31, %v5324_v2 }
 0xf0d   :  { %v2667_v12 = vmax.f32 %v2665_v30, 0.0  ;;  %v3023_v55 = vcombine.low %v3001_v53, %v3005_v59  ;;  %v3128_v14 = vrot.slane %v6181_v31, %v5327_v3  ;;  %v2538_v36 = vmin.f32 %v2536_v39, 1.0 }
 0xf0e   :  { %v2796_v23 = vadd.f32 %v2776_v24, %v6112_v52  ;;  %v2907_v7 = vcombine.low %v2899_v38, %v2906_v58  ;;  %v3030_v37 = vrot.slane %v3022_v47, %v6116_v16  ;;  %v3132_v51 = vrot.slane %v6181_v31, %v5330_v4 }
 0xf0f   :  { %v2669_v41 = vmin.f32 %v2667_v12, 1.0  ;;  %v3037_v25 = vrot.slane %v3023_v55, %v6116_v16  ;;  %v3136_v62 = vrot.slane %v6181_v31, %v5333_v5  ;;  %v2556_v19 = vrot.slane %v2538_v36, %v6116_v16  ;;  %4762 = vst.sshfl [vmem:[#allocation2 + $0x10] sm:$0x30 pattern:$0x76325410] %v2538_v36 }
 0xf10   :  { %v2798_v34 = vmax.f32 %v2796_v23, 0.0  ;;  %v2542_v18 = vcombine.low %v2538_v36, %v2538_v36  ;;  %v2927_v33 = vadd.f32 %v2907_v7, %v6112_v52  ;;  %v3153_v27 = vcombine.low %v3124_v29, %v3128_v14 }
 0xf11   :  { %v2673_v32 = vcombine.high %v2669_v41, %v2669_v41  ;;  %4765 = vst.sshfl [vmem:[#allocation2 + $0x8] sm:$0xc pattern:$0x76325410] %v2669_v41  ;;  %v2680_v61 = vrot.slane %v2669_v41, %v6116_v16  ;;  %v3038_v28 = vcombine.low %v3030_v37, %v3037_v25  ;;  %v2558_v45 = vcombine.high %v2556_v19, %v2556_v19 }
 0xf12   :  { %v2800_v35 = vmin.f32 %v2798_v34, 1.0  ;;  %v2549_v54 = vrot.slane %v2542_v18, %v6116_v16  ;;  %4761 = vst.sshfl [vmem:[#allocation2] sm:$0x30 pattern:$0x76325410] %v2542_v18  ;;  %v2929_v57 = vmax.f32 %v2927_v33, 0.0  ;;  %v3154_v49 = vcombine.low %v3132_v51, %v3136_v62 }
 0xf13   :  { %v2687_v11 = vrot.slane %v2673_v32, %v6116_v16  ;;  %4766 = vst.sshfl [vmem:[#allocation2 + $0x18] sm:$0xc pattern:$0x76325410] %v2673_v32  ;;  %v2688_v22 = vcombine.low %v2680_v61, %v2680_v61  ;;  %v3058_v63 = vadd.f32 %v3038_v28, %v6112_v52  ;;  %2587 = vst [vmem:[#allocation2 + $0x18] sm:$0xc] %v2558_v45 }
 0xf14   :  { %4770 = vst.sshfl [vmem:[#allocation2 + $0x18] sm:$0xc0 pattern:$0x76325410] %v2800_v35  ;;  %v2557_v56 = vcombine.high %v2549_v54, %v2549_v54  ;;  %v2804_v60 = vcombine.low %v2800_v35, %v2800_v35  ;;  %v2818_v26 = vrot.slane %v2800_v35, %v6116_v16  ;;  %v2931_v1 = vmin.f32 %v2929_v57, 1.0 }
 0xf15   :  { %v2689_v48 = vcombine.low %v2687_v11, %v2687_v11  ;;  %2715 = vst [vmem:[#allocation2] sm:$0x30] %v2688_v22  ;;  %v3060_v44 = vmax.f32 %v3058_v63, 0.0  ;;  %v3161_v50 = vrot.slane %v3153_v27, %v6116_v16  ;;  %v3168_v13 = vrot.slane %v3154_v49, %v6116_v16  ;;  %v3644_v63 = vld [vmem:[#allocation11 + $0x378] sm:$0xff] }
 0xf16   :  { %2585 = vst [vmem:[#allocation2 + $0x8] sm:$0xc] %v2557_v56  ;;  %v2811_v30 = vrot.slane %v2804_v60, %v6116_v16  ;;  %4769 = vst.sshfl [vmem:[#allocation2 + $0x8] sm:$0xc0 pattern:$0x76325410] %v2804_v60  ;;  %v2820_v38 = vcombine.low %v2818_v26, %v2818_v26  ;;  %v2935_v53 = vcombine.high %v2931_v1, %v2931_v1 }
 0xf17   :  { %v3255_v59 = vrot.slane %v6187_v6, %v5324_v2  ;;  %4773 = vst.sshfl [vmem:[#allocation2 + $0x40] sm:$0x3 pattern:$0x76325410] %v2931_v1  ;;  %2717 = vst [vmem:[#allocation2 + $0x10] sm:$0x30] %v2689_v48  ;;  %v3169_v24 = vcombine.low %v3161_v50, %v3168_v13  ;;  %v3259_v58 = vrot.slane %v6187_v6, %v5327_v3 }
 0xf18   :  { %v3062_v39 = vmin.f32 %v3060_v44, 1.0  ;;  %v3263_v47 = vrot.slane %v6187_v6, %v5330_v4  ;;  %2848 = vst [vmem:[#allocation2 + $0x10] sm:$0xc0] %v2820_v38  ;;  %v2819_v12 = vcombine.low %v2811_v30, %v2811_v30  ;;  %v2949_v55 = vrot.slane %v2935_v53, %v6116_v16  ;;  %v3659_v44 = vld [vmem:[#allocation11 + $0x3f0] sm:$0xff] }
 0xf19   :  { %v3267_v29 = vrot.slane %v6187_v6, %v5333_v5  ;;  %4774 = vst.sshfl [vmem:[#allocation2 + $0x50] sm:$0x3 pattern:$0x76325410] %v2935_v53  ;;  %v2942_v14 = vrot.slane %v2931_v1, %v6116_v16  ;;  %v3189_v23 = vadd.f32 %v3169_v24, %v6112_v52  ;;  %v3284_v7 = vcombine.low %v3255_v59, %v3259_v58  ;;  %v3612_v53 = vld [vmem:[#allocation11 + $0x278] sm:$0xff]  ;;  %v3643_v59 = vld [vmem:[#allocation11 + $0x370] sm:$0xff] }
 0xf1a   :  { %v3080_v36 = vrot.slane %v3062_v39, %v6116_v16  ;;  %4778 = vst.sshfl [vmem:[#allocation2 + $0x50] sm:$0x30 pattern:$0x76325410] %v3062_v39  ;;  %v3066_v37 = vcombine.low %v3062_v39, %v3062_v39  ;;  %2846 = vst [vmem:[#allocation2] sm:$0xc0] %v2819_v12  ;;  %v2951_v41 = vcombine.high %v2949_v55, %v2949_v55 }
 0xf1b   :  { %v3285_v25 = vcombine.low %v3263_v47, %v3267_v29  ;;  %v2950_v51 = vcombine.high %v2942_v14, %v2942_v14  ;;  %v3386_v62 = vrot.slane %v6191_v46, %v5324_v2  ;;  %v3512_v19 = vld [vmem:[#allocation2 + $0x18] sm:$0xff]  ;;  %v3191_v18 = vmax.f32 %v3189_v23, 0.0  ;;  %v3627_v12 = vld [vmem:[#allocation11 + $0x2f0] sm:$0xff]  ;;  %v3658_v55 = vld [vmem:[#allocation11 + $0x3e8] sm:$0xff] }
 0xf1c   :  { %v3082_v34 = vcombine.high %v3080_v36, %v3080_v36  ;;  %v3292_v33 = vrot.slane %v3284_v7, %v6116_v16  ;;  %v3073_v32 = vrot.slane %v3066_v37, %v6116_v16  ;;  %4777 = vst.sshfl [vmem:[#allocation2 + $0x40] sm:$0x30 pattern:$0x76325410] %v3066_v37  ;;  %3812 = vmatprep.mubr.f32.mxu1 %v3512_v19  ;;  %2980 = vst [vmem:[#allocation2 + $0x58] sm:$0x3] %v2951_v41 }
 0xf1d   :  { %v3299_v61 = vrot.slane %v3285_v25, %v6116_v16  ;;  %2978 = vst [vmem:[#allocation2 + $0x48] sm:$0x3] %v2950_v51  ;;  %v3390_v28 = vrot.slane %v6191_v46, %v5327_v3  ;;  %v3394_v27 = vrot.slane %v6191_v46, %v5330_v4  ;;  %v3398_v45 = vrot.slane %v6191_v46, %v5333_v5  ;;  %v3510_v35 = vld [vmem:[#allocation2 + $0x8] sm:$0xff]  ;;  %v3642_v37 = vld [vmem:[#allocation11 + $0x368] sm:$0xff] }
 0xf1e   :  { %3111 = vst [vmem:[#allocation2 + $0x58] sm:$0xc] %v3082_v34  ;;  %v3193_v54 = vmin.f32 %v3191_v18, 1.0  ;;  %v3081_v57 = vcombine.high %v3073_v32, %v3073_v32  ;;  %v2485_v11 = vrot.slane %v6159_v43, %v5336_v9  ;;  %v2489_v22 = vrot.slane %v6159_v43, %v5339_v10  ;;  %3732 = vmatprep.mubr.f32.mxu0 %v3510_v35  ;;  %v3611_v7 = vld [vmem:[#allocation11 + $0x270] sm:$0xff]  ;;  %v3626_v19 = vld [vmem:[#allocation11 + $0x2e8] sm:$0xff]  ;;  %v3657_v34 = vld [vmem:[#allocation11 + $0x3e0] sm:$0xff] }
 0xf1f   :  { %v3300_v49 = vcombine.low %v3292_v33, %v3299_v61  ;;  %v3415_v56 = vcombine.low %v3386_v62, %v3390_v28  ;;  %v3416_v60 = vcombine.low %v3394_v27, %v3398_v45  ;;  %v2493_v26 = vrot.slane %v6159_v43, %v5346_v15  ;;  %v3511_v1 = vld [vmem:[#allocation2 + $0x10] sm:$0xff]  ;;  %v3610_v28 = vld [vmem:[#allocation11 + $0x268] sm:$0xff]  ;;  %v3641_v27 = vld [vmem:[#allocation11 + $0x360] sm:$0xff] }
 0xf20   :  { %v3197_v48 = vcombine.high %v3193_v54, %v3193_v54  ;;  %4781 = vst.sshfl [vmem:[#allocation2 + $0x48] sm:$0xc pattern:$0x76325410] %v3193_v54  ;;  %3109 = vst [vmem:[#allocation2 + $0x48] sm:$0xc] %v3081_v57  ;;  %v3204_v50 = vrot.slane %v3193_v54, %v6116_v16  ;;  %v2497_v13 = vrot.slane %v6159_v43, %v5351_v21  ;;  %3813 = vmatmul.mubr.f32.vlgmr.msra.gmra.mxu1 %v3511_v1 }
 0xf21   :  { %v2515_v30 = vcombine.low %v2485_v11, %v2489_v22  ;;  %v3320_v38 = vadd.f32 %v3300_v49, %v6112_v52  ;;  %v3423_v39 = vrot.slane %v3415_v56, %v6116_v16  ;;  %v3430_v24 = vrot.slane %v3416_v60, %v6116_v16  ;;  %4919 = vmatpush3.msra.mxu1 %v3644_v63  ;;  %v3509_v47 = vld [vmem:[#allocation2] sm:$0xff]  ;;  %v3625_v54 = vld [vmem:[#allocation11 + $0x2e0] sm:$0xff]  ;;  %v3656_v57 = vld [vmem:[#allocation11 + $0x3d8] sm:$0xff] }
 0xf22   :  { %v2616_v58 = vrot.slane %v6161_v42, %v5336_v9  ;;  %4782 = vst.sshfl [vmem:[#allocation2 + $0x58] sm:$0xc pattern:$0x76325410] %v3197_v48  ;;  %v3211_v43 = vrot.slane %v3197_v48, %v6116_v16  ;;  %v3212_v29 = vcombine.low %v3204_v50, %v3204_v50  ;;  %v2516_v14 = vcombine.low %v2493_v26, %v2497_v13  ;;  %v3609_v56 = vld [vmem:[#allocation11 + $0x260] sm:$0xff]  ;;  %v3640_v60 = vld [vmem:[#allocation11 + $0x358] sm:$0xff] }
 0xf23   :  { %v2523_v36 = vrot.slane %v2515_v30, %v6116_v16  ;;  %3733 = vmatmul.mubr.f32.vlgmr.msra.gmra.mxu0 %v3509_v47  ;;  %v3322_v23 = vmax.f32 %v3320_v38, 0.0  ;;  %4920 = vmatprep.subr.mxu1 %v3659_v44  ;;  %v3431_v41 = vcombine.low %v3423_v39, %v3430_v24  ;;  %v2620_v25 = vrot.slane %v6161_v42, %v5339_v10  ;;  %v3624_v1 = vld [vmem:[#allocation11 + $0x2d8] sm:$0xff]  ;;  %v3655_v48 = vld [vmem:[#allocation11 + $0x3d0] sm:$0xff] }
 0xf24   :  { %v2624_v51 = vrot.slane %v6161_v42, %v5346_v15  ;;  %4878 = vmatpush3.msra.mxu0 %v3612_v53  ;;  %4921 = vmatpush3.msra.mxu1 %v3643_v59  ;;  %v3213_v62 = vcombine.low %v3211_v43, %v3211_v43  ;;  %3239 = vst [vmem:[#allocation2 + $0x40] sm:$0x30] %v3212_v29  ;;  %v3608_v59 = vld [vmem:[#allocation11 + $0x258] sm:$0xff]  ;;  %v3639_v24 = vld [vmem:[#allocation11 + $0x350] sm:$0xff]  ;;  %v3654_v43 = vld [vmem:[#allocation11 + $0x3c8] sm:$0xff] }
 0xf25   :  { %v2530_v18 = vrot.slane %v2516_v14, %v6116_v16  ;;  %v2628_v33 = vrot.slane %v6161_v42, %v5351_v21  ;;  %v3324_v32 = vmin.f32 %v3322_v23, 1.0  ;;  %4879 = vmatprep.subr.mxu0 %v3627_v12  ;;  %4922 = vmatprep.subr.mxu1 %v3658_v55  ;;  %v3451_v61 = vadd.f32 %v3431_v41, %v6112_v52  ;;  %v3623_v55 = vld [vmem:[#allocation11 + $0x2d0] sm:$0xff] }
 0xf26   :  { %v2646_v45 = vcombine.low %v2616_v58, %v2620_v25  ;;  %v2747_v35 = vrot.slane %v6163_v8, %v5336_v9  ;;  %4880 = vmatpush3.msra.mxu0 %v3611_v7  ;;  %3241 = vst [vmem:[#allocation2 + $0x50] sm:$0x30] %v3213_v62  ;;  %4923 = vmatpush3.msra.mxu1 %v3642_v37  ;;  %v3638_v7 = vld [vmem:[#allocation11 + $0x348] sm:$0xff] }
 0xf27   :  { %v2531_v11 = vcombine.low %v2523_v36, %v2530_v18  ;;  %v2647_v22 = vcombine.low %v2624_v51, %v2628_v33  ;;  %v2751_v42 = vrot.slane %v6163_v8, %v5339_v10  ;;  %4786 = vst.sshfl [vmem:[#allocation2 + $0x58] sm:$0xc0 pattern:$0x76325410] %v3324_v32  ;;  %v3328_v63 = vcombine.low %v3324_v32, %v3324_v32  ;;  %v3622_v62 = vld [vmem:[#allocation11 + $0x2c8] sm:$0xff]  ;;  %v3653_v33 = vld [vmem:[#allocation11 + $0x3c0] sm:$0xff] }
 0xf28   :  { %v3342_v52 = vrot.slane %v3324_v32, %v6116_v16  ;;  %4881 = vmatprep.subr.mxu0 %v3626_v19  ;;  %v3453_v49 = vmax.f32 %v3451_v61, 0.0  ;;  %4924 = vmatprep.subr.mxu1 %v3657_v34  ;;  %v2654_v26 = vrot.slane %v2646_v45, %v6116_v16  ;;  %v2755_v13 = vrot.slane %v6163_v8, %v5346_v15  ;;  %v3606_v18 = vld [vmem:[#allocation11 + $0x248] sm:$0xff] }
 0xf29   :  { %4882 = vmatpush3.msra.mxu0 %v3610_v28  ;;  %4925 = vmatpush3.msra.mxu1 %v3641_v27  ;;  %v2535_v44 = vadd.f32 %v2531_v11, %v6120_v20  ;;  %v2661_v50 = vrot.slane %v2647_v22, %v6116_v16  ;;  %4785 = vst.sshfl [vmem:[#allocation2 + $0x48] sm:$0xc0 pattern:$0x76325410] %v3328_v63  ;;  %v3637_v11 = vld [vmem:[#allocation11 + $0x340] sm:$0xff] }
 0xf2a   :  { %v3344_v30 = vcombine.low %v3342_v52, %v3342_v52  ;;  %v3335_v38 = vrot.slane %v3328_v63, %v6116_v16  ;;  %v3455_v53 = vmin.f32 %v3453_v49, 1.0  ;;  %4883 = vmatprep.subr.mxu0 %v3625_v54  ;;  %4926 = vmatprep.subr.mxu1 %v3656_v57  ;;  %v2759_v39 = vrot.slane %v6163_v8, %v5351_v21  ;;  %v3607_v8 = vld [vmem:[#allocation11 + $0x250] sm:$0xff]  ;;  %v3621_v54 = vld [vmem:[#allocation11 + $0x2c0] sm:$0xff] }
 0xf2b   :  { %4884 = vmatpush3.msra.mxu0 %v3609_v56  ;;  %4927 = vmatpush3.msra.mxu1 %v3640_v60  ;;  %v2537_v58 = vmax.f32 %v2535_v44, 0.0  ;;  %v2662_v47 = vcombine.low %v2654_v26, %v2661_v50  ;;  %v2777_v12 = vcombine.low %v2747_v35, %v2751_v42  ;;  %v2878_v29 = vrot.slane %v6165_v17, %v5336_v9  ;;  %v3605_v22 = vld [vmem:[#allocation11 + $0x240] sm:$0xff]  ;;  %v3636_v44 = vld [vmem:[#allocation11 + $0x338] sm:$0xff] }
 0xf2c   :  { %3372 = vst [vmem:[#allocation2 + $0x50] sm:$0xc0] %v3344_v30  ;;  %v3343_v14 = vcombine.low %v3335_v38, %v3335_v38  ;;  %v3459_v36 = vcombine.high %v3455_v53, %v3455_v53  ;;  %4789 = vst.sshfl [vmem:[#allocation2 + $0x80] sm:$0x3 pattern:$0x76325410] %v3455_v53  ;;  %v3466_v23 = vrot.slane %v3455_v53, %v6116_v16  ;;  %4885 = vmatprep.subr.mxu0 %v3624_v1 }
 0xf2d   :  { %4928 = vmatprep.subr.mxu1 %v3655_v48  ;;  %4886 = vmatpush3.msra.mxu0 %v3608_v59  ;;  %v2539_v37 = vmin.f32 %v2537_v58, 1.0  ;;  %v2666_v41 = vadd.f32 %v2662_v47, %v6120_v20  ;;  %v2778_v25 = vcombine.low %v2755_v13, %v2759_v39  ;;  %v2785_v51 = vrot.slane %v2777_v12, %v6116_v16  ;;  %v3652_v1 = vld [vmem:[#allocation11 + $0x3b8] sm:$0xff]  ;;  %v3651_v39 = vld [vmem:[#allocation11 + $0x3b0] sm:$0xff] }
 0xf2e   :  { %4929 = vmatpush3.msra.mxu1 %v3639_v24  ;;  %3370 = vst [vmem:[#allocation2 + $0x40] sm:$0xc0] %v3343_v14  ;;  %v3473_v19 = vrot.slane %v3459_v36, %v6116_v16  ;;  %4790 = vst.sshfl [vmem:[#allocation2 + $0x90] sm:$0x3 pattern:$0x76325410] %v3459_v36  ;;  %v3474_v34 = vcombine.high %v3466_v23, %v3466_v23  ;;  %4887 = vmatprep.subr.mxu0 %v3623_v55 }
 0xf2f   :  { %4930 = vmatprep.subr.mxu1 %v3654_v43  ;;  %v2882_v32 = vrot.slane %v6165_v17, %v5339_v10  ;;  %v3520_v61 = vld [vmem:[#allocation2 + $0x58] sm:$0xff]  ;;  %v2573_v28 = vrot.slane %v2539_v37, %v6116_v16  ;;  %v2668_v27 = vmax.f32 %v2666_v41, 0.0  ;;  %v2792_v45 = vrot.slane %v2778_v25, %v6116_v16  ;;  %4764 = vst.sshfl [vmem:[#allocation2 + $0x30] sm:$0x30 pattern:$0x76325410] %v2539_v37 }
 0xf30   :  { %v2559_v35 = vcombine.low %v2539_v37, %v2539_v37  ;;  %4888 = vmatpush3.msra.mxu0 %v3607_v8  ;;  %4931 = vmatpush3.msra.mxu1 %v3638_v7  ;;  %v3475_v57 = vcombine.high %v3473_v19, %v3473_v19  ;;  %3502 = vst [vmem:[#allocation2 + $0x88] sm:$0x3] %v3474_v34  ;;  %v3518_v52 = vld [vmem:[#allocation2 + $0x48] sm:$0xff]  ;;  %v3620_v48 = vld [vmem:[#allocation11 + $0x2b8] sm:$0xff]  ;;  %v3650_v37 = vld [vmem:[#allocation11 + $0x3a8] sm:$0xff] }
 0xf31   :  { %3817 = vmatprep.mubr.f32.mxu1 %v3520_v61  ;;  %4889 = vmatprep.subr.mxu0 %v3622_v62  ;;  %v2886_v42 = vrot.slane %v6165_v17, %v5346_v15  ;;  %v2890_v63 = vrot.slane %v6165_v17, %v5351_v21  ;;  %v2575_v49 = vcombine.high %v2573_v28, %v2573_v28  ;;  %v2670_v56 = vmin.f32 %v2668_v27, 1.0  ;;  %v3604_v24 = vld [vmem:[#allocation11 + $0x238] sm:$0xff]  ;;  %v3635_v58 = vld [vmem:[#allocation11 + $0x330] sm:$0xff]  ;;  %v3634_v61 = vld [vmem:[#allocation11 + $0x328] sm:$0xff] }
 0xf32   :  { %v2793_v60 = vcombine.low %v2785_v51, %v2792_v45  ;;  %v2566_v26 = vrot.slane %v2559_v35, %v6116_v16  ;;  %4763 = vst.sshfl [vmem:[#allocation2 + $0x20] sm:$0x30 pattern:$0x76325410] %v2559_v35  ;;  %4890 = vmatpush3.msra.mxu0 %v3606_v18  ;;  %4932 = vmatprep.subr.mxu1 %v3653_v33  ;;  %3504 = vst [vmem:[#allocation2 + $0x98] sm:$0x3] %v3475_v57 }
 0xf33   :  { %3737 = vmatprep.mubr.f32.mxu0 %v3518_v52  ;;  %4891 = vmatprep.subr.mxu0 %v3621_v54  ;;  %v2908_v50 = vcombine.low %v2878_v29, %v2882_v32  ;;  %v2909_v13 = vcombine.low %v2886_v42, %v2890_v63  ;;  %v3009_v17 = vrot.slane %v6173_v40, %v5336_v9  ;;  %v3519_v30 = vld [vmem:[#allocation2 + $0x50] sm:$0xff]  ;;  %v3619_v36 = vld [vmem:[#allocation11 + $0x2b0] sm:$0xff]  ;;  %v3618_v32 = vld [vmem:[#allocation11 + $0x2a8] sm:$0xff] }
 0xf34   :  { %2591 = vst [vmem:[#allocation2 + $0x38] sm:$0xc] %v2575_v49  ;;  %v2690_v38 = vcombine.high %v2670_v56, %v2670_v56  ;;  %v2797_v53 = vadd.f32 %v2793_v60, %v6120_v20  ;;  %4767 = vst.sshfl [vmem:[#allocation2 + $0x28] sm:$0xc pattern:$0x76325410] %v2670_v56  ;;  %v2574_v59 = vcombine.high %v2566_v26, %v2566_v26  ;;  %4933 = vmatpush3.msra.mxu1 %v3637_v11 }
 0xf35   :  { %4892 = vmatpush3.msra.mxu0 %v3605_v22  ;;  %3818 = vmatmul.mubr.f32.gmra.mxu1 %v3519_v30  ;;  %v2697_v47 = vrot.slane %v2670_v56, %v6116_v16  ;;  %v2916_v12 = vrot.slane %v2908_v50, %v6116_v16  ;;  %v2923_v55 = vrot.slane %v2909_v13, %v6116_v16  ;;  %v3517_v43 = vld [vmem:[#allocation2 + $0x40] sm:$0xff]  ;;  %v3603_v7 = vld [vmem:[#allocation11 + $0x230] sm:$0xff]  ;;  %v3527_v42 = vld [vmem:[#allocation2 + $0x90] sm:$0x3] }
 0xf36   :  { %4934 = vmatprep.subr.mxu1 %v3652_v1  ;;  %v2704_v29 = vrot.slane %v2690_v38, %v6116_v16  ;;  %4768 = vst.sshfl [vmem:[#allocation2 + $0x38] sm:$0xc pattern:$0x76325410] %v2690_v38  ;;  %v2799_v14 = vmax.f32 %v2797_v53, 0.0  ;;  %4893 = vmatprep.subr.mxu0 %v3620_v48  ;;  %v3013_v23 = vrot.slane %v6173_v40, %v5339_v10  ;;  %v3602_v57 = vld [vmem:[#allocation11 + $0x228] sm:$0xff] }
 0xf37   :  { %2589 = vst [vmem:[#allocation2 + $0x28] sm:$0xc] %v2574_v59  ;;  %4935 = vmatpush3.msra.mxu1 %v3636_v44  ;;  %v3017_v8 = vrot.slane %v6173_v40, %v5346_v15  ;;  %3738 = vmatmul.mubr.f32.gmra.mxu0 %v3517_v43  ;;  %v2705_v41 = vcombine.low %v2697_v47, %v2697_v47  ;;  %v3526_v62 = vld [vmem:[#allocation2 + $0x88] sm:$0x3]  ;;  %v3525_v35 = vld [vmem:[#allocation2 + $0x80] sm:$0x3] }
 0xf38   :  { %4936 = vmatprep.subr.mxu1 %v3651_v39  ;;  %v2924_v25 = vcombine.low %v2916_v12, %v2923_v55  ;;  %v3021_v51 = vrot.slane %v6173_v40, %v5351_v21  ;;  %v2706_v19 = vcombine.low %v2704_v29, %v2704_v29  ;;  %v2801_v34 = vmin.f32 %v2799_v14, 1.0  ;;  %4894 = vmatpush3.msra.mxu0 %v3604_v24  ;;  %v3649_v63 = vld [vmem:[#allocation11 + $0x3a0] sm:$0xff]  ;;  %v3616_v30 = vld [vmem:[#allocation11 + $0x298] sm:$0xff]  ;;  %v3647_v55 = vld [vmem:[#allocation11 + $0x390] sm:$0xff] }
 0xf39   :  { %4937 = vmatpush3.msra.mxu1 %v3635_v58  ;;  %v3039_v18 = vcombine.low %v3009_v17, %v3013_v23  ;;  %v3140_v33 = vrot.slane %v6181_v31, %v5336_v9  ;;  %3742 = vmatprep.mubr.f32.mxu0 %v3526_v62  ;;  %2719 = vst [vmem:[#allocation2 + $0x20] sm:$0x30] %v2705_v41  ;;  %v3528_v45 = vld [vmem:[#allocation2 + $0x98] sm:$0x3]  ;;  %v3648_v17 = vld [vmem:[#allocation11 + $0x398] sm:$0xff]  ;;  %v3631_v23 = vld [vmem:[#allocation11 + $0x310] sm:$0xff] }
 0xf3a   :  { %4895 = vmatprep.subr.mxu0 %v3619_v36  ;;  %v2928_v28 = vadd.f32 %v2924_v25, %v6120_v20  ;;  %v3040_v27 = vcombine.low %v3017_v8, %v3021_v51  ;;  %v3144_v40 = vrot.slane %v6181_v31, %v5339_v10  ;;  %4772 = vst.sshfl [vmem:[#allocation2 + $0x38] sm:$0xc0 pattern:$0x76325410] %v2801_v34  ;;  %2721 = vst [vmem:[#allocation2 + $0x30] sm:$0x30] %v2706_v19 }
 0xf3b   :  { %v2821_v54 = vcombine.low %v2801_v34, %v2801_v34  ;;  %4896 = vmatpush3.msra.mxu0 %v3603_v7  ;;  %4938 = vmatprep.subr.mxu1 %v3650_v37  ;;  %v2835_v11 = vrot.slane %v2801_v34, %v6116_v16  ;;  %v3047_v22 = vrot.slane %v3039_v18, %v6116_v16  ;;  %v3617_v52 = vld [vmem:[#allocation11 + $0x2a0] sm:$0xff]  ;;  %v3632_v24 = vld [vmem:[#allocation11 + $0x318] sm:$0xff]  ;;  %v3615_v36 = vld [vmem:[#allocation11 + $0x290] sm:$0xff] }
 0xf3c   :  { %3822 = vmatprep.mubr.f32.mxu1 %v3528_v45  ;;  %3743 = vmatmul.mubr.f32.gmra.mxu0 %v3525_v35  ;;  %v2930_v49 = vmax.f32 %v2928_v28, 0.0  ;;  %v3054_v56 = vrot.slane %v3040_v27, %v6116_v16  ;;  %v3148_v60 = vrot.slane %v6181_v31, %v5346_v15  ;;  %v3152_v26 = vrot.slane %v6181_v31, %v5351_v21  ;;  %v3633_v48 = vld [vmem:[#allocation11 + $0x320] sm:$0xff]  ;;  %v3600_v58 = vld [vmem:[#allocation11 + $0x218] sm:$0xff]  ;;  %v3599_v25 = vld [vmem:[#allocation11 + $0x210] sm:$0xff] }
 0xf3d   :  { %3823 = vmatmul.mubr.f32.gmra.mxu1 %v3527_v42  ;;  %v2828_v1 = vrot.slane %v2821_v54, %v6116_v16  ;;  %4771 = vst.sshfl [vmem:[#allocation2 + $0x28] sm:$0xc0 pattern:$0x76325410] %v2821_v54  ;;  %4897 = vmatprep.subr.mxu0 %v3618_v32  ;;  %v3601_v44 = vld [vmem:[#allocation11 + $0x220] sm:$0xff]  ;;  %v2837_v50 = vcombine.low %v2835_v11, %v2835_v11  ;;  %v3646_v18 = vld [vmem:[#allocation11 + $0x388] sm:$0xff] }
 0xf3e   :  { %v3170_v13 = vcombine.low %v3140_v33, %v3144_v40  ;;  %4939 = vmatpush3.msra.mxu1 %v3634_v61  ;;  %4898 = vmatpush3.msra.mxu0 %v3602_v57  ;;  %v2932_v38 = vmin.f32 %v2930_v49, 1.0  ;;  %v3055_v53 = vcombine.low %v3047_v22, %v3054_v56  ;;  %v3171_v59 = vcombine.low %v3148_v60, %v3152_v26  ;;  %v3614_v33 = vld [vmem:[#allocation11 + $0x288] sm:$0xff]  ;;  %v3645_v11 = vld [vmem:[#allocation11 + $0x380] sm:$0xff] }
 0xf3f   :  { %v3271_v39 = vrot.slane %v6187_v6, %v5336_v9  ;;  %v2836_v31 = vcombine.low %v2828_v1, %v2828_v1  ;;  %4940 = vmatprep.subr.mxu1 %v3649_v63  ;;  %4899 = vmatprep.subr.mxu0 %v3617_v52  ;;  %2852 = vst [vmem:[#allocation2 + $0x30] sm:$0xc0] %v2837_v50  ;;  %v3630_v27 = vld [vmem:[#allocation11 + $0x308] sm:$0xff]  ;;  %v3613_v22 = vld [vmem:[#allocation11 + $0x280] sm:$0xff] }
 0xf40   :  { %v3178_v47 = vrot.slane %v3170_v13, %v6116_v16  ;;  %v3275_v12 = vrot.slane %v6187_v6, %v5339_v10  ;;  %4941 = vmatpush3.msra.mxu1 %v3633_v48  ;;  %4900 = vmatpush3.msra.mxu0 %v3601_v44  ;;  %v2952_v43 = vcombine.high %v2932_v38, %v2932_v38  ;;  %v3598_v40 = vld [vmem:[#allocation11 + $0x208] sm:$0xff]  ;;  %v3629_v49 = vld [vmem:[#allocation11 + $0x300] sm:$0xff] }
 0xf41   :  { %v3059_v29 = vadd.f32 %v3055_v53, %v6120_v20  ;;  %v3185_v14 = vrot.slane %v3171_v59, %v6116_v16  ;;  %4775 = vst.sshfl [vmem:[#allocation2 + $0x60] sm:$0x3 pattern:$0x76325410] %v2932_v38  ;;  %2850 = vst [vmem:[#allocation2 + $0x20] sm:$0xc0] %v2836_v31  ;;  %4942 = vmatprep.subr.mxu1 %v3648_v17  ;;  %4901 = vmatprep.subr.mxu0 %v3616_v30 }
 0xf42   :  { %v3279_v8 = vrot.slane %v6187_v6, %v5346_v15  ;;  %v3283_v7 = vrot.slane %v6187_v6, %v5351_v21  ;;  %v3301_v37 = vcombine.low %v3271_v39, %v3275_v12  ;;  %v3516_v41 = vld [vmem:[#allocation2 + $0x38] sm:$0xff]  ;;  %4943 = vmatpush3.msra.mxu1 %v3632_v24  ;;  %4902 = vmatpush3.msra.mxu0 %v3600_v58 }
 0xf43   :  { %v2966_v51 = vrot.slane %v2952_v43, %v6116_v16  ;;  %v3061_v62 = vmax.f32 %v3059_v29, 0.0  ;;  %v3186_v19 = vcombine.low %v3178_v47, %v3185_v14  ;;  %4776 = vst.sshfl [vmem:[#allocation2 + $0x70] sm:$0x3 pattern:$0x76325410] %v2952_v43  ;;  %v2959_v34 = vrot.slane %v2932_v38, %v6116_v16  ;;  %3972 = vmatprep.mubr.f32.mxu1 %v3516_v41  ;;  %v3597_v56 = vld [vmem:[#allocation11 + $0x200] sm:$0xff] }
 0xf44   :  { %4944 = vmatprep.subr.mxu1 %v3647_v55  ;;  %v3302_v32 = vcombine.low %v3279_v8, %v3283_v7  ;;  %v3309_v61 = vrot.slane %v3301_v37, %v6116_v16  ;;  %v3402_v6 = vrot.slane %v6191_v46, %v5336_v9  ;;  %v3514_v28 = vld [vmem:[#allocation2 + $0x28] sm:$0xff]  ;;  %4903 = vmatprep.subr.mxu0 %v3615_v36 }
 0xf45   :  { %4945 = vmatpush3.msra.mxu1 %v3631_v23  ;;  %v2968_v45 = vcombine.high %v2966_v51, %v2966_v51  ;;  %v3063_v35 = vmin.f32 %v3061_v62, 1.0  ;;  %v3190_v54 = vadd.f32 %v3186_v19, %v6120_v20  ;;  %v2967_v57 = vcombine.high %v2959_v34, %v2959_v34  ;;  %3892 = vmatprep.mubr.f32.mxu0 %v3514_v28 }
 0xf46   :  { %4904 = vmatpush3.msra.mxu0 %v3599_v25  ;;  %v3316_v42 = vrot.slane %v3302_v32, %v6116_v16  ;;  %v3406_v63 = vrot.slane %v6191_v46, %v5339_v10  ;;  %v3410_v52 = vrot.slane %v6191_v46, %v5346_v15  ;;  %4946 = vmatprep.subr.mxu1 %v3646_v18  ;;  %v3515_v53 = vld [vmem:[#allocation2 + $0x30] sm:$0xff] }
 0xf47   :  { %4905 = vmatprep.subr.mxu0 %v3614_v33  ;;  %2984 = vst [vmem:[#allocation2 + $0x78] sm:$0x3] %v2968_v45  ;;  %v3097_v60 = vrot.slane %v3063_v35, %v6116_v16  ;;  %v3192_v26 = vmax.f32 %v3190_v54, 0.0  ;;  %2982 = vst [vmem:[#allocation2 + $0x68] sm:$0x3] %v2967_v57  ;;  %v3083_v1 = vcombine.low %v3063_v35, %v3063_v35  ;;  %4947 = vmatpush3.msra.mxu1 %v3630_v27  ;;  %v4006_v54 = vld [vmem:[#allocation13 + $0x78] sm:$0xff] }
 0xf48   :  { %4780 = vst.sshfl [vmem:[#allocation2 + $0x70] sm:$0x30 pattern:$0x76325410] %v3063_v35  ;;  %v3414_v48 = vrot.slane %v6191_v46, %v5351_v21  ;;  %4906 = vmatpush3.msra.mxu0 %v3598_v40  ;;  %v3317_v44 = vcombine.low %v3309_v61, %v3316_v42  ;;  %v3432_v50 = vcombine.low %v3402_v6, %v3406_v63  ;;  %v3513_v59 = vld [vmem:[#allocation2 + $0x20] sm:$0xff]  ;;  %v5255_v57 = vmov 0.0  }
 0xf49   :  { %4948 = vmatprep.subr.mxu1 %v3645_v11  ;;  %4907 = vmatprep.subr.mxu0 %v3613_v22  ;;  %v3099_v13 = vcombine.high %v3097_v60, %v3097_v60  ;;  %v3194_v17 = vmin.f32 %v3192_v26, 1.0  ;;  %v3090_v30 = vrot.slane %v3083_v1, %v6116_v16  ;;  %4779 = vst.sshfl [vmem:[#allocation2 + $0x60] sm:$0x30 pattern:$0x76325410] %v3083_v1  ;;  %v4005_v11 = vld [vmem:[#allocation13 + $0x70] sm:$0xff] }
 0xf4a   :  { %v3433_v38 = vcombine.low %v3410_v52, %v3414_v48  ;;  %4949 = vmatpush3.msra.mxu1 %v3629_v49  ;;  %4908 = vmatpush3.msra.mxu0 %v3597_v56  ;;  %v3321_v39 = vadd.f32 %v3317_v44, %v6120_v20  ;;  %v3440_v46 = vrot.slane %v3432_v50, %v6116_v16  ;;  %v4004_v22 = vld [vmem:[#allocation13 + $0x68] sm:$0xff]  ;;  %v4003_v42 = vld [vmem:[#allocation13 + $0x60] sm:$0xff]  ;;  %v4002_v63 = vld [vmem:[#allocation13 + $0x58] sm:$0xff] }
 0xf4b   :  { %3973 = vmatmul.mubr.f32.vlgmr.msra.gmra.mxu1 %v3515_v53  ;;  %3893 = vmatmul.mubr.f32.vlgmr.msra.gmra.mxu0 %v3513_v59  ;;  %3115 = vst [vmem:[#allocation2 + $0x78] sm:$0xc] %v3099_v13  ;;  %v3214_v31 = vcombine.high %v3194_v17, %v3194_v17  ;;  %4783 = vst.sshfl [vmem:[#allocation2 + $0x68] sm:$0xc pattern:$0x76325410] %v3194_v17  ;;  %v3098_v24 = vcombine.high %v3090_v30, %v3090_v30 }
 0xf4c   :  { %v3221_v58 = vrot.slane %v3194_v17, %v6116_v16  ;;  %v3323_v47 = vmax.f32 %v3321_v39, 0.0  ;;  %v3447_v12 = vrot.slane %v3433_v38, %v6116_v16  ;;  %4978 = vmatprep.subr.mxu0 %v5255_v57  ;;  %5019 = vmatprep.subr.mxu1 %v5255_v57  ;;  %v4001_v52 = vld [vmem:[#allocation13 + $0x50] sm:$0xff]  ;;  %v4000_v49 = vld [vmem:[#allocation13 + $0x48] sm:$0xff]  ;;  %v3999_v56 = vld [vmem:[#allocation13 + $0x40] sm:$0xff] }
 0xf4d   :  { %4784 = vst.sshfl [vmem:[#allocation2 + $0x78] sm:$0xc pattern:$0x76325410] %v3214_v31  ;;  %3113 = vst [vmem:[#allocation2 + $0x68] sm:$0xc] %v3098_v24  ;;  %v3228_v55 = vrot.slane %v3214_v31, %v6116_v16  ;;  %4979 = vmatpush3.msra.mxu0 %v4006_v54  ;;  %5035 = vmatpush3.msra.mxu1 %v4006_v54 }
 0xf4e   :  { %v3229_v43 = vcombine.low %v3221_v58, %v3221_v58  ;;  %v3325_v29 = vmin.f32 %v3323_v47, 1.0  ;;  %v3448_v14 = vcombine.low %v3440_v46, %v3447_v12  ;;  %4980 = vmatprep.subr.mxu0 %v5255_v57  ;;  %5020 = vmatprep.subr.mxu1 %v5255_v57  ;;  %v3998_v60 = vld [vmem:[#allocation13 + $0x38] sm:$0xff]  ;;  %v3997_v26 = vld [vmem:[#allocation13 + $0x30] sm:$0xff]  ;;  %v3996_v1 = vld [vmem:[#allocation13 + $0x28] sm:$0xff] }
 0xf4f   :  { %v3230_v36 = vcombine.low %v3228_v55, %v3228_v55  ;;  %4981 = vmatpush3.msra.mxu0 %v4005_v11  ;;  %5036 = vmatpush3.msra.mxu1 %v4005_v11  ;;  %v3995_v48 = vld [vmem:[#allocation13 + $0x20] sm:$0xff]  ;;  %v3994_v44 = vld [vmem:[#allocation13 + $0x18] sm:$0xff]  ;;  %v3993_v50 = vld [vmem:[#allocation13 + $0x10] sm:$0xff] }
 0xf50   :  { %3243 = vst [vmem:[#allocation2 + $0x60] sm:$0x30] %v3229_v43  ;;  %4788 = vst.sshfl [vmem:[#allocation2 + $0x78] sm:$0xc0 pattern:$0x76325410] %v3325_v29  ;;  %v3345_v23 = vcombine.low %v3325_v29, %v3325_v29  ;;  %v3359_v8 = vrot.slane %v3325_v29, %v6116_v16  ;;  %v3452_v7 = vadd.f32 %v3448_v14, %v6120_v20  ;;  %4982 = vmatprep.subr.mxu0 %v5255_v57 }
 0xf51   :  { %3245 = vst [vmem:[#allocation2 + $0x70] sm:$0x30] %v3230_v36  ;;  %5021 = vmatprep.subr.mxu1 %v5255_v57  ;;  %4983 = vmatpush3.msra.mxu0 %v4004_v22  ;;  %v3992_v13 = vld [vmem:[#allocation13 + $0x8] sm:$0xff]  ;;  %v3991_v17 = vld [vmem:[#allocation13] sm:$0xff] }
 0xf52   :  { %4787 = vst.sshfl [vmem:[#allocation2 + $0x68] sm:$0xc0 pattern:$0x76325410] %v3345_v23  ;;  %v3361_v37 = vcombine.low %v3359_v8, %v3359_v8  ;;  %v3352_v41 = vrot.slane %v3345_v23, %v6116_v16  ;;  %v3454_v25 = vmax.f32 %v3452_v7, 0.0  ;;  %5037 = vmatpush3.msra.mxu1 %v4004_v22  ;;  %4984 = vmatprep.subr.mxu0 %v5255_v57 }
 0xf53   :  { %5022 = vmatprep.subr.mxu1 %v5255_v57  ;;  %4985 = vmatpush3.msra.mxu0 %v4003_v42  ;;  %v4793_v55 = vld [vmem:[%s6807_s4] ss:$0 sm:$0xff] }
 0xf54   :  { %3376 = vst [vmem:[#allocation2 + $0x70] sm:$0xc0] %v3361_v37  ;;  %v3360_v51 = vcombine.low %v3352_v41, %v3352_v41  ;;  %v3456_v62 = vmin.f32 %v3454_v25, 1.0  ;;  %5038 = vmatpush3.msra.mxu1 %v4003_v42  ;;  %4986 = vmatprep.subr.mxu0 %v5255_v57 }
 0xf55   :  { %5023 = vmatprep.subr.mxu1 %v5255_v57  ;;  %4987 = vmatpush3.msra.mxu0 %v4002_v63 }
 0xf56   :  { %3374 = vst [vmem:[#allocation2 + $0x60] sm:$0xc0] %v3360_v51  ;;  %v3476_v19 = vcombine.high %v3456_v62, %v3456_v62  ;;  %4791 = vst.sshfl [vmem:[#allocation2 + $0xa0] sm:$0x3 pattern:$0x76325410] %v3456_v62  ;;  %v3483_v34 = vrot.slane %v3456_v62, %v6116_v16  ;;  %5039 = vmatpush3.msra.mxu1 %v4002_v63  ;;  %4988 = vmatprep.subr.mxu0 %v5255_v57 }
 0xf57   :  { %v3524_v18 = vld [vmem:[#allocation2 + $0x78] sm:$0xff]  ;;  %5024 = vmatprep.subr.mxu1 %v5255_v57  ;;  %4989 = vmatpush3.msra.mxu0 %v4001_v52 }
 0xf58   :  { %3977 = vmatprep.mubr.f32.mxu1 %v3524_v18  ;;  %v3490_v33 = vrot.slane %v3476_v19, %v6116_v16  ;;  %4792 = vst.sshfl [vmem:[#allocation2 + $0xb0] sm:$0x3 pattern:$0x76325410] %v3476_v19  ;;  %v3491_v20 = vcombine.high %v3483_v34, %v3483_v34  ;;  %5040 = vmatpush3.msra.mxu1 %v4001_v52 }
 0xf59   :  { %v3522_v32 = vld [vmem:[#allocation2 + $0x68] sm:$0xff]  ;;  %4990 = vmatprep.subr.mxu0 %v5255_v57  ;;  %5025 = vmatprep.subr.mxu1 %v5255_v57 }
 0xf5a   :  { %3897 = vmatprep.mubr.f32.mxu0 %v3522_v32  ;;  %v3492_v61 = vcombine.high %v3490_v33, %v3490_v33  ;;  %3506 = vst [vmem:[#allocation2 + $0xa8] sm:$0x3] %v3491_v20  ;;  %4991 = vmatpush3.msra.mxu0 %v4000_v49 }
 0xf5b   :  { %v3523_v6 = vld [vmem:[#allocation2 + $0x70] sm:$0xff]  ;;  %5041 = vmatpush3.msra.mxu1 %v4000_v49  ;;  %4992 = vmatprep.subr.mxu0 %v5255_v57 }
 0xf5c   :  { %3978 = vmatmul.mubr.f32.gmra.mxu1 %v3523_v6  ;;  %3508 = vst [vmem:[#allocation2 + $0xb8] sm:$0x3] %v3492_v61  ;;  %5026 = vmatprep.subr.mxu1 %v5255_v57 }
 0xf5d   :  { %v3521_v28 = vld [vmem:[#allocation2 + $0x60] sm:$0xff]  ;;  %4993 = vmatpush3.msra.mxu0 %v3999_v56  ;;  %5042 = vmatpush3.msra.mxu1 %v3999_v56 }
 0xf5e   :  { %3898 = vmatmul.mubr.f32.gmra.mxu0 %v3521_v28  ;;  %v3529_v40 = vld [vmem:[#allocation2 + $0xa0] sm:$0x3]  ;;  %4994 = vmatprep.subr.mxu0 %v5255_v57 }
 0xf5f   :  { %v3531_v35 = vld [vmem:[#allocation2 + $0xb0] sm:$0x3]  ;;  %5027 = vmatprep.subr.mxu1 %v5255_v57  ;;  %4995 = vmatpush3.msra.mxu0 %v3998_v60 }
 0xf60   :  { %5043 = vmatpush3.msra.mxu1 %v3998_v60  ;;  %4996 = vmatprep.subr.mxu0 %v5255_v57 }
 0xf61   :  { %v3530_v27 = vld [vmem:[#allocation2 + $0xa8] sm:$0x3]  ;;  %5028 = vmatprep.subr.mxu1 %v5255_v57  ;;  %4997 = vmatpush3.msra.mxu0 %v3997_v26 }
 0xf62   :  { %3902 = vmatprep.mubr.f32.mxu0 %v3530_v27  ;;  %5044 = vmatpush3.msra.mxu1 %v3997_v26 }
 0xf63   :  { %v3532_v45 = vld [vmem:[#allocation2 + $0xb8] sm:$0x3]  ;;  %3903 = vmatmul.mubr.f32.gmra.mxu0 %v3529_v40  ;;  %4998 = vmatprep.subr.mxu0 %v5255_v57 }
 0xf64   :  { %3982 = vmatprep.mubr.f32.mxu1 %v3532_v45  ;;  %5029 = vmatprep.subr.mxu1 %v5255_v57 }
 0xf65   :  { %3983 = vmatmul.mubr.f32.gmra.mxu1 %v3531_v35  ;;  %4999 = vmatpush3.msra.mxu0 %v3996_v1 }
 0xf66   :  { %5045 = vmatpush3.msra.mxu1 %v3996_v1  ;;  %5000 = vmatprep.subr.mxu0 %v5255_v57 }
 0xf67   :  { %5030 = vmatprep.subr.mxu1 %v5255_v57  ;;  %5001 = vmatpush3.msra.mxu0 %v3995_v48 }
 0xf68   :  { %5046 = vmatpush3.msra.mxu1 %v3995_v48  ;;  %5002 = vmatprep.subr.mxu0 %v5255_v57 }
 0xf69   :  { %5031 = vmatprep.subr.mxu1 %v5255_v57  ;;  %5003 = vmatpush3.msra.mxu0 %v3994_v44 }
 0xf6a   :  { %5047 = vmatpush3.msra.mxu1 %v3994_v44  ;;  %5004 = vmatprep.subr.mxu0 %v5255_v57 }
 0xf6b   :  { %5032 = vmatprep.subr.mxu1 %v5255_v57  ;;  %5005 = vmatpush3.msra.mxu0 %v3993_v50 }
 0xf6c   :  { %5048 = vmatpush3.msra.mxu1 %v3993_v50  ;;  %5006 = vmatprep.subr.mxu0 %v5255_v57 }
 0xf6d   :  { %5010 = vmatprep.mubr.msk.f32.mxu0 %vm5256_vm9, %v5255_v57  ;;  %5007 = vmatpush3.msra.mxu0 %v3992_v13 }
 0xf6e   :  { %5033 = vmatprep.subr.mxu1 %v5255_v57  ;;  %5008 = vmatprep.subr.mxu0 %v5255_v57 }
 0xf6f   :  { %5049 = vmatpush3.msra.mxu1 %v3992_v13  ;;  %5009 = vmatpush3.msra.mxu0 %v3991_v17 }
 0xf70   :  { %5034 = vmatprep.subr.mxu1 %v5255_v57  ;;  %5013 = vmatprep.mubr.msk.f32.mxu1 %vm5256_vm9, %v5255_v57 }
 0xf71   :  { %5050 = vmatpush3.msra.mxu1 %v3991_v17  ;;  %v4095_v17 = vand.u32 127, %v89_v0 }
 0xf73   :  { %vm4096_vm10 = vcmp.eq.s32.totalorder %v4095_v17, 0  ;;  %vm4097_vm11 = vcmp.ge.s32.totalorder %v4095_v17, 10 }
 0xf74   :  { %vm6428_vm12 = vmor %vm4096_vm10, %vm4097_vm11 }
 0xfe0   :  { %v4868_v30 = vpop.f32.mrf.mxu1 }
 0xfe2   :  { %v4869_v53 = vpop.f32.mrf.mxu1 }
 0xfe3   :  { %v4827_v38 = vpop.f32.mrf.mxu0  ;;  %v4870_v8 = vadd.f32 %v4869_v53, %v4868_v30  ;;  %v4794_v30 = vld [vmem:[%s6809_s6] ss:$0 sm:$0xff]  ;;  %s5258_s6 = smov [#allocation14]  }
 0xfe4   :  { %s4746_s18 = sshll.u32 %s5258_s6, 4  ;;  %s4747_s18 = int_to_ptr.vmem [resolvable:$true] %s4746_s18 }
 0xfe5   :  { %v4828_v59 = vpop.f32.mrf.mxu0  ;;  %s5218_s19 = scalar_lea.vmem %s4747_s18, 256  ;;  %p5223_p12 = scmp.lt.s32.totalorder %s4747_s18, %s4747_s18 }
 0xfe6   :  { %v4829_v12 = vadd.f32 %v4828_v59, %v4827_v38  ;;  %p5219_p11 = scmp.ne.s32.totalorder %s4747_s18, %s5218_s19  ;;  %p5224_p13 = scmp.lt.s32.totalorder %s5218_s19, %s5218_s19 }
 0xfe8   :  { %v3735_v14 = vadd.f32 %v4829_v12, %v4793_v55  ;;  %p5225_p0 = por %p5224_p13, %p5223_p12 }
 0xfea   :  { %v3815_v41 = vadd.f32 %v4870_v8, %v3735_v14  ;;  %p5226_p1 = pnand %p5225_p0, %p5219_p11 }
 0xff5   :  { %v4871_v39 = vpop.f32.mrf.mxu1 }
 0xff7   :  { %v4830_v46 = vpop.f32.mrf.mxu0  ;;  %v4872_v31 = vpop.f32.mrf.mxu1 }
 0xff8   :  { %v4873_v6 = vadd.f32 %v4872_v31, %v4871_v39 }
 0xff9   :  { %v4831_v24 = vpop.f32.mrf.mxu0 }
 0xffa   :  { %v4832_v18 = vadd.f32 %v4831_v24, %v4830_v46 }
 0xffc   :  { %v4833_v47 = vpop.f32.mrf.mxu0  ;;  %v3740_v20 = vadd.f32 %v4832_v18, %v4793_v55 }
 0xffd   :  { %v4874_v58 = vpop.f32.mrf.mxu1 }
 0xffe   :  { %v4834_v29 = vpop.f32.mrf.mxu0  ;;  %v3820_v40 = vadd.f32 %v4873_v6, %v3740_v20 }
 0xfff   :  { %v4875_v43 = vpop.f32.mrf.mxu1  ;;  %v4835_v32 = vadd.f32 %v4834_v29, %v4833_v47  ;;  %v5257_v29 = vmov 0  }
0x1000   :  { %v4876_v42 = vadd.f32 %v4875_v43, %v4874_v58  ;;  %5097 = vset.pattern.permute.xlu0 %v5257_v29  ;;  %5096 = vset.pattern.permute.xlu1 %v5257_v29  ;;  %v4330_v29 = vld [vmem:[#allocation3 + $0x3] ss:$8 sm:$0xf] }
0x1001   :  { %v3745_v35 = vadd.f32 %v4835_v32, %v4793_v55 }
0x1003   :  { %v3825_v56 = vadd.f32 %v4876_v42, %v3745_v35 }
0x100b   :  { %v4950_v36 = vpop.f32.mrf.mxu1  ;;  %v4909_v23 = vpop.f32.mrf.mxu0 }
0x100d   :  { %v4951_v7 = vpop.f32.mrf.mxu1  ;;  %v4910_v37 = vpop.f32.mrf.mxu0 }
0x100e   :  { %v4911_v25 = vadd.f32 %v4910_v37, %v4909_v23  ;;  %v4952_v51 = vadd.f32 %v4951_v7, %v4950_v36 }
0x1010   :  { %v3895_v62 = vadd.f32 %v4911_v25, %v3815_v41 }
0x1012   :  { %v3975_v19 = vadd.f32 %v4952_v51, %v3895_v62 }
0x1014   :  { %v3988_v34 = vmax.f32 %v3975_v19, 0.0 }
0x1016   :  { %5011 = vmatmul.mubr.f32.vlgmr.msra.gmra.mxu0 %v3988_v34 }
0x101c   :  { %v4953_v33 = vpop.f32.mrf.mxu1 }
0x101e   :  { %v4912_v61 = vpop.f32.mrf.mxu0  ;;  %v4954_v28 = vpop.f32.mrf.mxu1 }
0x101f   :  { %v4955_v54 = vadd.f32 %v4954_v28, %v4953_v33 }
0x1020   :  { %v4913_v27 = vpop.f32.mrf.mxu0 }
0x1021   :  { %v4914_v45 = vadd.f32 %v4913_v27, %v4912_v61 }
0x1023   :  { %v3900_v11 = vadd.f32 %v4914_v45, %v3820_v40  ;;  %v4915_v22 = vpop.f32.mrf.mxu0 }
0x1025   :  { %v3980_v63 = vadd.f32 %v4955_v54, %v3900_v11  ;;  %v4956_v52 = vpop.f32.mrf.mxu1  ;;  %v4916_v49 = vpop.f32.mrf.mxu0 }
0x1026   :  { %v4917_v60 = vadd.f32 %v4916_v49, %v4915_v22 }
0x1027   :  { %v3989_v26 = vmax.f32 %v3980_v63, 0.0  ;;  %v4957_v1 = vpop.f32.mrf.mxu1 }
0x1028   :  { %v4958_v48 = vadd.f32 %v4957_v1, %v4956_v52  ;;  %v3905_v44 = vadd.f32 %v4917_v60, %v3825_v56 }
0x1029   :  { %5014 = vmatmul.mubr.f32.vlgmr.msra.gmra.mxu1 %v3989_v26 }
0x102a   :  { %5016 = vmatprep.mubr.msk.f32.mxu1 %vm5256_vm9, %v5255_v57  ;;  %v3985_v50 = vadd.f32 %v4958_v48, %v3905_v44 }
0x102c   :  { %v3990_v13 = vmax.f32 %v3985_v50, 0.0 }
0x102e   :  { %5017 = vmatmul.mubr.f32.gmra.mxu1 %v3990_v13 }
0x10d6   :  { %v4080_v38 = vpop.f32.mrf.mxu0 }
0x10d7   :  { %v4081_v59 = vadd.f32 %v4794_v30, %v4080_v38 }
0x10d8   :  { %v5012_v39 = vpop.f32.mrf.mxu0 }
0x10d9   :  { %v4099_v57 = vsel %vm6428_vm12, -1e+30, %v4081_v59 }
0x10da   :  { %4102 = vmax.xlane.f32.xlu0 %v4099_v57 }
0x10e9   :  { %v4085_v46 = vpop.f32.mrf.mxu1 }
0x10ea   :  { %v4086_v31 = vadd.f32 %v4794_v30, %v4085_v46 }
0x10eb   :  { %v5015_v0 = vpop.f32.mrf.mxu1 }
0x10ec   :  { %v4100_v24 = vsel %vm6428_vm12, -1e+30, %v4086_v31  ;;  %v4124_v0 = vld [vmem:[#allocation3] ss:$8 sm:$0xf0] }
0x10ed   :  { %4104 = vmax.xlane.f32.xlu1 %v4100_v24 }
0x10ee   :  { %v4090_v58 = vpop.f32.mrf.mxu1 }
0x10ef   :  { %v4091_v47 = vadd.f32 %v4794_v30, %v4090_v58  ;;  %v4192_v58 = vld [vmem:[#allocation3 + $0x1] ss:$8 sm:$0xf] }
0x10f0   :  { %v5018_v12 = vpop.f32.mrf.mxu1 }
0x10f1   :  { %v4101_v55 = vsel %vm6428_vm12, -1e+30, %v4091_v47  ;;  %v4261_v12 = vld [vmem:[#allocation3 + $0x2] ss:$8 sm:$0xf] }
0x10f2   :  { %v4107_v43 = vsel %vm4106_vm13, %v4101_v55, -inf  ;;  %v4262_v55 = vld [vmem:[#allocation3 + $0x2] ss:$8 sm:$0xf0] }
0x10f3   :  { %4108 = vmax.xlane.f32.xlu0 %v4107_v43 }
0x1163   :  { %v4103_v14 = vpop.xlane.xlu0 %4102 }
0x1164   :  { %v4110_v36 = vsub.f32 %v4081_v59, %v4103_v14  ;;  %v4331_v14 = vld [vmem:[#allocation3 + $0x3] ss:$8 sm:$0xf0] }
0x1166   :  { %4114 = vst.msk [vmem:[#allocation4] sm:$0xff] %vm4113_vm14, %v4110_v36 }
0x116d   :  { %v4118_v23 = vld [vmem:[#allocation4] sm:$0x3]  ;;  %v4188_v8 = vld [vmem:[#allocation4 + $0x4] sm:$0x3]  ;;  %v4119_v7 = vld [vmem:[#allocation4 + $0x2] sm:$0x3] }
0x116e   :  { %v4189_v37 = vsub.f32 %v4118_v23, %v4188_v8  ;;  %v4120_v41 = vsub.f32 %v4118_v23, %v4119_v7  ;;  %v4257_v25 = vld [vmem:[#allocation4 + $0x6] sm:$0x3] }
0x116f   :  { %v4258_v51 = vsub.f32 %v4118_v23, %v4257_v25 }
0x1170   :  { %4197 = vperm.xlu0 %5097, %v4189_v37   ;;  %4128 = vperm.xlu1 %5096, %v4120_v41   ;;  %v4190_v34 = vmul.f32 %v4189_v37, %v4189_v37  ;;  %v4121_v18 = vmul.f32 %v4120_v41, %v4120_v41  ;;  %v6454_v41 = vor.u32 %v4262_v55, %v4261_v12 }
0x1171   :  { %v4259_v61 = vmul.f32 %v4258_v51, %v4258_v51 }
0x1172   :  { %v4191_v32 = vadd.f32 %v4190_v34, %v4121_v18 }
0x1174   :  { %4266 = vperm.xlu1 %5096, %v4258_v51   ;;  %v4260_v40 = vadd.f32 %v4259_v61, %v4191_v32  ;;  %v4399_v61 = vld [vmem:[#allocation3 + $0x4] ss:$8 sm:$0xf] }
0x1176   :  { %v4105_v62 = vpop.xlane.xlu1 %4104 }
0x1177   :  { %v4111_v19 = vsub.f32 %v4086_v31, %v4105_v62  ;;  %v4123_v31 = vld [vmem:[#allocation3] ss:$8 sm:$0xf] }
0x1178   :  { %v6440_v24 = vor.u32 %v4124_v0, %v4123_v31 }
0x1179   :  { %4115 = vst.msk [vmem:[#allocation4 + $0x8] sm:$0xff] %vm4113_vm14, %v4111_v19  ;;  %v6462_v19 = vor.u32 %v4331_v14, %v4330_v29 }
0x117a   :  { %v4135_v36 = vrot.slane %v6440_v24, %v5324_v2  ;;  %v4143_v8 = vrot.slane %v6440_v24, %v5330_v4  ;;  %v4147_v7 = vrot.slane %v6440_v24, %v5333_v5  ;;  %v4151_v37 = vrot.slane %v6440_v24, %v5336_v9 }
0x117b   :  { %v4155_v25 = vrot.slane %v6440_v24, %v5339_v10  ;;  %v4159_v51 = vrot.slane %v6440_v24, %v5346_v15  ;;  %v4163_v62 = vrot.slane %v6440_v24, %v5351_v21  ;;  %v4370_v31 = vrot.slane %v6462_v19, %v5351_v21 }
0x117c   :  { %v4109_v33 = vpop.xlane.xlu0 %4108 }
0x117d   :  { %v4112_v20 = vsub.f32 %v4091_v47, %v4109_v33  ;;  %v4193_v47 = vld [vmem:[#allocation3 + $0x1] ss:$8 sm:$0xf0] }
0x117e   :  { %v6442_v43 = vor.u32 %v4193_v47, %v4192_v58 }
0x117f   :  { %4117 = vst.msk [vmem:[#allocation4 + $0x10] sm:$0x3] %vm4116_vm15, %v4112_v20 }
0x1180   :  { %v4326_v6 = vld [vmem:[#allocation4 + $0x8] sm:$0x3]  ;;  %v4395_v28 = vld [vmem:[#allocation4 + $0xa] sm:$0x3]  ;;  %v4464_v27 = vld [vmem:[#allocation4 + $0xc] sm:$0x3]  ;;  %v4204_v18 = vrot.slane %v6442_v43, %v5324_v2  ;;  %v4208_v33 = vrot.slane %v6442_v43, %v5327_v3  ;;  %v4212_v20 = vrot.slane %v6442_v43, %v5330_v4  ;;  %v4216_v32 = vrot.slane %v6442_v43, %v5333_v5 }
0x1181   :  { %v4327_v45 = vsub.f32 %v4118_v23, %v4326_v6  ;;  %v4396_v35 = vsub.f32 %v4118_v23, %v4395_v28  ;;  %v4533_v54 = vld [vmem:[#allocation4 + $0xe] sm:$0x3]  ;;  %v4465_v22 = vsub.f32 %v4118_v23, %v4464_v27  ;;  %v4400_v6 = vld [vmem:[#allocation3 + $0x4] ss:$8 sm:$0xf0]  ;;  %v4220_v28 = vrot.slane %v6442_v43, %v5336_v9 }
0x1182   :  { %v4534_v52 = vsub.f32 %v4118_v23, %v4533_v54  ;;  %v4224_v27 = vrot.slane %v6442_v43, %v5339_v10  ;;  %v4469_v54 = vld [vmem:[#allocation3 + $0x5] ss:$8 sm:$0xf0] }
0x1183   :  { %v4328_v11 = vmul.f32 %v4327_v45, %v4327_v45  ;;  %4335 = vperm.xlu1 %5096, %v4327_v45   ;;  %v4397_v63 = vmul.f32 %v4396_v35, %v4396_v35  ;;  %v4466_v60 = vmul.f32 %v4465_v22, %v4465_v22  ;;  %v4232_v45 = vrot.slane %v6442_v43, %v5351_v21 }
0x1184   :  { %v4535_v48 = vmul.f32 %v4534_v52, %v4534_v52 }
0x1185   :  { %v4329_v42 = vadd.f32 %v4328_v11, %v4260_v40  ;;  %v4228_v40 = vrot.slane %v6442_v43, %v5346_v15  ;;  %v4273_v11 = vrot.slane %v6454_v41, %v5324_v2 }
0x1186   :  { %v4602_v49 = vld [vmem:[#allocation4 + $0x10] sm:$0x3] }
0x1187   :  { %4404 = vperm.xlu1 %5096, %v4396_v35   ;;  %v4398_v56 = vadd.f32 %v4397_v63, %v4329_v42  ;;  %v4603_v26 = vsub.f32 %v4118_v23, %v4602_v49  ;;  %v4139_v23 = vrot.slane %v6440_v24, %v5327_v3  ;;  %v4468_v35 = vld [vmem:[#allocation3 + $0x5] ss:$8 sm:$0xf]  ;;  %v4281_v42 = vrot.slane %v6454_v41, %v5330_v4  ;;  %v4538_v49 = vld [vmem:[#allocation3 + $0x6] ss:$8 sm:$0xf0] }
0x1188   :  { %v4285_v63 = vrot.slane %v6454_v41, %v5333_v5 }
0x1189   :  { %v4467_v1 = vadd.f32 %v4466_v60, %v4398_v56  ;;  %v4604_v50 = vmul.f32 %v4603_v26, %v4603_v26  ;;  %v4289_v56 = vrot.slane %v6454_v41, %v5336_v9  ;;  %v4293_v60 = vrot.slane %v6454_v41, %v5339_v10 }
0x118b   :  { %4473 = vperm.xlu1 %5096, %v4465_v22   ;;  %v4536_v44 = vadd.f32 %v4535_v48, %v4467_v1  ;;  %v4277_v22 = vrot.slane %v6454_v41, %v5327_v3  ;;  %v6496_v1 = vor.u32 %v4400_v6, %v4399_v61  ;;  %v4606_v48 = vld [vmem:[#allocation3 + $0x7] ss:$8 sm:$0xf] }
0x118d   :  { %v4605_v13 = vadd.f32 %v4604_v50, %v4536_v44  ;;  %v4607_v44 = vld [vmem:[#allocation3 + $0x7] ss:$8 sm:$0xf0]  ;;  %v4301_v50 = vrot.slane %v6454_v41, %v5351_v21  ;;  %v4411_v47 = vrot.slane %v6496_v1, %v5324_v2  ;;  %v4415_v12 = vrot.slane %v6496_v1, %v5327_v3 }
0x118e   :  { %v6522_v58 = vor.u32 %v4607_v44, %v4606_v48 }
0x118f   :  { %4542 = vperm.xlu1 %5096, %v4534_v52   ;;  %5114 = vrsqrt.f32 %v4605_v13  ;;  %vm4673_vm0 = vcmp.eq.f32.partialorder %v4605_v13, inf  ;;  %v4676_v38 = vand.u32 2147483648, %v4605_v13  ;;  %vm4675_vm1 = vcmp.eq.f32.partialorder %v4605_v13, 0.0  ;;  %v4537_v52 = vld [vmem:[#allocation3 + $0x6] ss:$8 sm:$0xf] }
0x1190   :  { %v6520_v0 = vor.u32 %v4538_v49, %v4537_v52  ;;  %v4638_v43 = vrot.slane %v6522_v58, %v5339_v10 }
0x1193   :  { %4611 = vperm.xlu1 %5096, %v4603_v26   ;;  %v4297_v26 = vrot.slane %v6454_v41, %v5346_v15 }
0x119c   :  { %v5115_v17 = vpop.eup %5114 }
0x119d   :  { %v4672_v30 = vmul.f32 %v5115_v17, %v4605_v13  ;;  %v4346_v17 = vrot.slane %v6462_v19, %v5327_v3 }
0x119f   :  { %v4674_v53 = vsel %vm4673_vm0, %v4605_v13, %v4672_v30  ;;  %v4342_v13 = vrot.slane %v6462_v19, %v5324_v2  ;;  %v4350_v30 = vrot.slane %v6462_v19, %v5330_v4 }
0x11a0   :  { %v4677_v59 = vsel %vm4675_vm1, %v4676_v38, %v4674_v53  ;;  %v4354_v38 = vrot.slane %v6462_v19, %v5333_v5  ;;  %v4358_v53 = vrot.slane %v6462_v19, %v5336_v9 }
0x11a1   :  { %v4678_v39 = vadd.f32 1e-20, %v4677_v59  ;;  %v4362_v59 = vrot.slane %v6462_v19, %v5339_v10 }
0x11a3   :  { %v4679_v57 = vmul.f32 0.5, %v4678_v39  ;;  %v6512_v39 = vor.u32 %v4469_v54, %v4468_v35 }
0x11a5   :  { %5116 = vrcp.f32 %v4679_v57 }
0x11b2   :  { %v5117_v46 = vpop.eup %5116 }
0x11b3   :  { %4683 = vperm.xlu1 %5096, %v5117_v46   ;;  %v4366_v46 = vrot.slane %v6462_v19, %v5346_v15 }
0x11eb   :  { %v6464_v34 = vpop.permute.xlu1 %4128  ;;  %v4198_v61 = vpop.permute.xlu0 %4197 }
0x11ec   :  { %v4172_v48 = vmul.f32 %v4135_v36, %v6464_v34  ;;  %v4173_v44 = vmul.f32 %v4139_v23, %v6464_v34  ;;  %v4174_v54 = vmul.f32 %v4143_v8, %v6464_v34  ;;  %v4175_v49 = vmul.f32 %v4147_v7, %v6464_v34 }
0x11ed   :  { %v4176_v36 = vmul.f32 %v4151_v37, %v6464_v34  ;;  %v4177_v23 = vmul.f32 %v4155_v25, %v6464_v34  ;;  %v4178_v8 = vmul.f32 %v4159_v51, %v6464_v34  ;;  %v4179_v7 = vmul.f32 %v4163_v62, %v6464_v34 }
0x11ee   :  { %v4241_v52 = vmul.f32 %v4204_v18, %v4198_v61  ;;  %v4242_v37 = vmul.f32 %v4208_v33, %v4198_v61  ;;  %v4243_v25 = vmul.f32 %v4212_v20, %v4198_v61  ;;  %v4244_v51 = vmul.f32 %v4216_v32, %v4198_v61 }
0x11ef   :  { %v6514_v57 = vpop.permute.xlu1 %4266  ;;  %v4245_v24 = vmul.f32 %v4220_v28, %v4198_v61  ;;  %v4246_v62 = vmul.f32 %v4224_v27, %v4198_v61  ;;  %v4247_v34 = vmul.f32 %v4228_v40, %v4198_v61  ;;  %v4248_v18 = vmul.f32 %v4232_v45, %v4198_v61 }
0x11f0   :  { %v4646_v61 = vrot.slane %v6522_v58, %v5351_v21  ;;  %v4249_v20 = vadd.f32 %v4241_v52, %v4172_v48  ;;  %v4250_v33 = vadd.f32 %v4242_v37, %v4173_v44  ;;  %v4251_v35 = vadd.f32 %v4243_v25, %v4174_v54 }
0x11f1   :  { %v4252_v32 = vadd.f32 %v4244_v51, %v4175_v49  ;;  %v4253_v14 = vadd.f32 %v4245_v24, %v4176_v36  ;;  %v4254_v29 = vadd.f32 %v4246_v62, %v4177_v23  ;;  %v4255_v28 = vadd.f32 %v4247_v34, %v4178_v8 }
0x11f2   :  { %v4256_v55 = vadd.f32 %v4248_v18, %v4179_v7  ;;  %v4310_v40 = vmul.f32 %v4273_v11, %v6514_v57  ;;  %v4311_v45 = vmul.f32 %v4277_v22, %v6514_v57  ;;  %v4312_v54 = vmul.f32 %v4281_v42, %v6514_v57 }
0x11f3   :  { %v4313_v52 = vmul.f32 %v4285_v63, %v6514_v57  ;;  %v4314_v11 = vmul.f32 %v4289_v56, %v6514_v57  ;;  %v4315_v22 = vmul.f32 %v4293_v60, %v6514_v57  ;;  %v4316_v42 = vmul.f32 %v4297_v26, %v6514_v57 }
0x11f4   :  { %v4317_v63 = vmul.f32 %v4301_v50, %v6514_v57  ;;  %v4318_v57 = vadd.f32 %v4310_v40, %v4249_v20  ;;  %v4319_v48 = vadd.f32 %v4311_v45, %v4250_v33  ;;  %v6816_v18 = vrot.slane %v6496_v1, %v5339_v10 }
0x11f5   :  { %v4321_v44 = vadd.f32 %v4313_v52, %v4252_v32  ;;  %v4322_v36 = vadd.f32 %v4314_v11, %v4253_v14  ;;  %v4323_v23 = vadd.f32 %v4315_v22, %v4254_v29  ;;  %v6813_v29 = vrot.slane %v6496_v1, %v5330_v4 }
0x11f6   :  { %v4325_v8 = vadd.f32 %v4317_v63, %v4256_v55  ;;  %v6814_v14 = vrot.slane %v6496_v1, %v5333_v5  ;;  %v6817_v33 = vrot.slane %v6496_v1, %v5346_v15  ;;  %v6818_v20 = vrot.slane %v6496_v1, %v5351_v21 }
0x11f7   :  { %v6819_v40 = vrot.slane %v6512_v39, %v5324_v2  ;;  %v6821_v11 = vrot.slane %v6512_v39, %v5330_v4 }
0x11fe   :  { %v4336_v6 = vpop.permute.xlu1 %4335 }
0x11ff   :  { %v4379_v49 = vmul.f32 %v4342_v13, %v4336_v6  ;;  %v4380_v56 = vmul.f32 %v4346_v17, %v4336_v6  ;;  %v4381_v60 = vmul.f32 %v4350_v30, %v4336_v6  ;;  %v4382_v26 = vmul.f32 %v4354_v38, %v4336_v6 }
0x1200   :  { %v4383_v41 = vmul.f32 %v4358_v53, %v4336_v6  ;;  %v4384_v50 = vmul.f32 %v4362_v59, %v4336_v6  ;;  %v4385_v13 = vmul.f32 %v4366_v46, %v4336_v6  ;;  %v4386_v17 = vmul.f32 %v4370_v31, %v4336_v6 }
0x1201   :  { %v4320_v38 = vadd.f32 %v4312_v54, %v4251_v35  ;;  %v4324_v53 = vadd.f32 %v4316_v42, %v4255_v28  ;;  %v4387_v7 = vadd.f32 %v4379_v49, %v4318_v57  ;;  %v4388_v37 = vadd.f32 %v4380_v56, %v4319_v48 }
0x1202   :  { %v4405_v27 = vpop.permute.xlu1 %4404  ;;  %v4390_v25 = vadd.f32 %v4382_v26, %v4321_v44  ;;  %v4391_v51 = vadd.f32 %v4383_v41, %v4322_v36  ;;  %v4392_v24 = vadd.f32 %v4384_v50, %v4323_v23  ;;  %v4394_v62 = vadd.f32 %v4386_v17, %v4325_v8 }
0x1203   :  { %v4389_v59 = vadd.f32 %v4381_v60, %v4320_v38  ;;  %v4393_v46 = vadd.f32 %v4385_v13, %v4324_v53  ;;  %v4448_v19 = vmul.f32 %v4411_v47, %v4405_v27  ;;  %v4449_v31 = vmul.f32 %v4415_v12, %v4405_v27 }
0x1204   :  { %v4450_v55 = vmul.f32 %v6813_v29, %v4405_v27  ;;  %v4451_v6 = vmul.f32 %v6814_v14, %v4405_v27  ;;  %v6815_v35 = vrot.slane %v6496_v1, %v5336_v9  ;;  %v4453_v47 = vmul.f32 %v6816_v18, %v4405_v27 }
0x1205   :  { %v4454_v12 = vmul.f32 %v6817_v33, %v4405_v27  ;;  %v4455_v32 = vmul.f32 %v6818_v20, %v4405_v27  ;;  %v6820_v54 = vrot.slane %v6512_v39, %v5327_v3  ;;  %v6822_v42 = vrot.slane %v6512_v39, %v5333_v5 }
0x1206   :  { %v4474_v30 = vpop.permute.xlu1 %4473  ;;  %v4452_v34 = vmul.f32 %v6815_v35, %v4405_v27  ;;  %v6823_v1 = vrot.slane %v6512_v39, %v5336_v9  ;;  %v6824_v49 = vrot.slane %v6512_v39, %v5339_v10  ;;  %v6825_v60 = vrot.slane %v6512_v39, %v5346_v15 }
0x1207   :  { %v4517_v45 = vmul.f32 %v6819_v40, %v4474_v30  ;;  %v4518_v52 = vmul.f32 %v6820_v54, %v4474_v30  ;;  %v4519_v22 = vmul.f32 %v6821_v11, %v4474_v30  ;;  %v4520_v63 = vmul.f32 %v6822_v42, %v4474_v30 }
0x1208   :  { %v4521_v27 = vmul.f32 %v6823_v1, %v4474_v30  ;;  %v4522_v56 = vmul.f32 %v6824_v49, %v4474_v30  ;;  %v4523_v26 = vmul.f32 %v6825_v60, %v4474_v30  ;;  %v6826_v41 = vrot.slane %v6512_v39, %v5351_v21 }
0x1209   :  { %v4456_v13 = vadd.f32 %v4448_v19, %v4387_v7  ;;  %v4457_v17 = vadd.f32 %v4449_v31, %v4388_v37  ;;  %v4458_v57 = vadd.f32 %v4450_v55, %v4389_v59  ;;  %v4459_v48 = vadd.f32 %v4451_v6, %v4390_v25 }
0x120a   :  { %v4543_v28 = vpop.permute.xlu1 %4542  ;;  %v4524_v50 = vmul.f32 %v6826_v41, %v4474_v30  ;;  %v4460_v38 = vadd.f32 %v4452_v34, %v4391_v51  ;;  %v4461_v44 = vadd.f32 %v4453_v47, %v4392_v24  ;;  %v4462_v36 = vadd.f32 %v4454_v12, %v4393_v46 }
0x120b   :  { %v4463_v23 = vadd.f32 %v4455_v32, %v4394_v62  ;;  %v4525_v53 = vadd.f32 %v4517_v45, %v4456_v13  ;;  %v4526_v8 = vadd.f32 %v4518_v52, %v4457_v17  ;;  %v4527_v29 = vadd.f32 %v4519_v22, %v4458_v57 }
0x120c   :  { %v4528_v14 = vadd.f32 %v4520_v63, %v4459_v48  ;;  %v4529_v18 = vadd.f32 %v4521_v27, %v4460_v38  ;;  %v4530_v33 = vadd.f32 %v4522_v56, %v4461_v44  ;;  %v4531_v20 = vadd.f32 %v4523_v26, %v4462_v36 }
0x120d   :  { %v4532_v40 = vadd.f32 %v4524_v50, %v4463_v23  ;;  %v6827_v39 = vrot.slane %v6520_v0, %v5324_v2  ;;  %v6828_v7 = vrot.slane %v6520_v0, %v5327_v3  ;;  %v6829_v59 = vrot.slane %v6520_v0, %v5330_v4 }
0x120e   :  { %v4612_v35 = vpop.permute.xlu1 %4611  ;;  %v6830_v51 = vrot.slane %v6520_v0, %v5333_v5  ;;  %v6831_v46 = vrot.slane %v6520_v0, %v5336_v9  ;;  %v6832_v19 = vrot.slane %v6520_v0, %v5339_v10  ;;  %v6833_v55 = vrot.slane %v6520_v0, %v5346_v15 }
0x120f   :  { %v4586_v30 = vmul.f32 %v6827_v39, %v4543_v28  ;;  %v4587_v37 = vmul.f32 %v6828_v7, %v4543_v28  ;;  %v4588_v25 = vmul.f32 %v6829_v59, %v4543_v28  ;;  %v6834_v34 = vrot.slane %v6520_v0, %v5351_v21 }
0x1210   :  { %v4589_v24 = vmul.f32 %v6830_v51, %v4543_v28  ;;  %v4590_v62 = vmul.f32 %v6831_v46, %v4543_v28  ;;  %v4591_v31 = vmul.f32 %v6832_v19, %v4543_v28  ;;  %v4592_v6 = vmul.f32 %v6833_v55, %v4543_v28 }
0x1211   :  { %v4593_v47 = vmul.f32 %v6834_v34, %v4543_v28  ;;  %v6835_v12 = vrot.slane %v6522_v58, %v5324_v2  ;;  %v6836_v45 = vrot.slane %v6522_v58, %v5327_v3  ;;  %v6837_v52 = vrot.slane %v6522_v58, %v5330_v4 }
0x1212   :  { %v6838_v22 = vrot.slane %v6522_v58, %v5333_v5  ;;  %v6839_v0 = vrot.slane %v6522_v58, %v5336_v9  ;;  %v4660_v2 = vmul.f32 %v4638_v43, %v4612_v35  ;;  %v6840_v3 = vrot.slane %v6522_v58, %v5346_v15 }
0x1213   :  { %v4655_v32 = vmul.f32 %v6835_v12, %v4612_v35  ;;  %v4656_v54 = vmul.f32 %v6836_v45, %v4612_v35  ;;  %v4657_v11 = vmul.f32 %v6837_v52, %v4612_v35  ;;  %v4662_v4 = vmul.f32 %v4646_v61, %v4612_v35 }
0x1214   :  { %v4658_v42 = vmul.f32 %v6838_v22, %v4612_v35  ;;  %v4659_v28 = vmul.f32 %v6839_v0, %v4612_v35  ;;  %v4661_v63 = vmul.f32 %v6840_v3, %v4612_v35  ;;  %v4594_v1 = vadd.f32 %v4586_v30, %v4525_v53 }
0x1215   :  { %v4595_v27 = vadd.f32 %v4587_v37, %v4526_v8  ;;  %v4596_v5 = vadd.f32 %v4588_v25, %v4527_v29  ;;  %v4597_v49 = vadd.f32 %v4589_v24, %v4528_v14  ;;  %v4598_v56 = vadd.f32 %v4590_v62, %v4529_v18 }
0x1216   :  { %v4599_v60 = vadd.f32 %v4591_v31, %v4530_v33  ;;  %v4600_v9 = vadd.f32 %v4592_v6, %v4531_v20  ;;  %v4601_v26 = vadd.f32 %v4593_v47, %v4532_v40  ;;  %v4663_v41 = vadd.f32 %v4655_v32, %v4594_v1 }
0x1217   :  { %v4664_v50 = vadd.f32 %v4656_v54, %v4595_v27  ;;  %v4665_v10 = vadd.f32 %v4657_v11, %v4596_v5  ;;  %v4666_v43 = vadd.f32 %v4658_v42, %v4597_v49  ;;  %v4667_v17 = vadd.f32 %v4659_v28, %v4598_v56 }
0x1218   :  { %v4668_v15 = vadd.f32 %v4660_v2, %v4599_v60  ;;  %v4669_v57 = vadd.f32 %v4661_v63, %v4600_v9  ;;  %v4670_v48 = vadd.f32 %v4662_v4, %v4601_v26 }
0x122e   :  { %v4684_v13 = vpop.permute.xlu1 %4683 }
0x122f   :  { %v4686_v38 = vmul.f32 %v4684_v13, %v4663_v41  ;;  %v4687_v21 = vmul.f32 %v4684_v13, %v4664_v50  ;;  %v4688_v58 = vmul.f32 %v4684_v13, %v4665_v10  ;;  %v4689_v61 = vmul.f32 %v4684_v13, %v4666_v43 }
0x1230   :  { %v4690_v44 = vmul.f32 %v4684_v13, %v4667_v17  ;;  %v4691_v36 = vmul.f32 %v4684_v13, %v4668_v15  ;;  %v4692_v23 = vmul.f32 %v4684_v13, %v4669_v57  ;;  %v4693_v53 = vmul.f32 %v4684_v13, %v4670_v48 }
0x1231   :  { %v4702_v8 = vcombine.low %v4686_v38, %v4687_v21  ;;  %v4703_v29 = vcombine.low %v4688_v58, %v4689_v61 }
0x1232   :  { %v4719_v14 = vcombine.low %v4690_v44, %v4691_v36  ;;  %v4720_v35 = vcombine.low %v4692_v23, %v4693_v53 }
0x1233   :  { %v4710_v18 = vrot.slane %v4702_v8, %v6116_v16  ;;  %v4717_v33 = vrot.slane %v4703_v29, %v6116_v16 }
0x1234   :  { %v4727_v20 = vrot.slane %v4719_v14, %v6116_v16  ;;  %v4734_v40 = vrot.slane %v4720_v35, %v6116_v16 }
0x1235   :  { %v4718_v39 = vcombine.low %v4710_v18, %v4717_v33 }
0x1236   :  { %v4735_v30 = vcombine.low %v4727_v20, %v4734_v40 }
0x1237   :  { %4738 = vst [vmem:[#allocation14] sm:$0xff] %v4718_v39 }
0x1238   :  { %4739 = vst [vmem:[#allocation14 + $0x8] sm:$0xff] %v4735_v30 }
0x1239   :  { %5229 = shalt.err (!%p5226_p1)
}
0x123a   :  { %4749 = dma.vmem_to_hbm [thread:$0]  %s4747_s18, 256, %s6810_s7, [#allocation7]  }
0x123b   :  { %5244 = dma.done.wait [#allocation7], 256  }
0x123c   :  { %5245 = vsyncadd [#allocation7], 4294967040 }
0x123d   :  { %4753 = vsyncpa [#allocation6], 1 }
0x123e   :  { %4754 = vsyncpa [#allocation9], 1 }
0x123f   :  { %4755 = vsyncpa [#allocation12], 1 }
0x1240   :  { %4756 = vsyncpa [#allocation7], 1 }

</bundles_post_ra>
